<compile_context>
chip_gen: v7x
topology: tpu7x:2x2x1
jax: 0.10.0
libtpu: 0.0.40
codegen_flags: <defaults>
</compile_context>

<pallas_src>
import math
import functools

import jax
import jax.numpy as jnp
from jax.experimental import pallas as pl
from jax.experimental.pallas import tpu as pltpu


_VMEM = pl.BlockSpec(memory_space=pltpu.MemorySpace.VMEM)
LN_EPS = 1e-5


# --------------------------------------------------------------------------
# In-kernel helpers (traced inside Pallas kernels)
# --------------------------------------------------------------------------

def _ln(x, g, eps=LN_EPS):
    """dalle2-pytorch LayerNorm (gamma only, unbiased=False)."""
    mean = jnp.mean(x, axis=-1, keepdims=True)
    var = jnp.mean(jnp.square(x - mean), axis=-1, keepdims=True)
    return (x - mean) * jax.lax.rsqrt(var + eps) * g


def _l2norm(t, eps=1e-12):
    s = jnp.sum(t * t, axis=-1, keepdims=True)
    return t / jnp.maximum(jnp.sqrt(s), eps)


def _bf16(t):
    return t.astype(jnp.bfloat16)


# --------------------------------------------------------------------------
# Fused Pallas kernels
# --------------------------------------------------------------------------

def _attn_block_kernel(x_ref, g_ref, wqkv_ref, cos_ref, sin_ref, rotm_ref,
                       nkv_ref, bias_ref, wo_ref, og_ref, o_ref,
                       *, heads, dim_head, eps):
    """Whole attention sub-block for one batch element, all heads fused."""
    x = x_ref[0].astype(jnp.float32)                      # (n, D)
    g = g_ref[...].astype(jnp.float32)                    # (1, D)
    n, D = x.shape

    # ---- LayerNorm prologue (fused into the projection kernel) ----
    xn = _ln(x, g, eps)

    # ---- fused q / k / v projection: single MXU call, 96-wide output ----
    qkv = jnp.dot(_bf16(xn), _bf16(wqkv_ref[...]),
                  preferred_element_type=jnp.float32)     # (n, H*dh + 2*dh)
    dq = heads * dim_head
    k = qkv[:, dq:dq + dim_head]                          # single shared kv head
    v = qkv[:, dq + dim_head:]

    # ---- rotary embedding via constant rotate-half matrix (no reshapes) ----
    cos = cos_ref[...].astype(jnp.float32)                # (n, dh) (1 beyond rot_dim)
    sin = sin_ref[...].astype(jnp.float32)                # (n, dh) (0 beyond rot_dim)
    rotm = rotm_ref[...].astype(jnp.float32)              # (dh, dh) pair-swap/sign

    def rope(t):
        return t * cos + jnp.dot(t, rotm, preferred_element_type=jnp.float32) * sin

    # ---- learned null key/value (classifier-free guidance token) ----
    k = rope(k)
    nk = nkv_ref[0:1, :].astype(jnp.float32)              # (1, dh)
    nv = nkv_ref[1:2, :].astype(jnp.float32)
    k = jnp.concatenate([nk, k], axis=0)                  # (j, dh), j = n + 1
    v = jnp.concatenate([nv, v], axis=0)

    # cosine-sim attention: l2norm then effective scale 16 (folded into q)
    k_b = _bf16(_l2norm(k))
    v_b = _bf16(v)

    bias = bias_ref[...].astype(jnp.float32)              # (H, n, j), causal pre-folded
    wo = wo_ref[...]                                      # (H*dh, D) bf16

    o = jnp.zeros((n, D), jnp.float32)
    for h in range(heads):                                # static unroll, all heads fused
        q_h = qkv[:, h * dim_head:(h + 1) * dim_head]
        q_h = _l2norm(rope(q_h)) * 16.0
        # contract last axes directly (no in-kernel k.T)
        sim = jax.lax.dot_general(_bf16(q_h), k_b,
                                  dimension_numbers=(((1,), (1,)), ((), ())),
                                  preferred_element_type=jnp.float32)    # (n, j)
        sim = sim + bias[h]
        sim = sim - jnp.max(sim, axis=-1, keepdims=True)
        p = jnp.exp(sim)                                  # fp32 softmax
        p = p / jnp.sum(p, axis=-1, keepdims=True)
        out_h = jnp.dot(_bf16(p), v_b, preferred_element_type=jnp.float32)   # (n, dh)
        wo_h = wo[h * dim_head:(h + 1) * dim_head, :]
        o = o + jnp.dot(_bf16(out_h), _bf16(wo_h), preferred_element_type=jnp.float32)

    # ---- output LayerNorm + residual (fused epilogue) ----
    og = og_ref[...].astype(jnp.float32)
    on = _ln(o, og, eps)
    o_ref[0] = (on + x).astype(o_ref.dtype)


def _ff_block_kernel(x_ref, g_ref, w1_ref, w2_ref, o_ref, *, eps):
    """LayerNorm -> w1 -> SwiGLU -> w2 -> residual, fully fused."""
    x = x_ref[...].astype(jnp.float32)                    # (R, D)
    g = g_ref[...].astype(jnp.float32)
    xn = _ln(x, g, eps)
    h = jnp.dot(_bf16(xn), _bf16(w1_ref[...]),
                preferred_element_type=jnp.float32)       # (R, 2*inner)
    inner = h.shape[-1] // 2
    a, gate = h[:, :inner], h[:, inner:]
    hh = a * (gate * jax.nn.sigmoid(gate))                # SwiGLU
    out = jnp.dot(_bf16(hh), _bf16(w2_ref[...]),
                  preferred_element_type=jnp.float32)
    o_ref[...] = (out + x).astype(o_ref.dtype)


def _final_kernel(x_ref, g_ref, w_ref, o_ref, *, eps):
    """stable LayerNorm -> bias-free projection, fused."""
    x = x_ref[...].astype(jnp.float32)
    # dalle2-pytorch "stable" LayerNorm: divide by row max (kept as-is for parity)
    x = x / jnp.max(x, axis=-1, keepdims=True)
    xn = _ln(x, g_ref[...].astype(jnp.float32), eps)
    o_ref[...] = jnp.dot(_bf16(xn), _bf16(w_ref[...]),
                         preferred_element_type=jnp.float32).astype(o_ref.dtype)


def _time_mlp_kernel(t_ref, w1_ref, b1_ref, w2_ref, b2_ref, w3_ref, b3_ref, o_ref):
    """MLP(dim, dim*num_time_embeds): Linear->SiLU->Linear->SiLU->Linear."""
    def lin(h, w_ref, b_ref):
        return (jnp.dot(_bf16(h), _bf16(w_ref[...]), preferred_element_type=jnp.float32)
                + b_ref[...].astype(jnp.float32))

    h = t_ref[...].astype(jnp.float32)
    h = lin(h, w1_ref, b1_ref)
    h = h * jax.nn.sigmoid(h)
    h = lin(h, w2_ref, b2_ref)
    h = h * jax.nn.sigmoid(h)
    h = lin(h, w3_ref, b3_ref)
    o_ref[...] = h.astype(o_ref.dtype)


# --------------------------------------------------------------------------
# Kernel wrappers
# --------------------------------------------------------------------------

def attn_block(x, p, attn_bias, cos, sin, rotm, heads, dim_head):
    B, n, D = x.shape
    j = n + 1
    dq = heads * dim_head
    kernel = functools.partial(_attn_block_kernel,
                               heads=heads, dim_head=dim_head, eps=LN_EPS)
    return pl.pallas_call(
        kernel,
        out_shape=jax.ShapeDtypeStruct((B, n, D), x.dtype),
        grid=(B,),
        in_specs=[
            pl.BlockSpec((1, n, D), lambda b: (b, 0, 0)),            # x
            pl.BlockSpec((1, D), lambda b: (0, 0)),                  # norm gamma
            pl.BlockSpec((D, dq + 2 * dim_head), lambda b: (0, 0)),  # fused wqkv
            pl.BlockSpec((n, dim_head), lambda b: (0, 0)),           # rotary cos
            pl.BlockSpec((n, dim_head), lambda b: (0, 0)),           # rotary sin
            pl.BlockSpec((dim_head, dim_head), lambda b: (0, 0)),    # rotate-half matrix
            pl.BlockSpec((2, dim_head), lambda b: (0, 0)),           # null kv
            pl.BlockSpec((heads, n, j), lambda b: (0, 0, 0)),        # bias (+causal mask)
            pl.BlockSpec((dq, D), lambda b: (0, 0)),                 # wo
            pl.BlockSpec((1, D), lambda b: (0, 0)),                  # out-norm gamma
        ],
        out_specs=pl.BlockSpec((1, n, D), lambda b: (b, 0, 0)),
        compiler_params=pltpu.CompilerParams(dimension_semantics=("parallel",)),
    )(x,
      p["norm_g"].reshape(1, D),
      p["wqkv"].astype(jnp.bfloat16),
      cos, sin, rotm,
      p["null_kv"],
      attn_bias,
      p["wo"].astype(jnp.bfloat16),
      p["out_norm_g"].reshape(1, D))


def ff_block(x, p):
    B, n, D = x.shape
    x2 = x.reshape(B * n, D)
    out = pl.pallas_call(
        functools.partial(_ff_block_kernel, eps=LN_EPS),
        out_shape=jax.ShapeDtypeStruct((B * n, D), x.dtype),
        in_specs=[_VMEM, _VMEM, _VMEM, _VMEM],
        out_specs=_VMEM,
    )(x2, p["norm_g"].reshape(1, D),
      p["w1"].astype(jnp.bfloat16), p["w2"].astype(jnp.bfloat16))
    return out.reshape(B, n, D)


def final_block(x, g, w):
    B, n, D = x.shape
    x2 = x.reshape(B * n, D)
    out = pl.pallas_call(
        functools.partial(_final_kernel, eps=LN_EPS),
        out_shape=jax.ShapeDtypeStruct((B * n, w.shape[1]), x.dtype),
        in_specs=[_VMEM, _VMEM, _VMEM],
        out_specs=_VMEM,
    )(x2, g.reshape(1, D), w.astype(jnp.bfloat16))
    return out.reshape(B, n, w.shape[1])


def time_mlp(pe, tm):
    B = pe.shape[0]
    n_out = tm["w3"].shape[1]
    return pl.pallas_call(
        _time_mlp_kernel,
        out_shape=jax.ShapeDtypeStruct((B, n_out), pe.dtype),
        in_specs=[_VMEM] * 7,
        out_specs=_VMEM,
    )(pe,
      tm["w1"].astype(jnp.bfloat16), tm["b1"].reshape(1, -1),
      tm["w2"].astype(jnp.bfloat16), tm["b2"].reshape(1, -1),
      tm["w3"].astype(jnp.bfloat16), tm["b3"].reshape(1, -1))


# --------------------------------------------------------------------------
# Plain-JAX precompute (done once per forward, outside kernels)
# --------------------------------------------------------------------------

def sinusoidal_pos_emb(t, dim):
    half = dim // 2
    emb = math.log(10000) / (half - 1)
    freqs = jnp.exp(jnp.arange(half, dtype=t.dtype) * -emb)
    args = t[:, None] * freqs[None, :]
    return jnp.concatenate([jnp.sin(args), jnp.cos(args)], axis=-1)


def rotary_constants(n, dim_head, rot_dim, dtype=jnp.float32):
    """cos/sin (padded to pass-through beyond rot_dim) and a constant
    rotate-half matrix so the kernel needs no reshapes/rolls."""
    inv_freq = 1.0 / (10000.0 ** (jnp.arange(0, rot_dim, 2, dtype=jnp.float32) / rot_dim))
    t = jnp.arange(n, dtype=jnp.float32)
    freqs = t[:, None] * inv_freq[None, :]          # (n, rot_dim // 2)
    freqs = jnp.repeat(freqs, 2, axis=-1)           # interleaved -> (n, rot_dim)
    cos = jnp.cos(freqs)
    sin = jnp.sin(freqs)
    pad = dim_head - rot_dim
    if pad > 0:
        cos = jnp.concatenate([cos, jnp.ones((n, pad), jnp.float32)], axis=-1)
        sin = jnp.concatenate([sin, jnp.zeros((n, pad), jnp.float32)], axis=-1)
    # (t @ R)[:, 2i] = -t[:, 2i+1] ; (t @ R)[:, 2i+1] = t[:, 2i]
    R = jnp.zeros((dim_head, dim_head), jnp.float32)
    idx = jnp.arange(rot_dim // 2)
    R = R.at[2 * idx + 1, 2 * idx].set(-1.0)
    R = R.at[2 * idx, 2 * idx + 1].set(1.0)
    return cos.astype(dtype), sin.astype(dtype), R.astype(dtype)


def build_attn_bias(emb_table, i, j, causal, num_buckets=32, max_distance=128):
    """T5-style relative position bias (heads, i, j) with the causal mask
    pre-folded as a large finite negative value."""
    q_pos = jnp.arange(i)
    k_pos = jnp.arange(j)
    rel_pos = k_pos[None, :] - q_pos[:, None]
    n = jnp.maximum(-rel_pos, 0)
    max_exact = num_buckets // 2
    is_small = n < max_exact
    val_if_large = max_exact + (
        jnp.log(jnp.maximum(n, 1).astype(jnp.float32) / max_exact)
        / math.log(max_distance / max_exact)
        * (num_buckets - max_exact)
    ).astype(jnp.int32)
    val_if_large = jnp.minimum(val_if_large, num_buckets - 1)
    bucket = jnp.where(is_small, n, val_if_large)
    values = emb_table[bucket]                      # (i, j, heads) -- tiny gather
    bias = jnp.transpose(values, (2, 0, 1)).astype(jnp.float32)
    if causal:
        row = jnp.arange(i)[:, None]
        col = jnp.arange(j)[None, :]
        mask = (col - row) >= (j - i + 1)           # torch.triu(j - i + 1); null key visible
        bias = jnp.where(mask[None], -1e30, bias)   # large finite neg (no -inf overflow)
    return bias


# --------------------------------------------------------------------------
# Forward pass
# --------------------------------------------------------------------------

def prior_network_forward(
    params,
    image_embed,
    diffusion_timesteps,
    brain_embed,
    *,
    heads,
    dim_head,
    num_tokens,
    num_time_embeds=1,
    causal=True,
    brain_cond_drop_prob=0.0,
    image_cond_drop_prob=0.0,
):
    B, T, D = image_embed.shape
    dtype = image_embed.dtype

    # prob_mask_like: deterministic paths only (p in {0, 1}); those are the ones
    # used by forward() defaults and forward_with_cond_scale().
    # TODO(synk): Bernoulli sampling for 0 < drop_prob < 1 not implemented.
    brain_keep = jnp.full((B, 1, 1), (1.0 - brain_cond_drop_prob) >= 1.0)
    image_keep = jnp.full((B, 1, 1), (1.0 - image_cond_drop_prob) >= 1.0)
    brain_embed = jnp.where(brain_keep, brain_embed,
                            params["null_brain_embeds"][None].astype(dtype))
    image_embed = jnp.where(image_keep, image_embed,
                            params["null_image_embed"][None].astype(dtype))

    # time embedding: SinusoidalPosEmb(dim) -> MLP(dim, dim * num_time_embeds)
    t = diffusion_timesteps.astype(dtype)                 # continuous_embedded_time
    pe = sinusoidal_pos_emb(t, D)                         # (B, D)
    time_embed = time_mlp(pe, params["time_mlp"]).reshape(B, num_time_embeds, D)

    # learned_query_mode == 'none' -> no learned queries appended
    tokens = jnp.concatenate([brain_embed, time_embed, image_embed], axis=1)

    # FlaggedCausalTransformer (norm_in=False -> Identity)
    x = tokens
    n = x.shape[1]
    attn_bias = build_attn_bias(params["rel_pos_emb"], n, n + 1, causal)   # (H, n, n+1)
    cos, sin, rotm = rotary_constants(n, dim_head, min(32, dim_head), jnp.float32)

    for layer in params["layers"]:
        x = attn_block(x, layer["attn"], attn_bias, cos, sin, rotm, heads, dim_head)
        x = ff_block(x, layer["ff"])

    x = final_block(x, params["final_norm_g"], params["proj_out_w"])   # stable LN + proj
    return x[:, -num_tokens:, :]


# --------------------------------------------------------------------------
# Deterministic parameter init (synthetic; matches module shapes).
# Note: wq / wkv of the torch Attention are stored pre-fused as "wqkv"
# (columns [0:H*dh] = wq, [H*dh:] = wkv) so the kernel does one projection.
# --------------------------------------------------------------------------

def init_params(key, *, dim, depth, heads, dim_head, ff_mult, num_tokens, num_time_embeds):
    keys = iter(jax.random.split(key, 128))

    def nrm(shape, scale=1.0):
        return jax.random.normal(next(keys), shape, jnp.float32) * scale

    inner = dim * ff_mult
    hidden = int(2.0 * dim * num_time_embeds)  # MLP expansion_factor=2

    params = {
        "null_brain_embeds": nrm((num_tokens, dim)),
        "null_image_embed": nrm((num_tokens, dim)),
        "time_mlp": {
            "w1": nrm((dim, hidden), dim ** -0.5),
            "b1": jnp.zeros((hidden,), jnp.float32),
            "w2": nrm((hidden, hidden), hidden ** -0.5),
            "b2": jnp.zeros((hidden,), jnp.float32),
            "w3": nrm((hidden, dim * num_time_embeds), hidden ** -0.5),
            "b3": jnp.zeros((dim * num_time_embeds,), jnp.float32),
        },
        "rel_pos_emb": nrm((32, heads), 0.02),   # Embedding(num_buckets=32, heads)
        "layers": [],
        "final_norm_g": jnp.ones((dim,), jnp.float32),
        "proj_out_w": nrm((dim, dim), dim ** -0.5),
    }
    for _ in range(depth):
        params["layers"].append(
            {
                "attn": {
                    "norm_g": jnp.ones((dim,), jnp.float32),
                    "wqkv": nrm((dim, heads * dim_head + 2 * dim_head), dim ** -0.5),
                    "null_kv": nrm((2, dim_head)),
                    "wo": nrm((heads * dim_head, dim), (heads * dim_head) ** -0.5),
                    "out_norm_g": jnp.ones((dim,), jnp.float32),
                },
                "ff": {
                    "norm_g": jnp.ones((dim,), jnp.float32),
                    "w1": nrm((dim, inner * 2), dim ** -0.5),
                    "w2": nrm((inner, dim), inner ** -0.5),
                },
            }
        )
    return params


# --------------------------------------------------------------------------
# main
# --------------------------------------------------------------------------

if __name__ == "__main__":
    # small, module-consistent shapes
    B, num_tokens, dim = 2, 8, 32
    depth, heads, dim_head, ff_mult, num_time_embeds = 2, 4, 16, 4, 1

    key = jax.random.PRNGKey(0)
    kp, ki, kb, kt = jax.random.split(key, 4)

    params = init_params(
        kp, dim=dim, depth=depth, heads=heads, dim_head=dim_head,
        ff_mult=ff_mult, num_tokens=num_tokens, num_time_embeds=num_time_embeds,
    )

    image_embed = jax.random.normal(ki, (B, num_tokens, dim), jnp.float32)
    brain_embed = jax.random.normal(kb, (B, num_tokens, dim), jnp.float32)
    diffusion_timesteps = jax.random.randint(kt, (B,), 0, 1000)

    fwd = jax.jit(functools.partial(
        prior_network_forward,
        heads=heads, dim_head=dim_head, num_tokens=num_tokens,
        num_time_embeds=num_time_embeds, causal=True,
    ))
    out = fwd(params, image_embed, diffusion_timesteps, brain_embed)
    out = jax.block_until_ready(out)

    assert out.shape == (B, num_tokens, dim), out.shape
    assert bool(jnp.all(jnp.isfinite(out)))
    print("KERNEL_OK")
</pallas_src>

<mosaic_0001>
module attributes {stable_mosaic.version = 11 : i64} {
  func.func @_time_mlp_kernel(%arg0: memref<2x32xf32, #tpu.memory_space<vmem>>, %arg1: memref<32x64xbf16, #tpu.memory_space<vmem>>, %arg2: memref<1x64xf32, #tpu.memory_space<vmem>>, %arg3: memref<64x64xbf16, #tpu.memory_space<vmem>>, %arg4: memref<1x64xf32, #tpu.memory_space<vmem>>, %arg5: memref<64x32xbf16, #tpu.memory_space<vmem>>, %arg6: memref<1x32xf32, #tpu.memory_space<vmem>>, %arg7: memref<2x32xf32, #tpu.memory_space<vmem>>) attributes {dimension_semantics = [], scalar_prefetch = 0 : i64, scratch_operands = 0 : i64, tpu.core_type = #tpu.core_type<tc>} {
    %c0 = arith.constant 0 : index
    %c0_0 = arith.constant 0 : index
    %0 = vector.load %arg0[%c0, %c0_0] : memref<2x32xf32, #tpu.memory_space<vmem>>, vector<2x32xf32>
    %1 = arith.truncf %0 : vector<2x32xf32> to vector<2x32xbf16>
    %c0_1 = arith.constant 0 : index
    %c0_2 = arith.constant 0 : index
    %2 = vector.load %arg1[%c0_1, %c0_2] : memref<32x64xbf16, #tpu.memory_space<vmem>>, vector<32x64xbf16>
    %cst = arith.constant dense<0.000000e+00> : vector<2x64xf32>
    %3 = tpu.matmul %1, %2, %cst {dimension_numbers = #tpu.dot_dimension_numbers<[1], [0], [0], [1], [0, 0, 1, 1], [], []>} : vector<2x32xbf16>, vector<32x64xbf16>, vector<2x64xf32> -> vector<2x64xf32>
    %c0_3 = arith.constant 0 : index
    %c0_4 = arith.constant 0 : index
    %4 = vector.load %arg2[%c0_3, %c0_4] : memref<1x64xf32, #tpu.memory_space<vmem>>, vector<1x64xf32>
    %5 = vector.broadcast %4 : vector<1x64xf32> to vector<2x64xf32>
    %6 = arith.addf %3, %5 : vector<2x64xf32>
    %7 = arith.negf %6 : vector<2x64xf32>
    %8 = math.exp %7 : vector<2x64xf32>
    %cst_5 = arith.constant 1.000000e+00 : f32
    %9 = vector.broadcast %cst_5 : f32 to vector<2x64xf32>
    %10 = arith.addf %9, %8 : vector<2x64xf32>
    %11 = arith.divf %9, %10 : vector<2x64xf32>
    %12 = arith.mulf %6, %11 : vector<2x64xf32>
    %13 = arith.truncf %12 : vector<2x64xf32> to vector<2x64xbf16>
    %c0_6 = arith.constant 0 : index
    %c0_7 = arith.constant 0 : index
    %14 = vector.load %arg3[%c0_6, %c0_7] : memref<64x64xbf16, #tpu.memory_space<vmem>>, vector<64x64xbf16>
    %cst_8 = arith.constant dense<0.000000e+00> : vector<2x64xf32>
    %15 = tpu.matmul %13, %14, %cst_8 {dimension_numbers = #tpu.dot_dimension_numbers<[1], [0], [0], [1], [0, 0, 1, 1], [], []>} : vector<2x64xbf16>, vector<64x64xbf16>, vector<2x64xf32> -> vector<2x64xf32>
    %c0_9 = arith.constant 0 : index
    %c0_10 = arith.constant 0 : index
    %16 = vector.load %arg4[%c0_9, %c0_10] : memref<1x64xf32, #tpu.memory_space<vmem>>, vector<1x64xf32>
    %17 = vector.broadcast %16 : vector<1x64xf32> to vector<2x64xf32>
    %18 = arith.addf %15, %17 : vector<2x64xf32>
    %19 = arith.negf %18 : vector<2x64xf32>
    %20 = math.exp %19 : vector<2x64xf32>
    %cst_11 = arith.constant 1.000000e+00 : f32
    %21 = vector.broadcast %cst_11 : f32 to vector<2x64xf32>
    %22 = arith.addf %21, %20 : vector<2x64xf32>
    %23 = arith.divf %21, %22 : vector<2x64xf32>
    %24 = arith.mulf %18, %23 : vector<2x64xf32>
    %25 = arith.truncf %24 : vector<2x64xf32> to vector<2x64xbf16>
    %c0_12 = arith.constant 0 : index
    %c0_13 = arith.constant 0 : index
    %26 = vector.load %arg5[%c0_12, %c0_13] : memref<64x32xbf16, #tpu.memory_space<vmem>>, vector<64x32xbf16>
    %cst_14 = arith.constant dense<0.000000e+00> : vector<2x32xf32>
    %27 = tpu.matmul %25, %26, %cst_14 {dimension_numbers = #tpu.dot_dimension_numbers<[1], [0], [0], [1], [0, 0, 1, 1], [], []>} : vector<2x64xbf16>, vector<64x32xbf16>, vector<2x32xf32> -> vector<2x32xf32>
    %c0_15 = arith.constant 0 : index
    %c0_16 = arith.constant 0 : index
    %28 = vector.load %arg6[%c0_15, %c0_16] : memref<1x32xf32, #tpu.memory_space<vmem>>, vector<1x32xf32>
    %29 = vector.broadcast %28 : vector<1x32xf32> to vector<2x32xf32>
    %30 = arith.addf %27, %29 : vector<2x32xf32>
    %c0_17 = arith.constant 0 : index
    %c0_18 = arith.constant 0 : index
    %31 = vector.load %arg7[%c0_17, %c0_18] : memref<2x32xf32, #tpu.memory_space<vmem>>, vector<2x32xf32>
    tpu.vector_store %arg7[%c0_17, %c0_18], %30 {strides = array<i32>} : memref<2x32xf32, #tpu.memory_space<vmem>>, vector<2x32xf32>,
    return
  }
}

module attributes {stable_mosaic.version = 11 : i64} {
  func.func @_attn_block_kernel(%arg0: i32, %arg1: memref<1x17x32xf32, #tpu.memory_space<vmem>>, %arg2: memref<1x32xf32, #tpu.memory_space<vmem>>, %arg3: memref<32x96xbf16, #tpu.memory_space<vmem>>, %arg4: memref<17x16xf32, #tpu.memory_space<vmem>>, %arg5: memref<17x16xf32, #tpu.memory_space<vmem>>, %arg6: memref<16x16xf32, #tpu.memory_space<vmem>>, %arg7: memref<2x16xf32, #tpu.memory_space<vmem>>, %arg8: memref<4x17x18xf32, #tpu.memory_space<vmem>>, %arg9: memref<64x32xbf16, #tpu.memory_space<vmem>>, %arg10: memref<1x32xf32, #tpu.memory_space<vmem>>, %arg11: memref<1x17x32xf32, #tpu.memory_space<vmem>>) attributes {dimension_semantics = [#tpu.dimension_semantics<parallel>], iteration_bounds = array<i64: 2>, scalar_prefetch = 0 : i64, scratch_operands = 0 : i64, tpu.core_type = #tpu.core_type<tc>, window_params = [{transform_indices = @transform_0, window_bounds = array<i64: 1, 17, 32>}, {pipeline_mode = #tpu.pipeline_mode<synchronous>, transform_indices = @transform_1, window_bounds = array<i64: 1, 32>}, {pipeline_mode = #tpu.pipeline_mode<synchronous>, transform_indices = @transform_2, window_bounds = array<i64: 32, 96>}, {pipeline_mode = #tpu.pipeline_mode<synchronous>, transform_indices = @transform_3, window_bounds = array<i64: 17, 16>}, {pipeline_mode = #tpu.pipeline_mode<synchronous>, transform_indices = @transform_4, window_bounds = array<i64: 17, 16>}, {pipeline_mode = #tpu.pipeline_mode<synchronous>, transform_indices = @transform_5, window_bounds = array<i64: 16, 16>}, {pipeline_mode = #tpu.pipeline_mode<synchronous>, transform_indices = @transform_6, window_bounds = array<i64: 2, 16>}, {pipeline_mode = #tpu.pipeline_mode<synchronous>, transform_indices = @transform_7, window_bounds = array<i64: 4, 17, 18>}, {pipeline_mode = #tpu.pipeline_mode<synchronous>, transform_indices = @transform_8, window_bounds = array<i64: 64, 32>}, {pipeline_mode = #tpu.pipeline_mode<synchronous>, transform_indices = @transform_9, window_bounds = array<i64: 1, 32>}, {transform_indices = @transform_10, window_bounds = array<i64: 1, 17, 32>}]} {
    %c0 = arith.constant 0 : index
    %c0_0 = arith.constant 0 : index
    %c0_1 = arith.constant 0 : index
    %0 = vector.load %arg1[%c0, %c0_0, %c0_1] : memref<1x17x32xf32, #tpu.memory_space<vmem>>, vector<1x17x32xf32>
    %1 = vector.shape_cast %0 : vector<1x17x32xf32> to vector<17x32xf32>
    %c0_2 = arith.constant 0 : index
    %c0_3 = arith.constant 0 : index
    %2 = vector.load %arg2[%c0_2, %c0_3] : memref<1x32xf32, #tpu.memory_space<vmem>>, vector<1x32xf32>
    %cst = arith.constant dense<0.000000e+00> : vector<17xf32>
    %3 = vector.multi_reduction <add>, %1, %cst [1] : vector<17x32xf32> to vector<17xf32>
    %4 = vector.shape_cast %3 : vector<17xf32> to vector<17x1xf32>
    %cst_4 = arith.constant 3.200000e+01 : f32
    %5 = vector.broadcast %cst_4 : f32 to vector<17x1xf32>
    %6 = arith.divf %4, %5 : vector<17x1xf32>
    %7 = vector.broadcast %6 : vector<17x1xf32> to vector<17x32xf32>
    %8 = arith.subf %1, %7 : vector<17x32xf32>
    %9 = arith.mulf %8, %8 : vector<17x32xf32>
    %cst_5 = arith.constant dense<0.000000e+00> : vector<17xf32>
    %10 = vector.multi_reduction <add>, %9, %cst_5 [1] : vector<17x32xf32> to vector<17xf32>
    %11 = vector.shape_cast %10 : vector<17xf32> to vector<17x1xf32>
    %cst_6 = arith.constant 3.200000e+01 : f32
    %12 = vector.broadcast %cst_6 : f32 to vector<17x1xf32>
    %13 = arith.divf %11, %12 : vector<17x1xf32>
    %14 = vector.broadcast %6 : vector<17x1xf32> to vector<17x32xf32>
    %15 = arith.subf %1, %14 : vector<17x32xf32>
    %cst_7 = arith.constant 9.99999974E-6 : f32
    %16 = vector.broadcast %cst_7 : f32 to vector<17x1xf32>
    %17 = arith.addf %13, %16 : vector<17x1xf32>
    %18 = math.rsqrt %17 : vector<17x1xf32>
    %19 = vector.broadcast %18 : vector<17x1xf32> to vector<17x32xf32>
    %20 = arith.mulf %15, %19 : vector<17x32xf32>
    %21 = vector.broadcast %2 : vector<1x32xf32> to vector<17x32xf32>
    %22 = arith.mulf %20, %21 : vector<17x32xf32>
    %23 = arith.truncf %22 : vector<17x32xf32> to vector<17x32xbf16>
    %c0_8 = arith.constant 0 : index
    %c0_9 = arith.constant 0 : index
    %24 = vector.load %arg3[%c0_8, %c0_9] : memref<32x96xbf16, #tpu.memory_space<vmem>>, vector<32x96xbf16>
    %cst_10 = arith.constant dense<0.000000e+00> : vector<17x96xf32>
    %25 = tpu.matmul %23, %24, %cst_10 {dimension_numbers = #tpu.dot_dimension_numbers<[1], [0], [0], [1], [0, 0, 1, 1], [], []>} : vector<17x32xbf16>, vector<32x96xbf16>, vector<17x96xf32> -> vector<17x96xf32>
    %26 = vector.extract_strided_slice %25 {offsets = [0, 64], sizes = [17, 16], strides = [1, 1]} : vector<17x96xf32> to vector<17x16xf32>
    %27 = vector.extract_strided_slice %25 {offsets = [0, 80], sizes = [17, 16], strides = [1, 1]} : vector<17x96xf32> to vector<17x16xf32>
    %c0_11 = arith.constant 0 : index
    %c0_12 = arith.constant 0 : index
    %28 = vector.load %arg4[%c0_11, %c0_12] : memref<17x16xf32, #tpu.memory_space<vmem>>, vector<17x16xf32>
    %c0_13 = arith.constant 0 : index
    %c0_14 = arith.constant 0 : index
    %29 = vector.load %arg5[%c0_13, %c0_14] : memref<17x16xf32, #tpu.memory_space<vmem>>, vector<17x16xf32>
    %c0_15 = arith.constant 0 : index
    %c0_16 = arith.constant 0 : index
    %30 = vector.load %arg6[%c0_15, %c0_16] : memref<16x16xf32, #tpu.memory_space<vmem>>, vector<16x16xf32>
    %31 = arith.mulf %26, %28 : vector<17x16xf32>
    %cst_17 = arith.constant dense<0.000000e+00> : vector<17x16xf32>
    %32 = tpu.matmul %26, %30, %cst_17 {dimension_numbers = #tpu.dot_dimension_numbers<[1], [0], [0], [1], [0, 0, 1, 1], [], []>} : vector<17x16xf32>, vector<16x16xf32>, vector<17x16xf32> -> vector<17x16xf32>
    %33 = arith.mulf %32, %29 : vector<17x16xf32>
    %34 = arith.addf %31, %33 : vector<17x16xf32>
    %c0_18 = arith.constant 0 : index
    %c0_19 = arith.constant 0 : index
    %35 = vector.load %arg7[%c0_18, %c0_19] : memref<2x16xf32, #tpu.memory_space<vmem>>, vector<1x16xf32>
    %c1 = arith.constant 1 : index
    %c0_20 = arith.constant 0 : index
    %36 = vector.load %arg7[%c1, %c0_20] : memref<2x16xf32, #tpu.memory_space<vmem>>, vector<1x16xf32>
    %37 = tpu.concatenate %35, %34 in 0 : vector<1x16xf32>, vector<17x16xf32> -> vector<18x16xf32>
    %38 = tpu.concatenate %36, %27 in 0 : vector<1x16xf32>, vector<17x16xf32> -> vector<18x16xf32>
    %39 = arith.mulf %37, %37 : vector<18x16xf32>
    %cst_21 = arith.constant dense<0.000000e+00> : vector<18xf32>
    %40 = vector.multi_reduction <add>, %39, %cst_21 [1] : vector<18x16xf32> to vector<18xf32>
    %41 = vector.shape_cast %40 : vector<18xf32> to vector<18x1xf32>
    %42 = math.sqrt %41 : vector<18x1xf32>
    %cst_22 = arith.constant 9.99999996E-13 : f32
    %43 = vector.broadcast %cst_22 : f32 to vector<18x1xf32>
    %44 = arith.maximumf %42, %43 : vector<18x1xf32>
    %45 = vector.broadcast %44 : vector<18x1xf32> to vector<18x16xf32>
    %46 = arith.divf %37, %45 : vector<18x16xf32>
    %47 = arith.truncf %46 : vector<18x16xf32> to vector<18x16xbf16>
    %48 = arith.truncf %38 : vector<18x16xf32> to vector<18x16xbf16>
    %c0_23 = arith.constant 0 : index
    %c0_24 = arith.constant 0 : index
    %c0_25 = arith.constant 0 : index
    %49 = vector.load %arg8[%c0_23, %c0_24, %c0_25] : memref<4x17x18xf32, #tpu.memory_space<vmem>>, vector<4x17x18xf32>
    %c0_26 = arith.constant 0 : index
    %c0_27 = arith.constant 0 : index
    %50 = vector.load %arg9[%c0_26, %c0_27] : memref<64x32xbf16, #tpu.memory_space<vmem>>, vector<64x32xbf16>
    %cst_28 = arith.constant 0.000000e+00 : f32
    %51 = vector.broadcast %cst_28 : f32 to vector<17x32xf32>
    %52 = vector.extract_strided_slice %25 {offsets = [0, 0], sizes = [17, 16], strides = [1, 1]} : vector<17x96xf32> to vector<17x16xf32>
    %53 = arith.mulf %52, %28 : vector<17x16xf32>
    %cst_29 = arith.constant dense<0.000000e+00> : vector<17x16xf32>
    %54 = tpu.matmul %52, %30, %cst_29 {dimension_numbers = #tpu.dot_dimension_numbers<[1], [0], [0], [1], [0, 0, 1, 1], [], []>} : vector<17x16xf32>, vector<16x16xf32>, vector<17x16xf32> -> vector<17x16xf32>
    %55 = arith.mulf %54, %29 : vector<17x16xf32>
    %56 = arith.addf %53, %55 : vector<17x16xf32>
    %57 = arith.mulf %56, %56 : vector<17x16xf32>
    %cst_30 = arith.constant dense<0.000000e+00> : vector<17xf32>
    %58 = vector.multi_reduction <add>, %57, %cst_30 [1] : vector<17x16xf32> to vector<17xf32>
    %59 = vector.shape_cast %58 : vector<17xf32> to vector<17x1xf32>
    %60 = math.sqrt %59 : vector<17x1xf32>
    %cst_31 = arith.constant 9.99999996E-13 : f32
    %61 = vector.broadcast %cst_31 : f32 to vector<17x1xf32>
    %62 = arith.maximumf %60, %61 : vector<17x1xf32>
    %63 = vector.broadcast %62 : vector<17x1xf32> to vector<17x16xf32>
    %64 = arith.divf %56, %63 : vector<17x16xf32>
    %cst_32 = arith.constant 1.600000e+01 : f32
    %65 = vector.broadcast %cst_32 : f32 to vector<17x16xf32>
    %66 = arith.mulf %64, %65 : vector<17x16xf32>
    %67 = arith.truncf %66 : vector<17x16xf32> to vector<17x16xbf16>
    %cst_33 = arith.constant dense<0.000000e+00> : vector<17x18xf32>
    %68 = tpu.matmul %67, %47, %cst_33 {dimension_numbers = #tpu.dot_dimension_numbers<[1], [1], [0], [0], [0, 0, 1, 0], [], []>} : vector<17x16xbf16>, vector<18x16xbf16>, vector<17x18xf32> -> vector<17x18xf32>
    %69 = vector.extract_strided_slice %49 {offsets = [0, 0, 0], sizes = [1, 17, 18], strides = [1, 1, 1]} : vector<4x17x18xf32> to vector<1x17x18xf32>
    %70 = vector.shape_cast %69 : vector<1x17x18xf32> to vector<17x18xf32>
    %71 = arith.addf %68, %70 : vector<17x18xf32>
    %cst_34 = arith.constant dense<0xFF800000> : vector<17xf32>
    %72 = vector.multi_reduction <maximumf>, %71, %cst_34 [1] : vector<17x18xf32> to vector<17xf32>
    %73 = vector.shape_cast %72 : vector<17xf32> to vector<17x1xf32>
    %74 = vector.broadcast %73 : vector<17x1xf32> to vector<17x18xf32>
    %75 = arith.subf %71, %74 : vector<17x18xf32>
    %76 = math.exp %75 : vector<17x18xf32>
    %cst_35 = arith.constant dense<0.000000e+00> : vector<17xf32>
    %77 = vector.multi_reduction <add>, %76, %cst_35 [1] : vector<17x18xf32> to vector<17xf32>
    %78 = vector.shape_cast %77 : vector<17xf32> to vector<17x1xf32>
    %79 = vector.broadcast %78 : vector<17x1xf32> to vector<17x18xf32>
    %80 = arith.divf %76, %79 : vector<17x18xf32>
    %81 = arith.truncf %80 : vector<17x18xf32> to vector<17x18xbf16>
    %cst_36 = arith.constant dense<0.000000e+00> : vector<17x16xf32>
    %82 = tpu.matmul %81, %48, %cst_36 {dimension_numbers = #tpu.dot_dimension_numbers<[1], [0], [0], [1], [0, 0, 1, 1], [], []>} : vector<17x18xbf16>, vector<18x16xbf16>, vector<17x16xf32> -> vector<17x16xf32>
    %83 = vector.extract_strided_slice %50 {offsets = [0, 0], sizes = [16, 32], strides = [1, 1]} : vector<64x32xbf16> to vector<16x32xbf16>
    %84 = arith.truncf %82 : vector<17x16xf32> to vector<17x16xbf16>
    %cst_37 = arith.constant dense<0.000000e+00> : vector<17x32xf32>
    %85 = tpu.matmul %84, %83, %cst_37 {dimension_numbers = #tpu.dot_dimension_numbers<[1], [0], [0], [1], [0, 0, 1, 1], [], []>} : vector<17x16xbf16>, vector<16x32xbf16>, vector<17x32xf32> -> vector<17x32xf32>
    %86 = arith.addf %51, %85 : vector<17x32xf32>
    %87 = vector.extract_strided_slice %25 {offsets = [0, 16], sizes = [17, 16], strides = [1, 1]} : vector<17x96xf32> to vector<17x16xf32>
    %88 = arith.mulf %87, %28 : vector<17x16xf32>
    %cst_38 = arith.constant dense<0.000000e+00> : vector<17x16xf32>
    %89 = tpu.matmul %87, %30, %cst_38 {dimension_numbers = #tpu.dot_dimension_numbers<[1], [0], [0], [1], [0, 0, 1, 1], [], []>} : vector<17x16xf32>, vector<16x16xf32>, vector<17x16xf32> -> vector<17x16xf32>
    %90 = arith.mulf %89, %29 : vector<17x16xf32>
    %91 = arith.addf %88, %90 : vector<17x16xf32>
    %92 = arith.mulf %91, %91 : vector<17x16xf32>
    %cst_39 = arith.constant dense<0.000000e+00> : vector<17xf32>
    %93 = vector.multi_reduction <add>, %92, %cst_39 [1] : vector<17x16xf32> to vector<17xf32>
    %94 = vector.shape_cast %93 : vector<17xf32> to vector<17x1xf32>
    %95 = math.sqrt %94 : vector<17x1xf32>
    %cst_40 = arith.constant 9.99999996E-13 : f32
    %96 = vector.broadcast %cst_40 : f32 to vector<17x1xf32>
    %97 = arith.maximumf %95, %96 : vector<17x1xf32>
    %98 = vector.broadcast %97 : vector<17x1xf32> to vector<17x16xf32>
    %99 = arith.divf %91, %98 : vector<17x16xf32>
    %cst_41 = arith.constant 1.600000e+01 : f32
    %100 = vector.broadcast %cst_41 : f32 to vector<17x16xf32>
    %101 = arith.mulf %99, %100 : vector<17x16xf32>
    %102 = arith.truncf %101 : vector<17x16xf32> to vector<17x16xbf16>
    %cst_42 = arith.constant dense<0.000000e+00> : vector<17x18xf32>
    %103 = tpu.matmul %102, %47, %cst_42 {dimension_numbers = #tpu.dot_dimension_numbers<[1], [1], [0], [0], [0, 0, 1, 0], [], []>} : vector<17x16xbf16>, vector<18x16xbf16>, vector<17x18xf32> -> vector<17x18xf32>
    %104 = vector.extract_strided_slice %49 {offsets = [1, 0, 0], sizes = [1, 17, 18], strides = [1, 1, 1]} : vector<4x17x18xf32> to vector<1x17x18xf32>
    %105 = vector.shape_cast %104 : vector<1x17x18xf32> to vector<17x18xf32>
    %106 = arith.addf %103, %105 : vector<17x18xf32>
    %cst_43 = arith.constant dense<0xFF800000> : vector<17xf32>
    %107 = vector.multi_reduction <maximumf>, %106, %cst_43 [1] : vector<17x18xf32> to vector<17xf32>
    %108 = vector.shape_cast %107 : vector<17xf32> to vector<17x1xf32>
    %109 = vector.broadcast %108 : vector<17x1xf32> to vector<17x18xf32>
    %110 = arith.subf %106, %109 : vector<17x18xf32>
    %111 = math.exp %110 : vector<17x18xf32>
    %cst_44 = arith.constant dense<0.000000e+00> : vector<17xf32>
    %112 = vector.multi_reduction <add>, %111, %cst_44 [1] : vector<17x18xf32> to vector<17xf32>
    %113 = vector.shape_cast %112 : vector<17xf32> to vector<17x1xf32>
    %114 = vector.broadcast %113 : vector<17x1xf32> to vector<17x18xf32>
    %115 = arith.divf %111, %114 : vector<17x18xf32>
    %116 = arith.truncf %115 : vector<17x18xf32> to vector<17x18xbf16>
    %cst_45 = arith.constant dense<0.000000e+00> : vector<17x16xf32>
    %117 = tpu.matmul %116, %48, %cst_45 {dimension_numbers = #tpu.dot_dimension_numbers<[1], [0], [0], [1], [0, 0, 1, 1], [], []>} : vector<17x18xbf16>, vector<18x16xbf16>, vector<17x16xf32> -> vector<17x16xf32>
    %118 = vector.extract_strided_slice %50 {offsets = [16, 0], sizes = [16, 32], strides = [1, 1]} : vector<64x32xbf16> to vector<16x32xbf16>
    %119 = arith.truncf %117 : vector<17x16xf32> to vector<17x16xbf16>
    %cst_46 = arith.constant dense<0.000000e+00> : vector<17x32xf32>
    %120 = tpu.matmul %119, %118, %cst_46 {dimension_numbers = #tpu.dot_dimension_numbers<[1], [0], [0], [1], [0, 0, 1, 1], [], []>} : vector<17x16xbf16>, vector<16x32xbf16>, vector<17x32xf32> -> vector<17x32xf32>
    %121 = arith.addf %86, %120 : vector<17x32xf32>
    %122 = vector.extract_strided_slice %25 {offsets = [0, 32], sizes = [17, 16], strides = [1, 1]} : vector<17x96xf32> to vector<17x16xf32>
    %123 = arith.mulf %122, %28 : vector<17x16xf32>
    %cst_47 = arith.constant dense<0.000000e+00> : vector<17x16xf32>
    %124 = tpu.matmul %122, %30, %cst_47 {dimension_numbers = #tpu.dot_dimension_numbers<[1], [0], [0], [1], [0, 0, 1, 1], [], []>} : vector<17x16xf32>, vector<16x16xf32>, vector<17x16xf32> -> vector<17x16xf32>
    %125 = arith.mulf %124, %29 : vector<17x16xf32>
    %126 = arith.addf %123, %125 : vector<17x16xf32>
    %127 = arith.mulf %126, %126 : vector<17x16xf32>
    %cst_48 = arith.constant dense<0.000000e+00> : vector<17xf32>
    %128 = vector.multi_reduction <add>, %127, %cst_48 [1] : vector<17x16xf32> to vector<17xf32>
    %129 = vector.shape_cast %128 : vector<17xf32> to vector<17x1xf32>
    %130 = math.sqrt %129 : vector<17x1xf32>
    %cst_49 = arith.constant 9.99999996E-13 : f32
    %131 = vector.broadcast %cst_49 : f32 to vector<17x1xf32>
    %132 = arith.maximumf %130, %131 : vector<17x1xf32>
    %133 = vector.broadcast %132 : vector<17x1xf32> to vector<17x16xf32>
    %134 = arith.divf %126, %133 : vector<17x16xf32>
    %cst_50 = arith.constant 1.600000e+01 : f32
    %135 = vector.broadcast %cst_50 : f32 to vector<17x16xf32>
    %136 = arith.mulf %134, %135 : vector<17x16xf32>
    %137 = arith.truncf %136 : vector<17x16xf32> to vector<17x16xbf16>
    %cst_51 = arith.constant dense<0.000000e+00> : vector<17x18xf32>
    %138 = tpu.matmul %137, %47, %cst_51 {dimension_numbers = #tpu.dot_dimension_numbers<[1], [1], [0], [0], [0, 0, 1, 0], [], []>} : vector<17x16xbf16>, vector<18x16xbf16>, vector<17x18xf32> -> vector<17x18xf32>
    %139 = vector.extract_strided_slice %49 {offsets = [2, 0, 0], sizes = [1, 17, 18], strides = [1, 1, 1]} : vector<4x17x18xf32> to vector<1x17x18xf32>
    %140 = vector.shape_cast %139 : vector<1x17x18xf32> to vector<17x18xf32>
    %141 = arith.addf %138, %140 : vector<17x18xf32>
    %cst_52 = arith.constant dense<0xFF800000> : vector<17xf32>
    %142 = vector.multi_reduction <maximumf>, %141, %cst_52 [1] : vector<17x18xf32> to vector<17xf32>
    %143 = vector.shape_cast %142 : vector<17xf32> to vector<17x1xf32>
    %144 = vector.broadcast %143 : vector<17x1xf32> to vector<17x18xf32>
    %145 = arith.subf %141, %144 : vector<17x18xf32>
    %146 = math.exp %145 : vector<17x18xf32>
    %cst_53 = arith.constant dense<0.000000e+00> : vector<17xf32>
    %147 = vector.multi_reduction <add>, %146, %cst_53 [1] : vector<17x18xf32> to vector<17xf32>
    %148 = vector.shape_cast %147 : vector<17xf32> to vector<17x1xf32>
    %149 = vector.broadcast %148 : vector<17x1xf32> to vector<17x18xf32>
    %150 = arith.divf %146, %149 : vector<17x18xf32>
    %151 = arith.truncf %150 : vector<17x18xf32> to vector<17x18xbf16>
    %cst_54 = arith.constant dense<0.000000e+00> : vector<17x16xf32>
    %152 = tpu.matmul %151, %48, %cst_54 {dimension_numbers = #tpu.dot_dimension_numbers<[1], [0], [0], [1], [0, 0, 1, 1], [], []>} : vector<17x18xbf16>, vector<18x16xbf16>, vector<17x16xf32> -> vector<17x16xf32>
    %153 = vector.extract_strided_slice %50 {offsets = [32, 0], sizes = [16, 32], strides = [1, 1]} : vector<64x32xbf16> to vector<16x32xbf16>
    %154 = arith.truncf %152 : vector<17x16xf32> to vector<17x16xbf16>
    %cst_55 = arith.constant dense<0.000000e+00> : vector<17x32xf32>
    %155 = tpu.matmul %154, %153, %cst_55 {dimension_numbers = #tpu.dot_dimension_numbers<[1], [0], [0], [1], [0, 0, 1, 1], [], []>} : vector<17x16xbf16>, vector<16x32xbf16>, vector<17x32xf32> -> vector<17x32xf32>
    %156 = arith.addf %121, %155 : vector<17x32xf32>
    %157 = vector.extract_strided_slice %25 {offsets = [0, 48], sizes = [17, 16], strides = [1, 1]} : vector<17x96xf32> to vector<17x16xf32>
    %158 = arith.mulf %157, %28 : vector<17x16xf32>
    %cst_56 = arith.constant dense<0.000000e+00> : vector<17x16xf32>
    %159 = tpu.matmul %157, %30, %cst_56 {dimension_numbers = #tpu.dot_dimension_numbers<[1], [0], [0], [1], [0, 0, 1, 1], [], []>} : vector<17x16xf32>, vector<16x16xf32>, vector<17x16xf32> -> vector<17x16xf32>
    %160 = arith.mulf %159, %29 : vector<17x16xf32>
    %161 = arith.addf %158, %160 : vector<17x16xf32>
    %162 = arith.mulf %161, %161 : vector<17x16xf32>
    %cst_57 = arith.constant dense<0.000000e+00> : vector<17xf32>
    %163 = vector.multi_reduction <add>, %162, %cst_57 [1] : vector<17x16xf32> to vector<17xf32>
    %164 = vector.shape_cast %163 : vector<17xf32> to vector<17x1xf32>
    %165 = math.sqrt %164 : vector<17x1xf32>
    %cst_58 = arith.constant 9.99999996E-13 : f32
    %166 = vector.broadcast %cst_58 : f32 to vector<17x1xf32>
    %167 = arith.maximumf %165, %166 : vector<17x1xf32>
    %168 = vector.broadcast %167 : vector<17x1xf32> to vector<17x16xf32>
    %169 = arith.divf %161, %168 : vector<17x16xf32>
    %cst_59 = arith.constant 1.600000e+01 : f32
    %170 = vector.broadcast %cst_59 : f32 to vector<17x16xf32>
    %171 = arith.mulf %169, %170 : vector<17x16xf32>
    %172 = arith.truncf %171 : vector<17x16xf32> to vector<17x16xbf16>
    %cst_60 = arith.constant dense<0.000000e+00> : vector<17x18xf32>
    %173 = tpu.matmul %172, %47, %cst_60 {dimension_numbers = #tpu.dot_dimension_numbers<[1], [1], [0], [0], [0, 0, 1, 0], [], []>} : vector<17x16xbf16>, vector<18x16xbf16>, vector<17x18xf32> -> vector<17x18xf32>
    %174 = vector.extract_strided_slice %49 {offsets = [3, 0, 0], sizes = [1, 17, 18], strides = [1, 1, 1]} : vector<4x17x18xf32> to vector<1x17x18xf32>
    %175 = vector.shape_cast %174 : vector<1x17x18xf32> to vector<17x18xf32>
    %176 = arith.addf %173, %175 : vector<17x18xf32>
    %cst_61 = arith.constant dense<0xFF800000> : vector<17xf32>
    %177 = vector.multi_reduction <maximumf>, %176, %cst_61 [1] : vector<17x18xf32> to vector<17xf32>
    %178 = vector.shape_cast %177 : vector<17xf32> to vector<17x1xf32>
    %179 = vector.broadcast %178 : vector<17x1xf32> to vector<17x18xf32>
    %180 = arith.subf %176, %179 : vector<17x18xf32>
    %181 = math.exp %180 : vector<17x18xf32>
    %cst_62 = arith.constant dense<0.000000e+00> : vector<17xf32>
    %182 = vector.multi_reduction <add>, %181, %cst_62 [1] : vector<17x18xf32> to vector<17xf32>
    %183 = vector.shape_cast %182 : vector<17xf32> to vector<17x1xf32>
    %184 = vector.broadcast %183 : vector<17x1xf32> to vector<17x18xf32>
    %185 = arith.divf %181, %184 : vector<17x18xf32>
    %186 = arith.truncf %185 : vector<17x18xf32> to vector<17x18xbf16>
    %cst_63 = arith.constant dense<0.000000e+00> : vector<17x16xf32>
    %187 = tpu.matmul %186, %48, %cst_63 {dimension_numbers = #tpu.dot_dimension_numbers<[1], [0], [0], [1], [0, 0, 1, 1], [], []>} : vector<17x18xbf16>, vector<18x16xbf16>, vector<17x16xf32> -> vector<17x16xf32>
    %188 = vector.extract_strided_slice %50 {offsets = [48, 0], sizes = [16, 32], strides = [1, 1]} : vector<64x32xbf16> to vector<16x32xbf16>
    %189 = arith.truncf %187 : vector<17x16xf32> to vector<17x16xbf16>
    %cst_64 = arith.constant dense<0.000000e+00> : vector<17x32xf32>
    %190 = tpu.matmul %189, %188, %cst_64 {dimension_numbers = #tpu.dot_dimension_numbers<[1], [0], [0], [1], [0, 0, 1, 1], [], []>} : vector<17x16xbf16>, vector<16x32xbf16>, vector<17x32xf32> -> vector<17x32xf32>
    %191 = arith.addf %156, %190 : vector<17x32xf32>
    %c0_65 = arith.constant 0 : index
    %c0_66 = arith.constant 0 : index
    %192 = vector.load %arg10[%c0_65, %c0_66] : memref<1x32xf32, #tpu.memory_space<vmem>>, vector<1x32xf32>
    %cst_67 = arith.constant dense<0.000000e+00> : vector<17xf32>
    %193 = vector.multi_reduction <add>, %191, %cst_67 [1] : vector<17x32xf32> to vector<17xf32>
    %194 = vector.shape_cast %193 : vector<17xf32> to vector<17x1xf32>
    %cst_68 = arith.constant 3.200000e+01 : f32
    %195 = vector.broadcast %cst_68 : f32 to vector<17x1xf32>
    %196 = arith.divf %194, %195 : vector<17x1xf32>
    %197 = vector.broadcast %196 : vector<17x1xf32> to vector<17x32xf32>
    %198 = arith.subf %191, %197 : vector<17x32xf32>
    %199 = arith.mulf %198, %198 : vector<17x32xf32>
    %cst_69 = arith.constant dense<0.000000e+00> : vector<17xf32>
    %200 = vector.multi_reduction <add>, %199, %cst_69 [1] : vector<17x32xf32> to vector<17xf32>
    %201 = vector.shape_cast %200 : vector<17xf32> to vector<17x1xf32>
    %cst_70 = arith.constant 3.200000e+01 : f32
    %202 = vector.broadcast %cst_70 : f32 to vector<17x1xf32>
    %203 = arith.divf %201, %202 : vector<17x1xf32>
    %204 = vector.broadcast %196 : vector<17x1xf32> to vector<17x32xf32>
    %205 = arith.subf %191, %204 : vector<17x32xf32>
    %cst_71 = arith.constant 9.99999974E-6 : f32
    %206 = vector.broadcast %cst_71 : f32 to vector<17x1xf32>
    %207 = arith.addf %203, %206 : vector<17x1xf32>
    %208 = math.rsqrt %207 : vector<17x1xf32>
    %209 = vector.broadcast %208 : vector<17x1xf32> to vector<17x32xf32>
    %210 = arith.mulf %205, %209 : vector<17x32xf32>
    %211 = vector.broadcast %192 : vector<1x32xf32> to vector<17x32xf32>
    %212 = arith.mulf %210, %211 : vector<17x32xf32>
    %213 = arith.addf %212, %1 : vector<17x32xf32>
    %c0_72 = arith.constant 0 : index
    %c0_73 = arith.constant 0 : index
    %c0_74 = arith.constant 0 : index
    %214 = vector.load %arg11[%c0_72, %c0_73, %c0_74] : memref<1x17x32xf32, #tpu.memory_space<vmem>>, vector<1x17x32xf32>
    %215 = vector.shape_cast %214 : vector<1x17x32xf32> to vector<17x32xf32>
    %216 = vector.shape_cast %213 : vector<17x32xf32> to vector<1x17x32xf32>
    tpu.vector_store %arg11[%c0_72, %c0_73, %c0_74], %216 {strides = array<i32>} : memref<1x17x32xf32, #tpu.memory_space<vmem>>, vector<1x17x32xf32>,
    return
  }
  func.func @transform_0(%arg0: i32) -> (i32, i32, i32) {
    %c0_i32 = arith.constant 0 : i32
    %c0_i32_0 = arith.constant 0 : i32
    %c0_i32_1 = arith.constant 0 : i32
    return %arg0, %c0_i32, %c0_i32_0 : i32, i32, i32
  }
  func.func @transform_1(%arg0: i32) -> (i32, i32) {
    %c0_i32 = arith.constant 0 : i32
    %c0_i32_0 = arith.constant 0 : i32
    %c0_i32_1 = arith.constant 0 : i32
    return %c0_i32, %c0_i32_0 : i32, i32
  }
  func.func @transform_2(%arg0: i32) -> (i32, i32) {
    %c0_i32 = arith.constant 0 : i32
    %c0_i32_0 = arith.constant 0 : i32
    %c0_i32_1 = arith.constant 0 : i32
    return %c0_i32, %c0_i32_0 : i32, i32
  }
  func.func @transform_3(%arg0: i32) -> (i32, i32) {
    %c0_i32 = arith.constant 0 : i32
    %c0_i32_0 = arith.constant 0 : i32
    %c0_i32_1 = arith.constant 0 : i32
    return %c0_i32, %c0_i32_0 : i32, i32
  }
  func.func @transform_4(%arg0: i32) -> (i32, i32) {
    %c0_i32 = arith.constant 0 : i32
    %c0_i32_0 = arith.constant 0 : i32
    %c0_i32_1 = arith.constant 0 : i32
    return %c0_i32, %c0_i32_0 : i32, i32
  }
  func.func @transform_5(%arg0: i32) -> (i32, i32) {
    %c0_i32 = arith.constant 0 : i32
    %c0_i32_0 = arith.constant 0 : i32
    %c0_i32_1 = arith.constant 0 : i32
    return %c0_i32, %c0_i32_0 : i32, i32
  }
  func.func @transform_6(%arg0: i32) -> (i32, i32) {
    %c0_i32 = arith.constant 0 : i32
    %c0_i32_0 = arith.constant 0 : i32
    %c0_i32_1 = arith.constant 0 : i32
    return %c0_i32, %c0_i32_0 : i32, i32
  }
  func.func @transform_7(%arg0: i32) -> (i32, i32, i32) {
    %c0_i32 = arith.constant 0 : i32
    %c0_i32_0 = arith.constant 0 : i32
    %c0_i32_1 = arith.constant 0 : i32
    %c0_i32_2 = arith.constant 0 : i32
    return %c0_i32, %c0_i32_0, %c0_i32_1 : i32, i32, i32
  }
  func.func @transform_8(%arg0: i32) -> (i32, i32) {
    %c0_i32 = arith.constant 0 : i32
    %c0_i32_0 = arith.constant 0 : i32
    %c0_i32_1 = arith.constant 0 : i32
    return %c0_i32, %c0_i32_0 : i32, i32
  }
  func.func @transform_9(%arg0: i32) -> (i32, i32) {
    %c0_i32 = arith.constant 0 : i32
    %c0_i32_0 = arith.constant 0 : i32
    %c0_i32_1 = arith.constant 0 : i32
    return %c0_i32, %c0_i32_0 : i32, i32
  }
  func.func @transform_10(%arg0: i32) -> (i32, i32, i32) {
    %c0_i32 = arith.constant 0 : i32
    %c0_i32_0 = arith.constant 0 : i32
    %c0_i32_1 = arith.constant 0 : i32
    return %arg0, %c0_i32, %c0_i32_0 : i32, i32, i32
  }
}

module attributes {stable_mosaic.version = 11 : i64} {
  func.func @_ff_block_kernel(%arg0: memref<34x32xf32, #tpu.memory_space<vmem>>, %arg1: memref<1x32xf32, #tpu.memory_space<vmem>>, %arg2: memref<32x256xbf16, #tpu.memory_space<vmem>>, %arg3: memref<128x32xbf16, #tpu.memory_space<vmem>>, %arg4: memref<34x32xf32, #tpu.memory_space<vmem>>) attributes {dimension_semantics = [], scalar_prefetch = 0 : i64, scratch_operands = 0 : i64, tpu.core_type = #tpu.core_type<tc>} {
    %c0 = arith.constant 0 : index
    %c0_0 = arith.constant 0 : index
    %0 = vector.load %arg0[%c0, %c0_0] : memref<34x32xf32, #tpu.memory_space<vmem>>, vector<34x32xf32>
    %c0_1 = arith.constant 0 : index
    %c0_2 = arith.constant 0 : index
    %1 = vector.load %arg1[%c0_1, %c0_2] : memref<1x32xf32, #tpu.memory_space<vmem>>, vector<1x32xf32>
    %cst = arith.constant dense<0.000000e+00> : vector<34xf32>
    %2 = vector.multi_reduction <add>, %0, %cst [1] : vector<34x32xf32> to vector<34xf32>
    %3 = vector.shape_cast %2 : vector<34xf32> to vector<34x1xf32>
    %cst_3 = arith.constant 3.200000e+01 : f32
    %4 = vector.broadcast %cst_3 : f32 to vector<34x1xf32>
    %5 = arith.divf %3, %4 : vector<34x1xf32>
    %6 = vector.broadcast %5 : vector<34x1xf32> to vector<34x32xf32>
    %7 = arith.subf %0, %6 : vector<34x32xf32>
    %8 = arith.mulf %7, %7 : vector<34x32xf32>
    %cst_4 = arith.constant dense<0.000000e+00> : vector<34xf32>
    %9 = vector.multi_reduction <add>, %8, %cst_4 [1] : vector<34x32xf32> to vector<34xf32>
    %10 = vector.shape_cast %9 : vector<34xf32> to vector<34x1xf32>
    %cst_5 = arith.constant 3.200000e+01 : f32
    %11 = vector.broadcast %cst_5 : f32 to vector<34x1xf32>
    %12 = arith.divf %10, %11 : vector<34x1xf32>
    %13 = vector.broadcast %5 : vector<34x1xf32> to vector<34x32xf32>
    %14 = arith.subf %0, %13 : vector<34x32xf32>
    %cst_6 = arith.constant 9.99999974E-6 : f32
    %15 = vector.broadcast %cst_6 : f32 to vector<34x1xf32>
    %16 = arith.addf %12, %15 : vector<34x1xf32>
    %17 = math.rsqrt %16 : vector<34x1xf32>
    %18 = vector.broadcast %17 : vector<34x1xf32> to vector<34x32xf32>
    %19 = arith.mulf %14, %18 : vector<34x32xf32>
    %20 = vector.broadcast %1 : vector<1x32xf32> to vector<34x32xf32>
    %21 = arith.mulf %19, %20 : vector<34x32xf32>
    %22 = arith.truncf %21 : vector<34x32xf32> to vector<34x32xbf16>
    %c0_7 = arith.constant 0 : index
    %c0_8 = arith.constant 0 : index
    %23 = vector.load %arg2[%c0_7, %c0_8] : memref<32x256xbf16, #tpu.memory_space<vmem>>, vector<32x256xbf16>
    %cst_9 = arith.constant dense<0.000000e+00> : vector<34x256xf32>
    %24 = tpu.matmul %22, %23, %cst_9 {dimension_numbers = #tpu.dot_dimension_numbers<[1], [0], [0], [1], [0, 0, 1, 1], [], []>} : vector<34x32xbf16>, vector<32x256xbf16>, vector<34x256xf32> -> vector<34x256xf32>
    %25 = vector.extract_strided_slice %24 {offsets = [0, 0], sizes = [34, 128], strides = [1, 1]} : vector<34x256xf32> to vector<34x128xf32>
    %26 = vector.extract_strided_slice %24 {offsets = [0, 128], sizes = [34, 128], strides = [1, 1]} : vector<34x256xf32> to vector<34x128xf32>
    %27 = arith.negf %26 : vector<34x128xf32>
    %28 = math.exp %27 : vector<34x128xf32>
    %cst_10 = arith.constant 1.000000e+00 : f32
    %29 = vector.broadcast %cst_10 : f32 to vector<34x128xf32>
    %30 = arith.addf %29, %28 : vector<34x128xf32>
    %31 = arith.divf %29, %30 : vector<34x128xf32>
    %32 = arith.mulf %26, %31 : vector<34x128xf32>
    %33 = arith.mulf %25, %32 : vector<34x128xf32>
    %34 = arith.truncf %33 : vector<34x128xf32> to vector<34x128xbf16>
    %c0_11 = arith.constant 0 : index
    %c0_12 = arith.constant 0 : index
    %35 = vector.load %arg3[%c0_11, %c0_12] : memref<128x32xbf16, #tpu.memory_space<vmem>>, vector<128x32xbf16>
    %cst_13 = arith.constant dense<0.000000e+00> : vector<34x32xf32>
    %36 = tpu.matmul %34, %35, %cst_13 {dimension_numbers = #tpu.dot_dimension_numbers<[1], [0], [0], [1], [0, 0, 1, 1], [], []>} : vector<34x128xbf16>, vector<128x32xbf16>, vector<34x32xf32> -> vector<34x32xf32>
    %37 = arith.addf %36, %0 : vector<34x32xf32>
    %c0_14 = arith.constant 0 : index
    %c0_15 = arith.constant 0 : index
    %38 = vector.load %arg4[%c0_14, %c0_15] : memref<34x32xf32, #tpu.memory_space<vmem>>, vector<34x32xf32>
    tpu.vector_store %arg4[%c0_14, %c0_15], %37 {strides = array<i32>} : memref<34x32xf32, #tpu.memory_space<vmem>>, vector<34x32xf32>,
    return
  }
}

module attributes {stable_mosaic.version = 11 : i64} {
  func.func @_final_kernel(%arg0: memref<34x32xf32, #tpu.memory_space<vmem>>, %arg1: memref<1x32xf32, #tpu.memory_space<vmem>>, %arg2: memref<32x32xbf16, #tpu.memory_space<vmem>>, %arg3: memref<34x32xf32, #tpu.memory_space<vmem>>) attributes {dimension_semantics = [], scalar_prefetch = 0 : i64, scratch_operands = 0 : i64, tpu.core_type = #tpu.core_type<tc>} {
    %c0 = arith.constant 0 : index
    %c0_0 = arith.constant 0 : index
    %0 = vector.load %arg0[%c0, %c0_0] : memref<34x32xf32, #tpu.memory_space<vmem>>, vector<34x32xf32>
    %cst = arith.constant dense<0xFF800000> : vector<34xf32>
    %1 = vector.multi_reduction <maximumf>, %0, %cst [1] : vector<34x32xf32> to vector<34xf32>
    %2 = vector.shape_cast %1 : vector<34xf32> to vector<34x1xf32>
    %3 = vector.broadcast %2 : vector<34x1xf32> to vector<34x32xf32>
    %4 = arith.divf %0, %3 : vector<34x32xf32>
    %c0_1 = arith.constant 0 : index
    %c0_2 = arith.constant 0 : index
    %5 = vector.load %arg1[%c0_1, %c0_2] : memref<1x32xf32, #tpu.memory_space<vmem>>, vector<1x32xf32>
    %cst_3 = arith.constant dense<0.000000e+00> : vector<34xf32>
    %6 = vector.multi_reduction <add>, %4, %cst_3 [1] : vector<34x32xf32> to vector<34xf32>
    %7 = vector.shape_cast %6 : vector<34xf32> to vector<34x1xf32>
    %cst_4 = arith.constant 3.200000e+01 : f32
    %8 = vector.broadcast %cst_4 : f32 to vector<34x1xf32>
    %9 = arith.divf %7, %8 : vector<34x1xf32>
    %10 = vector.broadcast %9 : vector<34x1xf32> to vector<34x32xf32>
    %11 = arith.subf %4, %10 : vector<34x32xf32>
    %12 = arith.mulf %11, %11 : vector<34x32xf32>
    %cst_5 = arith.constant dense<0.000000e+00> : vector<34xf32>
    %13 = vector.multi_reduction <add>, %12, %cst_5 [1] : vector<34x32xf32> to vector<34xf32>
    %14 = vector.shape_cast %13 : vector<34xf32> to vector<34x1xf32>
    %cst_6 = arith.constant 3.200000e+01 : f32
    %15 = vector.broadcast %cst_6 : f32 to vector<34x1xf32>
    %16 = arith.divf %14, %15 : vector<34x1xf32>
    %17 = vector.broadcast %9 : vector<34x1xf32> to vector<34x32xf32>
    %18 = arith.subf %4, %17 : vector<34x32xf32>
    %cst_7 = arith.constant 9.99999974E-6 : f32
    %19 = vector.broadcast %cst_7 : f32 to vector<34x1xf32>
    %20 = arith.addf %16, %19 : vector<34x1xf32>
    %21 = math.rsqrt %20 : vector<34x1xf32>
    %22 = vector.broadcast %21 : vector<34x1xf32> to vector<34x32xf32>
    %23 = arith.mulf %18, %22 : vector<34x32xf32>
    %24 = vector.broadcast %5 : vector<1x32xf32> to vector<34x32xf32>
    %25 = arith.mulf %23, %24 : vector<34x32xf32>
    %26 = arith.truncf %25 : vector<34x32xf32> to vector<34x32xbf16>
    %c0_8 = arith.constant 0 : index
    %c0_9 = arith.constant 0 : index
    %27 = vector.load %arg2[%c0_8, %c0_9] : memref<32x32xbf16, #tpu.memory_space<vmem>>, vector<32x32xbf16>
    %cst_10 = arith.constant dense<0.000000e+00> : vector<34x32xf32>
    %28 = tpu.matmul %26, %27, %cst_10 {dimension_numbers = #tpu.dot_dimension_numbers<[1], [0], [0], [1], [0, 0, 1, 1], [], []>} : vector<34x32xbf16>, vector<32x32xbf16>, vector<34x32xf32> -> vector<34x32xf32>
    %c0_11 = arith.constant 0 : index
    %c0_12 = arith.constant 0 : index
    %29 = vector.load %arg3[%c0_11, %c0_12] : memref<34x32xf32, #tpu.memory_space<vmem>>, vector<34x32xf32>
    tpu.vector_store %arg3[%c0_11, %c0_12], %28 {strides = array<i32>} : memref<34x32xf32, #tpu.memory_space<vmem>>, vector<34x32xf32>,
    return
  }
}

</mosaic_0001>

<bundles_post_ra>
// kernel: prior_network_forward.6
= control target key start
LH: loop header
LB: loop body
LE: loop exit
PB: predicated region body
PF: predicated region fallthrough
CT: control target
= control target key end

     0   :  { %v366_v0 = vmov 0.0   ;;  %vm367_vm0 = vmmov 0   ;;  %vm52_vm1 = vcmask 261120   ;;  %vm143_vm2 = vcmask 523264   ;;  %s455_s1 = inlined_call_operand.vmem [shape: bf16[32,64], index: 1, kind: input, shape index: {}]   ;;  %s456_s0 = inlined_call_operand.vmem [shape: f32[2,32], index: 0, kind: input, shape index: {}]   ;;  %s457_s3 = inlined_call_operand.vmem [shape: bf16[64,64], index: 3, kind: input, shape index: {}]   ;;  %s458_s2 = inlined_call_operand.vmem [shape: f32[1,64], index: 2, kind: input, shape index: {}]   ;;  %s459_s5 = inlined_call_operand.vmem [shape: bf16[64,32], index: 5, kind: input, shape index: {}]   ;;  %s460_s4 = inlined_call_operand.vmem [shape: f32[1,64], index: 4, kind: input, shape index: {}]   ;;  %s461_s6 = inlined_call_operand.vmem [shape: f32[1,32], index: 6, kind: input, shape index: {}]   ;;  %s462_s7 = inlined_call_operand.vmem [shape: f32[2,32], index: 7, kind: output, shape index: {}]  }
   0x1   :  { %314 = vmatprep.subr.bf16.mxu0 %v366_v0  ;;  %v348_v1 = vld [vmem:[%s455_s1] sm:$0xff]   ;;  %318 = vmatprep.mubr.msk.bf16.mxu0 %vm367_vm0, %v366_v0  ;;  %v349_v2 = vld [vmem:[%s455_s1 + $0x8] sm:$0xff]   ;;  %v352_v7 = vld [vmem:[%s457_s3 + $0x10] sm:$0xff]   ;;  %vm277_vm3 = vcmask 254976  }
   0x2   :  { %322 = vmatprep.subr.bf16.mxu1 %v366_v0  ;;  %330 = vmatprep.mubr.msk.bf16.mxu1 %vm367_vm0, %v366_v0  ;;  %v27_v3 = vld [vmem:[%s456_s0] sm:$0x3]  ;;  %v351_v6 = vld [vmem:[%s457_s3 + $0x8] sm:$0xff]   ;;  %v353_v8 = vld [vmem:[%s457_s3 + $0x18] sm:$0xff]  }
   0x3   :  { %315 = vmatpush3.bf16.msra.mxu0 %v348_v1  ;;  %v28_v4 = vpack.c.bf16 %v27_v3, %v27_v3  ;;  %v350_v5 = vld [vmem:[%s457_s3] sm:$0xff]   ;;  %v355_v22 = vld [vmem:[%s459_s5 + $0x8] sm:$0xff]   ;;  %v356_v23 = vld [vmem:[%s459_s5 + $0x10] sm:$0xff]  }
   0x4   :  { %316 = vmatprep.subr.bf16.mxu0 %v366_v0  ;;  %323 = vmatpush3.bf16.msra.mxu1 %v350_v5  ;;  %v283_v9 = vld [vmem:[%s458_s2] ss:$0 sm:$0xff]  ;;  %v357_v24 = vld [vmem:[%s459_s5 + $0x18] sm:$0xff]  }
   0x5   :  { %324 = vmatprep.subr.bf16.mxu1 %v366_v0  ;;  %v354_v21 = vld [vmem:[%s459_s5] sm:$0xff]  }
   0x6   :  { %v288_v25 = vld [vmem:[%s460_s4] ss:$0 sm:$0xff] }
   0x7   :  { %317 = vmatpush3.bf16.msra.mxu0 %v349_v2  ;;  %v295_v37 = vld [vmem:[%s461_s6] ss:$0 sm:$0xff] }
   0x8   :  { %334 = vmatprep.subr.bf16.mxu0 %v366_v0  ;;  %325 = vmatpush3.bf16.msra.mxu1 %v351_v6 }
   0x9   :  { %326 = vmatprep.subr.bf16.mxu1 %v366_v0 }
   0xa   :  { %319 = vmatmul.mubr.msk.bf16.vlgmr.msra.gmra.mrb[0].mxu0 %vm52_vm1, %v28_v4 }
   0xb   :  { %342 = vmatprep.mubr.msk.bf16.mxu0 %vm367_vm0, %v366_v0  ;;  %335 = vmatpush3.bf16.msra.mxu0 %v354_v21 }
   0xc   :  { %327 = vmatpush3.bf16.msra.mxu1 %v352_v7  ;;  %336 = vmatprep.subr.bf16.mxu0 %v366_v0 }
   0xd   :  { %328 = vmatprep.subr.bf16.mxu1 %v366_v0 }
   0xf   :  { %337 = vmatpush3.bf16.msra.mxu0 %v355_v22 }
  0x10   :  { %329 = vmatpush3.bf16.msra.mxu1 %v353_v8  ;;  %338 = vmatprep.subr.bf16.mxu0 %v366_v0 }
  0x13   :  { %339 = vmatpush3.bf16.msra.mxu0 %v356_v23 }
  0x14   :  { %340 = vmatprep.subr.bf16.mxu0 %v366_v0 }
  0x17   :  { %341 = vmatpush3.bf16.msra.mxu0 %v357_v24 }
  0xdd   :  { %v90_v10 = vpop.f32.mrb[0].mxu0 }
  0xde   :  { %v91_v11 = vadd.f32 %v283_v9, %v90_v10  ;;  %v320_v12 = vpop.f32.mrb[1].mxu0 }
  0xdf   :  { %v93_v13 = vpop.f32.mrb[2].mxu0 }
  0xe0   :  { %v287_v14 = vmul.f32 -1.442695, %v91_v11  ;;  %v321_v15 = vpop.f32.mrb[3].mxu0 }
  0xe2   :  { %358 = vpow2.f32 %v287_v14 }
  0xec   :  { %v359_v16 = vpop.eup %358 }
  0xed   :  { %v99_v17 = vadd.f32 1.0, %v359_v16 }
  0xef   :  { %360 = vrcp.f32 %v99_v17 }
  0xf9   :  { %v361_v18 = vpop.eup %360 }
  0xfa   :  { %v102_v19 = vmul.f32 %v361_v18, %v91_v11 }
  0xfc   :  { %v103_v20 = vpack.c.bf16 %v102_v19, %v102_v19 }
  0xfe   :  { %331 = vmatmul.mubr.msk.bf16.vlgmr.msra.gmra.mrb[0].mxu1 %vm143_vm2, %v103_v20 }
 0x1d1   :  { %v181_v26 = vpop.f32.mrb[0].mxu1 }
 0x1d2   :  { %v182_v27 = vadd.f32 %v288_v25, %v181_v26  ;;  %v332_v28 = vpop.f32.mrb[1].mxu1 }
 0x1d3   :  { %v184_v29 = vpop.f32.mrb[2].mxu1 }
 0x1d4   :  { %v294_v30 = vmul.f32 -1.442695, %v182_v27  ;;  %v333_v31 = vpop.f32.mrb[3].mxu1 }
 0x1d6   :  { %362 = vpow2.f32 %v294_v30 }
 0x1e0   :  { %v363_v32 = vpop.eup %362 }
 0x1e1   :  { %v190_v33 = vadd.f32 1.0, %v363_v32 }
 0x1e3   :  { %364 = vrcp.f32 %v190_v33 }
 0x1ed   :  { %v365_v34 = vpop.eup %364 }
 0x1ee   :  { %v193_v35 = vmul.f32 %v365_v34, %v182_v27 }
 0x1f0   :  { %v194_v36 = vpack.c.bf16 %v193_v35, %v193_v35 }
 0x1f2   :  { %343 = vmatmul.mubr.msk.bf16.vlgmr.msra.gmra.mrb[4].mxu0 %vm143_vm2, %v194_v36 }
 0x2c5   :  { %v271_v38 = vpop.f32.mrb[4].mxu0 }
 0x2c6   :  { %v272_v39 = vadd.f32 %v295_v37, %v271_v38  ;;  %v344_v40 = vpop.f32.mrb[5].mxu0 }
 0x2c7   :  { %v274_v41 = vpop.f32.mrb[6].mxu0 }
 0x2c8   :  { %278 = vst.msk [vmem:[%s462_s7] sm:$0x3] %vm277_vm3, %v272_v39  ;;  %v345_v42 = vpop.f32.mrb[7].mxu0 }

// kernel: prior_network_forward.8
= control target key start
LH: loop header
LB: loop body
LE: loop exit
PB: predicated region body
PF: predicated region fallthrough
CT: control target
= control target key end

     0   :  { %vm24_vm0 = vcmask 261120   ;;  %vm37_vm1 = vcmask 254976   ;;  %v495_v36 = vmov 0   ;;  %vm497_vm2 = vmmov 0   ;;  %s662_s0 = inlined_call_operand.vmem [shape: f32[34,32], index: 0, kind: input, shape index: {}]   ;;  %s663_s2 = inlined_call_operand.vmem [shape: bf16[32,256], index: 2, kind: input, shape index: {}]   ;;  %s664_s1 = inlined_call_operand.vmem [shape: f32[1,32], index: 1, kind: input, shape index: {}]   ;;  %s665_s3 = inlined_call_operand.vmem [shape: bf16[128,32], index: 3, kind: input, shape index: {}]   ;;  %s666_s4 = inlined_call_operand.vmem [shape: f32[34,32], index: 4, kind: output, shape index: {}]  }
   0x1   :  { %v526_v0 = vld [vmem:[%s662_s0] sm:$0xff]  ;;  %v531_v1 = vld [vmem:[%s662_s0 + $0x10] sm:$0xff]  ;;  %v536_v2 = vld [vmem:[%s662_s0 + $0x8] sm:$0xff]  ;;  %171 = vmatprep.mubr.bf16.mxu0 %v495_v36 }
   0x2   :  { %v25_v3 = vsel %vm24_vm0, %v526_v0, 0.0  ;;  %v31_v4 = vsel %vm24_vm0, %v531_v1, 0.0  ;;  %v545_v5 = vld [vmem:[%s662_s0 + $0x18] sm:$0xff]  ;;  %v28_v6 = vsel %vm24_vm0, %v536_v2, 0.0  ;;  %v554_v8 = vld [vmem:[%s662_s0 + $0x20] sm:$0x3] }
   0x3   :  { %26 = vadd.xlane.f32.xlu0 %v25_v3  ;;  %32 = vadd.xlane.f32.xlu1 %v31_v4  ;;  %v34_v7 = vsel %vm24_vm0, %v545_v5, 0.0  ;;  %v38_v9 = vsel %vm37_vm1, %v554_v8, 0.0  ;;  %v451_v35 = vld [vmem:[%s663_s2 + $0x4] ss:$8 sps:$4 sm:$0xff]   ;;  %v453_v37 = vld [vmem:[%s663_s2] ss:$8 sps:$4 sm:$0xff]  }
   0x4   :  { %139 = vmatprep.subr.bf16.mxu0 %v451_v35  ;;  %v454_v38 = vld [vmem:[%s663_s2 + $0x14] ss:$8 sps:$4 sm:$0xff]   ;;  %v456_v39 = vld [vmem:[%s663_s2 + $0x10] ss:$8 sps:$4 sm:$0xff]   ;;  %v372_v58 = vld [vmem:[%s664_s1] ss:$0 sm:$0xff] }
   0x5   :  { %140 = vmatpush1.bf16.msra.mxu0 %v453_v37 }
   0x6   :  { %141 = vmatprep.subr.bf16.mxu0 %v454_v38 }
   0x7   :  { %29 = vadd.xlane.f32.xlu0 %v28_v6  ;;  %35 = vadd.xlane.f32.xlu1 %v34_v7 }
   0x9   :  { %142 = vmatpush1.bf16.msra.mxu0 %v456_v39 }
   0xb   :  { %39 = vadd.xlane.f32.xlu0 %v38_v9 }
  0x90   :  { %v27_v10 = vpop.xlane.xlu0 %26  ;;  %v33_v11 = vpop.xlane.xlu1 %32 }
  0x91   :  { %v42_v12 = vmul.f32 0.03125, %v27_v10  ;;  %v44_v13 = vmul.f32 0.03125, %v33_v11 }
  0x93   :  { %v47_v14 = vsub.f32 %v526_v0, %v42_v12  ;;  %v560_v15 = vsub.f32 %v531_v1, %v44_v13 }
  0x94   :  { %v30_v16 = vpop.xlane.xlu0 %29  ;;  %v36_v17 = vpop.xlane.xlu1 %35 }
  0x95   :  { %v43_v18 = vmul.f32 0.03125, %v30_v16  ;;  %v45_v19 = vmul.f32 0.03125, %v36_v17  ;;  %v52_v20 = vmul.f32 %v47_v14, %v47_v14  ;;  %v54_v21 = vmul.f32 %v560_v15, %v560_v15  ;;  %v457_v16 = vld [vmem:[%s665_s3] sm:$0xff]  }
  0x96   :  { %v496_v17 = vmov 0.0  }
  0x97   :  { %v48_v22 = vsub.f32 %v536_v2, %v43_v18  ;;  %v50_v23 = vsub.f32 %v545_v5, %v45_v19  ;;  %v57_v24 = vsel %vm24_vm0, %v52_v20, 0.0  ;;  %v63_v27 = vsel %vm24_vm0, %v54_v21, 0.0  ;;  %404 = vmatprep.subr.bf16.mxu0 %v496_v17  ;;  %432 = vmatprep.subr.bf16.mxu1 %v496_v17  ;;  %v459_v18 = vld [vmem:[%s665_s3 + $0x10] sm:$0xff]   ;;  %v460_v19 = vld [vmem:[%s665_s3 + $0x18] sm:$0xff]   ;;  %v461_v20 = vld [vmem:[%s665_s3 + $0x20] sm:$0xff]  }
  0x98   :  { %58 = vadd.xlane.f32.xlu1 %v57_v24  ;;  %v40_v25 = vpop.xlane.xlu0 %39  ;;  %440 = vmatpush3.bf16.msra.mxu1 %v457_v16  ;;  %v462_v21 = vld [vmem:[%s665_s3 + $0x28] sm:$0xff]  }
  0x99   :  { %v46_v26 = vmul.f32 0.03125, %v40_v25  ;;  %v53_v28 = vmul.f32 %v48_v22, %v48_v22  ;;  %v55_v29 = vmul.f32 %v50_v23, %v50_v23  ;;  %433 = vmatprep.subr.bf16.mxu1 %v496_v17  ;;  %424 = vmatprep.mubr.msk.bf16.mxu1 %vm497_vm2, %v496_v17 }
  0x9b   :  { %v51_v30 = vsub.f32 %v554_v8, %v46_v26  ;;  %v60_v31 = vsel %vm24_vm0, %v53_v28, 0.0  ;;  %v66_v32 = vsel %vm24_vm0, %v55_v29, 0.0 }
  0x9c   :  { %64 = vadd.xlane.f32.xlu1 %v63_v27  ;;  %61 = vadd.xlane.f32.xlu0 %v60_v31 }
  0x9d   :  { %v56_v33 = vmul.f32 %v51_v30, %v51_v30 }
  0x9f   :  { %v69_v34 = vsel %vm37_vm1, %v56_v33, 0.0 }
  0xa0   :  { %67 = vadd.xlane.f32.xlu0 %v66_v32  ;;  %70 = vadd.xlane.f32.xlu1 %v69_v34 }
 0x125   :  { %v59_v40 = vpop.xlane.xlu1 %58 }
 0x126   :  { %v72_v41 = vmul.f32 0.03125, %v59_v40 }
 0x128   :  { %v77_v42 = vadd.f32 1e-05, %v72_v41 }
 0x129   :  { %v65_v43 = vpop.xlane.xlu1 %64  ;;  %v62_v44 = vpop.xlane.xlu0 %61 }
 0x12a   :  { %v74_v45 = vmul.f32 0.03125, %v65_v43  ;;  %v73_v46 = vmul.f32 0.03125, %v62_v44  ;;  %465 = vrsqrt.f32 %v77_v42 }
 0x12c   :  { %v78_v47 = vadd.f32 1e-05, %v73_v46  ;;  %v79_v49 = vadd.f32 1e-05, %v74_v45 }
 0x12d   :  { %v68_v48 = vpop.xlane.xlu0 %67  ;;  %v71_v50 = vpop.xlane.xlu1 %70 }
 0x12e   :  { %v75_v51 = vmul.f32 0.03125, %v68_v48  ;;  %467 = vrsqrt.f32 %v78_v47  ;;  %v76_v53 = vmul.f32 0.03125, %v71_v50 }
 0x12f   :  { %469 = vrsqrt.f32 %v79_v49 }
 0x130   :  { %v80_v52 = vadd.f32 1e-05, %v75_v51  ;;  %v81_v55 = vadd.f32 1e-05, %v76_v53 }
 0x132   :  { %471 = vrsqrt.f32 %v80_v52 }
 0x133   :  { %473 = vrsqrt.f32 %v81_v55 }
 0x134   :  { %v466_v54 = vpop.eup %465 }
 0x135   :  { %v87_v56 = vmul.f32 %v466_v54, %v47_v14 }
 0x137   :  { %v98_v61 = vmul.f32 %v372_v58, %v87_v56 }
 0x138   :  { %v468_v57 = vpop.eup %467 }
 0x139   :  { %v88_v59 = vmul.f32 %v468_v57, %v48_v22  ;;  %v470_v60 = vpop.eup %469  ;;  %v463_v22 = vld [vmem:[%s665_s3 + $0x30] sm:$0xff]  }
 0x13a   :  { %v89_v6 = vmul.f32 %v470_v60, %v560_v15  ;;  %v458_v15 = vld [vmem:[%s665_s3 + $0x8] sm:$0xff]  }
 0x13b   :  { %v99_v62 = vmul.f32 %v372_v58, %v88_v59  ;;  %441 = vmatpush3.bf16.msra.mxu1 %v458_v15 }
 0x13c   :  { %v472_v63 = vpop.eup %471  ;;  %v100_v10 = vmul.f32 %v372_v58, %v89_v6  ;;  %434 = vmatprep.subr.bf16.mxu1 %v496_v17 }
 0x13d   :  { %v103_v3 = vpack.c.bf16 %v99_v62, %v98_v61  ;;  %v90_v4 = vmul.f32 %v472_v63, %v50_v23  ;;  %v474_v9 = vpop.eup %473  ;;  %v464_v23 = vld [vmem:[%s665_s3 + $0x38] sm:$0xff]  }
 0x13e   :  { %v91_v12 = vmul.f32 %v474_v9, %v51_v30 }
 0x13f   :  { %377 = vmatmul.mubr.msk.bf16.vlgmr.msra.gmra.mrb[0].mxu0 %vm24_vm0, %v103_v3  ;;  %v101_v7 = vmul.f32 %v372_v58, %v90_v4  ;;  %442 = vmatpush3.bf16.msra.mxu1 %v459_v18 }
 0x140   :  { %181 = vmatprep.mubr.bf16.mxu0 %v495_v36  ;;  %v102_v13 = vmul.f32 %v372_v58, %v91_v12  ;;  %405 = vmatpush3.bf16.msra.mxu0 %v457_v16 }
 0x141   :  { %v104_v11 = vpack.c.bf16 %v101_v7, %v100_v10  ;;  %406 = vmatprep.subr.bf16.mxu0 %v496_v17  ;;  %435 = vmatprep.subr.bf16.mxu1 %v496_v17 }
 0x142   :  { %v105_v14 = vpack.c.bf16 %v102_v13, %v102_v13 }
 0x143   :  { %443 = vmatpush3.bf16.msra.mxu1 %v460_v19 }
 0x144   :  { %407 = vmatpush3.bf16.msra.mxu0 %v458_v15  ;;  %436 = vmatprep.subr.bf16.mxu1 %v496_v17 }
 0x145   :  { %408 = vmatprep.subr.bf16.mxu0 %v496_v17 }
 0x147   :  { %378 = vmatmul.mubr.msk.bf16.gmra.mrb[4].mxu0 %vm24_vm0, %v104_v11  ;;  %444 = vmatpush3.bf16.msra.mxu1 %v461_v20 }
 0x148   :  { %191 = vmatprep.mubr.bf16.mxu0 %v495_v36  ;;  %409 = vmatpush3.bf16.msra.mxu0 %v459_v18 }
 0x149   :  { %410 = vmatprep.subr.bf16.mxu0 %v496_v17  ;;  %437 = vmatprep.subr.bf16.mxu1 %v496_v17 }
 0x14b   :  { %445 = vmatpush3.bf16.msra.mxu1 %v462_v21 }
 0x14c   :  { %411 = vmatpush3.bf16.msra.mxu0 %v460_v19  ;;  %438 = vmatprep.subr.bf16.mxu1 %v496_v17 }
 0x14d   :  { %412 = vmatprep.subr.bf16.mxu0 %v496_v17 }
 0x14f   :  { %379 = vmatmul.mubr.msk.bf16.gmra.mrb[8].mxu0 %vm24_vm0, %v105_v14  ;;  %446 = vmatpush3.bf16.msra.mxu1 %v463_v22 }
 0x150   :  { %413 = vmatpush3.bf16.msra.mxu0 %v461_v20  ;;  %439 = vmatprep.subr.bf16.mxu1 %v496_v17 }
 0x151   :  { %414 = vmatprep.subr.bf16.mxu0 %v496_v17  ;;  %420 = vmatprep.mubr.msk.bf16.mxu0 %vm497_vm2, %v496_v17 }
 0x153   :  { %447 = vmatpush3.bf16.msra.mxu1 %v464_v23 }
 0x154   :  { %415 = vmatpush3.bf16.msra.mxu0 %v462_v21 }
 0x155   :  { %416 = vmatprep.subr.bf16.mxu0 %v496_v17 }
 0x158   :  { %417 = vmatpush3.bf16.msra.mxu0 %v463_v22 }
 0x159   :  { %418 = vmatprep.subr.bf16.mxu0 %v496_v17 }
 0x15c   :  { %419 = vmatpush3.bf16.msra.mxu0 %v464_v23 }
 0x212   :  { %v173_v24 = vpop.f32.mrb[0].mxu0 }
 0x213   :  { %v175_v25 = vpop.f32.mrb[1].mxu0 }
 0x214   :  { %v380_v26 = vmul.f32 -1.442695, %v175_v25  ;;  %v177_v27 = vpop.f32.mrb[2].mxu0 }
 0x215   :  { %v179_v28 = vpop.f32.mrb[3].mxu0 }
 0x216   :  { %475 = vpow2.f32 %v380_v26  ;;  %v381_v29 = vmul.f32 -1.442695, %v179_v28 }
 0x218   :  { %477 = vpow2.f32 %v381_v29 }
 0x21a   :  { %v183_v30 = vpop.f32.mrb[4].mxu0 }
 0x21b   :  { %v185_v31 = vpop.f32.mrb[5].mxu0 }
 0x21c   :  { %v382_v32 = vmul.f32 -1.442695, %v185_v31  ;;  %v187_v33 = vpop.f32.mrb[6].mxu0 }
 0x21d   :  { %v189_v34 = vpop.f32.mrb[7].mxu0 }
 0x21e   :  { %479 = vpow2.f32 %v382_v32  ;;  %v383_v35 = vmul.f32 -1.442695, %v189_v34 }
 0x220   :  { %v476_v36 = vpop.eup %475  ;;  %481 = vpow2.f32 %v383_v35 }
 0x221   :  { %v215_v37 = vadd.f32 1.0, %v476_v36 }
 0x222   :  { %v478_v38 = vpop.eup %477  ;;  %v193_v39 = vpop.f32.mrb[8].mxu0 }
 0x223   :  { %483 = vrcp.f32 %v215_v37  ;;  %v216_v40 = vadd.f32 1.0, %v478_v38  ;;  %v195_v41 = vpop.f32.mrb[9].mxu0 }
 0x224   :  { %v384_v42 = vmul.f32 -1.442695, %v195_v41  ;;  %v197_v43 = vpop.f32.mrb[10].mxu0 }
 0x225   :  { %485 = vrcp.f32 %v216_v40  ;;  %v198_v44 = vpop.f32.mrb[11].mxu0 }
 0x226   :  { %487 = vpow2.f32 %v384_v42 }
 0x228   :  { %v480_v45 = vpop.eup %479 }
 0x229   :  { %v217_v46 = vadd.f32 1.0, %v480_v45 }
 0x22a   :  { %v482_v47 = vpop.eup %481 }
 0x22b   :  { %489 = vrcp.f32 %v217_v46  ;;  %v218_v48 = vadd.f32 1.0, %v482_v47 }
 0x22d   :  { %v484_v49 = vpop.eup %483  ;;  %491 = vrcp.f32 %v218_v48 }
 0x22e   :  { %v230_v50 = vmul.f32 %v484_v49, %v175_v25 }
 0x22f   :  { %v486_v51 = vpop.eup %485 }
 0x230   :  { %v488_v52 = vpop.eup %487  ;;  %v235_v53 = vmul.f32 %v230_v50, %v173_v24  ;;  %v231_v54 = vmul.f32 %v486_v51, %v179_v28 }
 0x231   :  { %v219_v55 = vadd.f32 1.0, %v488_v52 }
 0x232   :  { %v236_v56 = vmul.f32 %v231_v54, %v177_v27 }
 0x233   :  { %493 = vrcp.f32 %v219_v55 }
 0x234   :  { %v240_v57 = vpack.c.bf16 %v236_v56, %v235_v53 }
 0x235   :  { %v490_v58 = vpop.eup %489 }
 0x236   :  { %v232_v59 = vmul.f32 %v490_v58, %v185_v31  ;;  %421 = vmatmul.mubr.bf16.vlgmr.msra.gmra.mrb[12].mxu0 %v240_v57 }
 0x237   :  { %v492_v60 = vpop.eup %491 }
 0x238   :  { %v237_v61 = vmul.f32 %v232_v59, %v183_v30  ;;  %v233_v62 = vmul.f32 %v492_v60, %v189_v34 }
 0x23a   :  { %v238_v63 = vmul.f32 %v233_v62, %v187_v33 }
 0x23c   :  { %v241_v3 = vpack.c.bf16 %v238_v63, %v237_v61 }
 0x23d   :  { %v494_v4 = vpop.eup %493 }
 0x23e   :  { %v234_v6 = vmul.f32 %v494_v4, %v195_v41  ;;  %425 = vmatmul.mubr.bf16.vlgmr.msra.gmra.mrb[0].mxu1 %v241_v3 }
 0x23f   :  { %428 = vmatprep.mubr.msk.bf16.mxu1 %vm497_vm2, %v496_v17 }
 0x240   :  { %v239_v7 = vmul.f32 %v234_v6, %v193_v39 }
 0x242   :  { %v242_v9 = vpack.c.bf16 %v239_v7, %v239_v7 }
 0x246   :  { %429 = vmatmul.mubr.bf16.gmra.mrb[4].mxu1 %v242_v9 }
 0x309   :  { %v341_v10 = vpop.f32.mrb[12].mxu0 }
 0x30a   :  { %v342_v11 = vadd.f32 %v341_v10, %v526_v0  ;;  %v422_v12 = vpop.f32.mrb[13].mxu0 }
 0x30b   :  { %v344_v13 = vpop.f32.mrb[14].mxu0 }
 0x30c   :  { %363 = vst.msk [vmem:[%s666_s4] sm:$0xff] %vm24_vm0, %v342_v11  ;;  %v345_v14 = vadd.f32 %v344_v13, %v536_v2  ;;  %v423_v16 = vpop.f32.mrb[15].mxu0 }
 0x30e   :  { %364 = vst.msk [vmem:[%s666_s4 + $0x8] sm:$0xff] %vm24_vm0, %v345_v14 }
 0x311   :  { %v349_v17 = vpop.f32.mrb[0].mxu1 }
 0x312   :  { %v350_v15 = vadd.f32 %v349_v17, %v531_v1  ;;  %v426_v18 = vpop.f32.mrb[1].mxu1 }
 0x313   :  { %v352_v0 = vpop.f32.mrb[2].mxu1 }
 0x314   :  { %365 = vst.msk [vmem:[%s666_s4 + $0x10] sm:$0xff] %vm24_vm0, %v350_v15  ;;  %v353_v19 = vadd.f32 %v352_v0, %v545_v5  ;;  %v427_v20 = vpop.f32.mrb[3].mxu1 }
 0x316   :  { %366 = vst.msk [vmem:[%s666_s4 + $0x18] sm:$0xff] %vm24_vm0, %v353_v19 }
 0x319   :  { %v357_v2 = vpop.f32.mrb[4].mxu1 }
 0x31a   :  { %v358_v21 = vadd.f32 %v357_v2, %v554_v8  ;;  %v430_v22 = vpop.f32.mrb[5].mxu1 }
 0x31b   :  { %v360_v1 = vpop.f32.mrb[6].mxu1 }
 0x31c   :  { %367 = vst.msk [vmem:[%s666_s4 + $0x20] sm:$0x3] %vm37_vm1, %v358_v21  ;;  %v431_v23 = vpop.f32.mrb[7].mxu1 }

// kernel: prior_network_forward.11
= control target key start
LH: loop header
LB: loop body
LE: loop exit
PB: predicated region body
PF: predicated region fallthrough
CT: control target
= control target key end

     0   :  { %vm20_vm0 = vcmask 261120   ;;  %vm33_vm1 = vcmask 254976   ;;  %v273_v55 = vmov 0.0   ;;  %vm274_vm2 = vmmov 0   ;;  %s375_s0 = inlined_call_operand.vmem [shape: f32[34,32], index: 0, kind: input, shape index: {}]   ;;  %s376_s2 = inlined_call_operand.vmem [shape: bf16[32,32], index: 2, kind: input, shape index: {}]   ;;  %s377_s1 = inlined_call_operand.vmem [shape: f32[1,32], index: 1, kind: input, shape index: {}]   ;;  %s378_s3 = inlined_call_operand.vmem [shape: f32[34,32], index: 3, kind: output, shape index: {}]  }
   0x1   :  { %v17_v0 = vld [vmem:[%s375_s0 + $0x10] sm:$0xff]  ;;  %v18_v1 = vld [vmem:[%s375_s0 + $0x18] sm:$0xff]  ;;  %v15_v2 = vld [vmem:[%s375_s0] sm:$0xff]  ;;  %245 = vmatprep.subr.bf16.mxu1 %v273_v55  ;;  %229 = vmatprep.subr.bf16.mxu0 %v273_v55 }
   0x2   :  { %v27_v3 = vsel %vm20_vm0, %v17_v0, -inf  ;;  %v21_v4 = vsel %vm20_vm0, %v15_v2, -inf  ;;  %v16_v5 = vld [vmem:[%s375_s0 + $0x8] sm:$0xff]  ;;  %v30_v6 = vsel %vm20_vm0, %v18_v1, -inf  ;;  %v19_v8 = vld [vmem:[%s375_s0 + $0x20] sm:$0x3]  ;;  %237 = vmatprep.mubr.msk.bf16.mxu1 %vm274_vm2, %v273_v55  ;;  %233 = vmatprep.mubr.msk.bf16.mxu0 %vm274_vm2, %v273_v55 }
   0x3   :  { %28 = vmax.xlane.f32.xlu0 %v27_v3  ;;  %22 = vmax.xlane.f32.xlu1 %v21_v4  ;;  %v24_v7 = vsel %vm20_vm0, %v16_v5, -inf  ;;  %v34_v9 = vsel %vm33_vm1, %v19_v8, -inf  ;;  %v251_v56 = vld [vmem:[%s376_s2] sm:$0xff]   ;;  %v252_v57 = vld [vmem:[%s376_s2 + $0x8] sm:$0xff]  }
   0x4   :  { %247 = vmatpush3.bf16.msra.mxu1 %v251_v56  ;;  %230 = vmatpush3.bf16.msra.mxu0 %v251_v56 }
   0x5   :  { %246 = vmatprep.subr.bf16.mxu1 %v273_v55  ;;  %231 = vmatprep.subr.bf16.mxu0 %v273_v55 }
   0x7   :  { %31 = vmax.xlane.f32.xlu0 %v30_v6  ;;  %25 = vmax.xlane.f32.xlu1 %v24_v7 }
   0x8   :  { %248 = vmatpush3.bf16.msra.mxu1 %v252_v57  ;;  %232 = vmatpush3.bf16.msra.mxu0 %v252_v57 }
   0xb   :  { %35 = vmax.xlane.f32.xlu0 %v34_v9 }
  0x90   :  { %v29_v10 = vpop.xlane.xlu0 %28  ;;  %v23_v11 = vpop.xlane.xlu1 %22 }
  0x91   :  { %253 = vrcp.f32 %v29_v10 }
  0x92   :  { %255 = vrcp.f32 %v23_v11 }
  0x94   :  { %v32_v12 = vpop.xlane.xlu0 %31  ;;  %v26_v13 = vpop.xlane.xlu1 %25 }
  0x95   :  { %257 = vrcp.f32 %v32_v12 }
  0x96   :  { %259 = vrcp.f32 %v26_v13  ;;  %v218_v13 = vld [vmem:[%s377_s1] ss:$0 sm:$0xff] }
  0x98   :  { %v36_v14 = vpop.xlane.xlu0 %35 }
  0x99   :  { %261 = vrcp.f32 %v36_v14 }
  0x9b   :  { %v254_v15 = vpop.eup %253 }
  0x9c   :  { %v256_v16 = vpop.eup %255  ;;  %v42_v17 = vmul.f32 %v254_v15, %v17_v0 }
  0x9d   :  { %v38_v18 = vmul.f32 %v256_v16, %v15_v2 }
  0x9e   :  { %v54_v19 = vsel %vm20_vm0, %v42_v17, 0.0 }
  0x9f   :  { %v258_v20 = vpop.eup %257  ;;  %55 = vadd.xlane.f32.xlu1 %v54_v19  ;;  %v48_v23 = vsel %vm20_vm0, %v38_v18, 0.0 }
  0xa0   :  { %v260_v21 = vpop.eup %259  ;;  %v44_v22 = vmul.f32 %v258_v20, %v18_v1 }
  0xa1   :  { %v40_v24 = vmul.f32 %v260_v21, %v16_v5 }
  0xa2   :  { %v57_v25 = vsel %vm20_vm0, %v44_v22, 0.0 }
  0xa3   :  { %v262_v26 = vpop.eup %261  ;;  %58 = vadd.xlane.f32.xlu0 %v57_v25  ;;  %49 = vadd.xlane.f32.xlu1 %v48_v23  ;;  %v51_v28 = vsel %vm20_vm0, %v40_v24, 0.0 }
  0xa4   :  { %v46_v27 = vmul.f32 %v262_v26, %v19_v8 }
  0xa6   :  { %v60_v29 = vsel %vm33_vm1, %v46_v27, 0.0 }
  0xa7   :  { %61 = vadd.xlane.f32.xlu1 %v60_v29  ;;  %52 = vadd.xlane.f32.xlu0 %v51_v28 }
 0x12c   :  { %v56_v30 = vpop.xlane.xlu1 %55 }
 0x12d   :  { %v66_v31 = vmul.f32 0.03125, %v56_v30 }
 0x12f   :  { %v320_v32 = vsub.f32 %v42_v17, %v66_v31 }
 0x130   :  { %v59_v33 = vpop.xlane.xlu0 %58  ;;  %v50_v34 = vpop.xlane.xlu1 %49 }
 0x131   :  { %v67_v35 = vmul.f32 0.03125, %v59_v33  ;;  %v64_v36 = vmul.f32 0.03125, %v50_v34  ;;  %v76_v37 = vmul.f32 %v320_v32, %v320_v32 }
 0x133   :  { %v324_v38 = vsub.f32 %v44_v22, %v67_v35  ;;  %v326_v39 = vsub.f32 %v38_v18, %v64_v36  ;;  %v85_v40 = vsel %vm20_vm0, %v76_v37, 0.0 }
 0x134   :  { %v53_v41 = vpop.xlane.xlu0 %52  ;;  %86 = vadd.xlane.f32.xlu0 %v85_v40  ;;  %v62_v42 = vpop.xlane.xlu1 %61 }
 0x135   :  { %v65_v43 = vmul.f32 0.03125, %v53_v41  ;;  %v68_v44 = vmul.f32 0.03125, %v62_v42  ;;  %v77_v45 = vmul.f32 %v324_v38, %v324_v38  ;;  %v74_v46 = vmul.f32 %v326_v39, %v326_v39 }
 0x137   :  { %v70_v47 = vsub.f32 %v40_v24, %v65_v43  ;;  %v73_v48 = vsub.f32 %v46_v27, %v68_v44  ;;  %v88_v49 = vsel %vm20_vm0, %v77_v45, 0.0  ;;  %v79_v50 = vsel %vm20_vm0, %v74_v46, 0.0 }
 0x138   :  { %89 = vadd.xlane.f32.xlu1 %v88_v49  ;;  %80 = vadd.xlane.f32.xlu0 %v79_v50 }
 0x139   :  { %v75_v51 = vmul.f32 %v70_v47, %v70_v47  ;;  %v78_v52 = vmul.f32 %v73_v48, %v73_v48 }
 0x13b   :  { %v82_v53 = vsel %vm20_vm0, %v75_v51, 0.0  ;;  %v91_v54 = vsel %vm33_vm1, %v78_v52, 0.0 }
 0x13c   :  { %83 = vadd.xlane.f32.xlu1 %v82_v53  ;;  %92 = vadd.xlane.f32.xlu0 %v91_v54 }
 0x1c1   :  { %v87_v58 = vpop.xlane.xlu0 %86 }
 0x1c2   :  { %v96_v59 = vmul.f32 0.03125, %v87_v58 }
 0x1c4   :  { %v101_v60 = vadd.f32 1e-05, %v96_v59 }
 0x1c5   :  { %v81_v61 = vpop.xlane.xlu0 %80  ;;  %v90_v62 = vpop.xlane.xlu1 %89 }
 0x1c6   :  { %v94_v63 = vmul.f32 0.03125, %v81_v61  ;;  %v97_v0 = vmul.f32 0.03125, %v90_v62  ;;  %263 = vrsqrt.f32 %v101_v60 }
 0x1c8   :  { %v99_v1 = vadd.f32 1e-05, %v94_v63  ;;  %v102_v2 = vadd.f32 1e-05, %v97_v0 }
 0x1c9   :  { %v93_v3 = vpop.xlane.xlu0 %92  ;;  %v84_v4 = vpop.xlane.xlu1 %83 }
 0x1ca   :  { %265 = vrsqrt.f32 %v99_v1  ;;  %v98_v5 = vmul.f32 0.03125, %v93_v3  ;;  %v95_v6 = vmul.f32 0.03125, %v84_v4 }
 0x1cb   :  { %267 = vrsqrt.f32 %v102_v2 }
 0x1cc   :  { %v103_v7 = vadd.f32 1e-05, %v98_v5  ;;  %v100_v8 = vadd.f32 1e-05, %v95_v6 }
 0x1ce   :  { %269 = vrsqrt.f32 %v103_v7 }
 0x1cf   :  { %271 = vrsqrt.f32 %v100_v8 }
 0x1d0   :  { %v264_v9 = vpop.eup %263 }
 0x1d1   :  { %v111_v11 = vmul.f32 %v264_v9, %v320_v32 }
 0x1d3   :  { %v122_v16 = vmul.f32 %v218_v13, %v111_v11 }
 0x1d4   :  { %v266_v10 = vpop.eup %265 }
 0x1d5   :  { %v268_v12 = vpop.eup %267  ;;  %v109_v18 = vmul.f32 %v266_v10, %v326_v39 }
 0x1d6   :  { %v112_v14 = vmul.f32 %v268_v12, %v324_v38 }
 0x1d7   :  { %v120_v23 = vmul.f32 %v218_v13, %v109_v18 }
 0x1d8   :  { %v270_v15 = vpop.eup %269  ;;  %v123_v17 = vmul.f32 %v218_v13, %v112_v14 }
 0x1d9   :  { %v272_v19 = vpop.eup %271  ;;  %v113_v22 = vmul.f32 %v270_v15, %v73_v48 }
 0x1da   :  { %v126_v20 = vpack.c.bf16 %v123_v17, %v122_v16  ;;  %v110_v21 = vmul.f32 %v272_v19, %v70_v47 }
 0x1db   :  { %v124_v26 = vmul.f32 %v218_v13, %v113_v22 }
 0x1dc   :  { %238 = vmatmul.mubr.msk.bf16.vlgmr.msra.gmra.mrb[0].mxu1 %vm20_vm0, %v126_v20  ;;  %v121_v24 = vmul.f32 %v218_v13, %v110_v21 }
 0x1dd   :  { %241 = vmatprep.mubr.msk.bf16.mxu1 %vm274_vm2, %v273_v55  ;;  %v127_v27 = vpack.c.bf16 %v124_v26, %v124_v26 }
 0x1de   :  { %v125_v25 = vpack.c.bf16 %v121_v24, %v120_v23 }
 0x1e0   :  { %234 = vmatmul.mubr.msk.bf16.vlgmr.msra.gmra.mrb[0].mxu0 %vm20_vm0, %v125_v25 }
 0x1e4   :  { %242 = vmatmul.mubr.msk.bf16.gmra.mrb[4].mxu1 %vm20_vm0, %v127_v27 }
 0x2af   :  { %v195_v28 = vpop.f32.mrb[0].mxu1 }
 0x2b0   :  { %211 = vst.msk [vmem:[%s378_s3 + $0x10] sm:$0xff] %vm20_vm0, %v195_v28  ;;  %v239_v29 = vpop.f32.mrb[1].mxu1 }
 0x2b1   :  { %v198_v30 = vpop.f32.mrb[2].mxu1 }
 0x2b2   :  { %212 = vst.msk [vmem:[%s378_s3 + $0x18] sm:$0xff] %vm20_vm0, %v198_v30  ;;  %v240_v31 = vpop.f32.mrb[3].mxu1 }
 0x2b3   :  { %v187_v32 = vpop.f32.mrb[0].mxu0 }
 0x2b4   :  { %209 = vst.msk [vmem:[%s378_s3] sm:$0xff] %vm20_vm0, %v187_v32  ;;  %v235_v33 = vpop.f32.mrb[1].mxu0 }
 0x2b5   :  { %v190_v34 = vpop.f32.mrb[2].mxu0 }
 0x2b6   :  { %210 = vst.msk [vmem:[%s378_s3 + $0x8] sm:$0xff] %vm20_vm0, %v190_v34  ;;  %v236_v35 = vpop.f32.mrb[3].mxu0 }
 0x2b7   :  { %v203_v36 = vpop.f32.mrb[4].mxu1 }
 0x2b8   :  { %213 = vst.msk [vmem:[%s378_s3 + $0x20] sm:$0x3] %vm33_vm1, %v203_v36  ;;  %v243_v37 = vpop.f32.mrb[5].mxu1 }
 0x2b9   :  { %v206_v38 = vpop.f32.mrb[6].mxu1 }
 0x2ba   :  { %v244_v39 = vpop.f32.mrb[7].mxu1 }

// kernel: prior_network_forward.7
= control target key start
LH: loop header
LB: loop body
LE: loop exit
PB: predicated region body
PF: predicated region fallthrough
CT: control target
= control target key end

     0   :  { %s2942_s13 = smov 0   ;;  %s3519_s0 = inlined_call_operand.vmem [shape: f32[2,17,32], index: 0, kind: input, shape index: {}]   ;;  %s3520_s1 = inlined_call_operand.vmem [shape: f32[1,32], index: 1, kind: input, shape index: {}]   ;;  %s3521_s2 = inlined_call_operand.vmem [shape: bf16[32,96], index: 2, kind: input, shape index: {}]   ;;  %s3522_s3 = inlined_call_operand.vmem [shape: f32[17,16], index: 3, kind: input, shape index: {}]   ;;  %s3523_s4 = inlined_call_operand.vmem [shape: f32[17,16], index: 4, kind: input, shape index: {}]   ;;  %s3524_s5 = inlined_call_operand.vmem [shape: f32[16,16], index: 5, kind: input, shape index: {}]   ;;  %s3525_s6 = inlined_call_operand.vmem [shape: f32[2,16], index: 6, kind: input, shape index: {}]   ;;  %s3526_s7 = inlined_call_operand.vmem [shape: f32[4,17,18], index: 7, kind: input, shape index: {}]   ;;  %s3527_s8 = inlined_call_operand.vmem [shape: bf16[64,32], index: 8, kind: input, shape index: {}]   ;;  %s3528_s9 = inlined_call_operand.vmem [shape: f32[1,32], index: 9, kind: input, shape index: {}]   ;;  %s3529_s10 = inlined_call_operand.vmem [shape: f32[2,17,32], index: 10, kind: output, shape index: {}]  }
   0x1 LB: > { %s2379_s14 = sadd.s32 4294967295, %s2875_s13   ;;  %p2383_p0 = scmp.ge.s32.totalorder %s2875_s13, 1  ;;  %s2875_s13 = sphi %s2942_s13, %s20_s13  }
   0x2   : > { %p312_p1 = scmp.lt.s32.totalorder %s2875_s13, 3 }
   0x4   : > { %p313_p2 = pnand %p2383_p0, %p312_p1 }
   0x5   : > { %p350_p3 = scmp.lt.s32.totalorder (!%p313_p2), %s2379_s14, 1  ;;  %vm365_vm0 = vcmask (!%p313_p2), 261120   ;;  %vm372_vm1 = vcmask (!%p313_p2), 253952   ;;  %v2734_v21 = vld [vmem:[%s3521_s2] sm:$0xff] (!%p313_p2)   ;;  %v2735_v22 = vld [vmem:[%s3521_s2 + $0x8] sm:$0xff] (!%p313_p2)   ;;  %v2877_v25 = vmov (!%p313_p2), 0.0|0.0  }
   0x6   : > { %316 = sbr.rel (%p313_p2) target bundleno = 5065 (0x13c9), region = 60  ;;  %2510 = vmatprep.subr.bf16.mxu0 (!%p313_p2), %v2734_v21  ;;  %v494_v23 = vld [vmem:[%s3524_s5] sm:$0xff] (!%p313_p2)  ;;  %v495_v24 = vld [vmem:[%s3524_s5 + $0x8] sm:$0xff] (!%p313_p2)  ;;  %2671 = vmatprep.subr.bf16.mxu1 (!%p313_p2), %v2877_v25  ;;  %vm2878_vm2 = vmmov (!%p313_p2), 0   ;;  %v2879_v48 = vmov (!%p313_p2), 0.0   ;;  %vm520_vm3 = vcmask (!%p313_p2), 130048  }
   0x7   : > { %2511 = vmatpush3.bf16.msra.mxu0 (!%p313_p2), %v2734_v21  ;;  %v2982_v26 = vpack.c.bf16 (!%p313_p2), %v495_v24, %v494_v23  ;;  %v2386_v40 = vld [vmem:[%s3520_s1] ss:$0 sm:$0xff] (!%p313_p2)  ;;  %2522 = vmatprep.mubr.msk.f32.mxu1 (!%p313_p2), %vm2878_vm2, %v2879_v48  ;;  %s2880_s29 = smov (!%p313_p2), 64   ;;  %vm630_vm4 = vcmask (!%p313_p2), 1040384   ;;  %v3016_v56 = vld [vmem:[%s3522_s3 + $0x8] sm:$0xff] (!%p313_p2)  ;;  %vm670_vm5 = vcmask (!%p313_p2), 123904  }
   0x8   : > { %2512 = vmatprep.subr.bf16.mxu0 (!%p313_p2), %v2735_v22  ;;  %v3037_v60 = vld [vmem:[%s3522_s3] sm:$0xff] (!%p313_p2)  ;;  %vm832_vm6 = vcmask (!%p313_p2), 122880   ;;  %s2881_s28 = smov (!%p313_p2), 112   ;;  %s2883_s20 = smov (!%p313_p2), 48  }
   0x9   : > { %2673 = vmatpush3.bf16.msra.mxu1 (!%p313_p2), %v2982_v26  ;;  %s2884_s21 = smov (!%p313_p2), 96   ;;  %s2885_s22 = smov (!%p313_p2), 32  }
   0xa   : > { %s2886_s11 = smov (!%p313_p2), 80  }
   0xb   : > { %2513 = vmatpush3.bf16.msra.mxu0 (!%p313_p2), %v2735_v22 }
   0xc   : > { %2674 = vmatprep.subr.bf16.mxu0 (!%p313_p2), %v2877_v25 }
   0xd   : > { %s3531_s14 = smov (!%p350_p3, %s2379_s14), 1 }
   0xe   : > { %s2710_s15 = smul.u32 24, %s3531_s14 }
  0x10   : > { %s2958_s18 = scalar_lea.vmem %s3519_s0, %s2710_s15  ;;  %s359_s23 = scalar_lea.vmem %s3529_s10, %s2710_s15 }
  0x11   : > { %v361_v0 = vld [vmem:[%s2958_s18] sm:$0xff]  ;;  %v363_v1 = vld [vmem:[%s2958_s18 + $0x10] sm:$0x1]  ;;  %v362_v2 = vld [vmem:[%s2958_s18 + $0x8] sm:$0xff] }
  0x12   : > { %v366_v3 = vsel %vm365_vm0, %v361_v0, 0.0  ;;  %v373_v4 = vsel %vm372_vm1, %v363_v1, 0.0  ;;  %v369_v5 = vsel %vm365_vm0, %v362_v2, 0.0 }
  0x13   : > { %367 = vadd.xlane.f32.xlu0 %v366_v3  ;;  %374 = vadd.xlane.f32.xlu1 %v373_v4 }
  0x17   : > { %370 = vadd.xlane.f32.xlu0 %v369_v5  ;;  %v3059_v5 = vld [vmem:[%s3523_s4 + $0x8] sm:$0xff] }
  0xa0   : > { %v368_v6 = vpop.xlane.xlu0 %367  ;;  %v375_v7 = vpop.xlane.xlu1 %374 }
  0xa1   : > { %v377_v8 = vmul.f32 0.03125, %v368_v6  ;;  %v379_v9 = vmul.f32 0.03125, %v375_v7 }
  0xa3   : > { %v380_v10 = vsub.f32 %v361_v0, %v377_v8  ;;  %v382_v11 = vsub.f32 %v363_v1, %v379_v9  ;;  %v3051_v0 = vld [vmem:[%s3523_s4] sm:$0xff] }
  0xa4   : > { %v371_v12 = vpop.xlane.xlu0 %370 }
  0xa5   : > { %v378_v13 = vmul.f32 0.03125, %v371_v12  ;;  %v383_v14 = vmul.f32 %v380_v10, %v380_v10  ;;  %v385_v15 = vmul.f32 %v382_v11, %v382_v11  ;;  %v3074_v12 = vld [vmem:[%s3523_s4 + $0x10] sm:$0x1] }
  0xa7   : > { %v381_v16 = vsub.f32 %v362_v2, %v378_v13  ;;  %v386_v17 = vsel %vm365_vm0, %v383_v14, 0.0  ;;  %v392_v18 = vsel %vm372_vm1, %v385_v15, 0.0 }
  0xa8   : > { %387 = vadd.xlane.f32.xlu1 %v386_v17 }
  0xa9   : > { %v384_v19 = vmul.f32 %v381_v16, %v381_v16 }
  0xab   : > { %v389_v20 = vsel %vm365_vm0, %v384_v19, 0.0 }
  0xac   : > { %393 = vadd.xlane.f32.xlu1 %v392_v18  ;;  %390 = vadd.xlane.f32.xlu0 %v389_v20 }
 0x135   : > { %v388_v27 = vpop.xlane.xlu1 %387 }
 0x136   : > { %v395_v28 = vmul.f32 0.03125, %v388_v27 }
 0x138   : > { %v398_v29 = vadd.f32 1e-05, %v395_v28 }
 0x139   : > { %v394_v30 = vpop.xlane.xlu1 %393  ;;  %v391_v31 = vpop.xlane.xlu0 %390 }
 0x13a   : > { %v397_v32 = vmul.f32 0.03125, %v394_v30  ;;  %v396_v33 = vmul.f32 0.03125, %v391_v31  ;;  %2740 = vrsqrt.f32 %v398_v29 }
 0x13c   : > { %v400_v34 = vadd.f32 1e-05, %v397_v32  ;;  %v399_v35 = vadd.f32 1e-05, %v396_v33 }
 0x13e   : > { %2742 = vrsqrt.f32 %v400_v34 }
 0x13f   : > { %2744 = vrsqrt.f32 %v399_v35 }
 0x144   : > { %v2741_v36 = vpop.eup %2740 }
 0x145   : > { %v404_v38 = vmul.f32 %v2741_v36, %v380_v10 }
 0x147   : > { %v413_v44 = vmul.f32 %v2386_v40, %v404_v38 }
 0x148   : > { %v2743_v37 = vpop.eup %2742 }
 0x149   : > { %v2745_v39 = vpop.eup %2744  ;;  %v406_v41 = vmul.f32 %v2743_v37, %v382_v11  ;;  %v3069_v11 = vld [vmem:[%s3522_s3 + $0x10] sm:$0x1] }
 0x14a   : > { %v405_v42 = vmul.f32 %v2745_v39, %v381_v16 }
 0x14b   : > { %v415_v43 = vmul.f32 %v2386_v40, %v406_v41 }
 0x14c   : > { %v414_v45 = vmul.f32 %v2386_v40, %v405_v42 }
 0x14d   : > { %v417_v46 = vpack.c.bf16 %v415_v43, %v415_v43 }
 0x14e   : > { %v416_v47 = vpack.c.bf16 %v414_v45, %v413_v44 }
 0x150   : > { %2514 = vmatprep.mubr.msk.bf16.mxu0 %vm365_vm0, %v416_v47  ;;  %v625_v47 = vld [vmem:[%s3525_s6] sm:$0x1] }
 0x151   : > { %2515 = vmatmul.mubr.msk.bf16.vlgmr.msra.gmra.mrb[0].mxu0 %vm365_vm0, %v417_v46 }
 0x152   : > { %2676 = vmatpush3.bf16.msra.mxu0 %v2982_v26  ;;  %2535 = vmatprep.mubr.msk.f32.mxu0 %vm2878_vm2, %v2879_v48 }
 0x224   : > { %v2996_v49 = vpop.f32.mrb[0].mxu0 }
 0x225   : > { %v2998_v50 = vpop.f32.mrb[1].mxu0  ;;  %v649_v55 = vrot.slane %v2996_v49, 7  ;;  %v730_v15 = vmul.f32 %v2996_v49, %v3069_v11 }
 0x226   : > { %514 = vrot.lane.b32.xlu0 %v2998_v50, %s2880_s29  ;;  %v2517_v51 = vpop.f32.mrb[2].mxu0  ;;  %2536 = vmatmul.mubr.msk.f32.vlgmr.msra.gmra.mrb[4].mxu0 %vm520_vm3, %v2998_v50  ;;  %v646_v53 = vrot.slane %v2998_v50, 7  ;;  %v728_v2 = vmul.f32 %v3037_v60, %v2998_v50 }
 0x227   : > { %v3004_v52 = vpop.f32.mrb[3].mxu0  ;;  %2538 = vmatprep.mubr.msk.f32.mxu0 %vm2878_vm2, %v2879_v48 }
 0x228   : > { %516 = vrot.lane.b32.xlu1 %v3004_v52, %s2880_s29  ;;  %v647_v54 = vrot.slane %v3004_v52, 7  ;;  %v729_v8 = vmul.f32 %v3016_v56, %v3004_v52 }
 0x22a   : > { %501 = vrot.lane.b32.xlu0 %v3016_v56, %s2880_s29  ;;  %2539 = vmatmul.mubr.msk.f32.gmra.mrb[6].mxu0 %vm520_vm3, %v3004_v52  ;;  %v648_v57 = vsel %vm630_vm4, %v646_v53, %v647_v54  ;;  %v3024_v58 = vsel %vm630_vm4, %v647_v54, %v649_v55 }
 0x22b   : > { %2541 = vmatprep.mubr.msk.f32.mxu0 %vm2878_vm2, %v2879_v48  ;;  %v3028_v59 = vpack.i.bf16 %v648_v57, %v646_v53 }
 0x22c   : > { %518 = vrot.lane.b32.xlu1 %v2996_v49, %s2880_s29 }
 0x22e   : > { %2542 = vmatmul.mubr.msk.f32.gmra.mrb[8].mxu0 %vm520_vm3, %v2996_v49 }
 0x230   : > { %499 = vrot.lane.b32.xlu1 %v3037_v60, %s2880_s29 }
 0x298   : > { %v515_v61 = vpop.permute.xlu0 %514 }
 0x299   : > { %2523 = vmatmul.mubr.msk.f32.vlgmr.msra.gmra.mrb[0].mxu1 %vm520_vm3, %v515_v61 }
 0x29a   : > { %v517_v62 = vpop.permute.xlu1 %516  ;;  %2525 = vmatprep.mubr.msk.f32.mxu1 %vm2878_vm2, %v2879_v48 }
 0x29c   : > { %v502_v32 = vpop.permute.xlu0 %501 }
 0x29d   : > { %2526 = vmatmul.mubr.msk.f32.gmra.mrb[2].mxu1 %vm520_vm3, %v517_v62  ;;  %v509_v35 = vmul.f32 %v502_v32, %v3004_v52 }
 0x29e   : > { %2528 = vmatprep.mubr.msk.f32.mxu1 %vm2878_vm2, %v2879_v48  ;;  %v519_v63 = vpop.permute.xlu1 %518 }
 0x2a1   : > { %2529 = vmatmul.mubr.msk.f32.gmra.mrb[4].mxu1 %vm520_vm3, %v519_v63 }
 0x2a2   : > { %v500_v30 = vpop.permute.xlu1 %499 }
 0x2a3   : > { %v508_v31 = vmul.f32 %v500_v30, %v2998_v50 }
 0x2f9   : > { %v803_v1 = vpop.f32.mrb[4].mxu0 }
 0x2fa   : > { %v817_v3 = vmul.f32 %v803_v1, %v3051_v0  ;;  %v2537_v4 = vpop.f32.mrb[5].mxu0 }
 0x2fc   : > { %v3061_v6 = vadd.f32 %v817_v3, %v728_v2 }
 0x2fd   : > { %v808_v7 = vpop.f32.mrb[6].mxu0 }
 0x2fe   : > { %v818_v9 = vmul.f32 %v808_v7, %v3059_v5  ;;  %v2540_v10 = vpop.f32.mrb[7].mxu0  ;;  %v823_v7 = vmul.f32 %v3061_v6, %v3061_v6 }
 0x300   : > { %v3076_v13 = vadd.f32 %v818_v9, %v729_v8  ;;  %v826_v8 = vsel %vm520_vm3, %v823_v7, 0.0 }
 0x301   : > { %v813_v14 = vpop.f32.mrb[8].mxu0 }
 0x302   : > { %v819_v16 = vmul.f32 %v813_v14, %v3074_v12  ;;  %v2543_v17 = vpop.f32.mrb[9].mxu0  ;;  %v824_v9 = vmul.f32 %v3076_v13, %v3076_v13 }
 0x304   : > { %v3081_v18 = vadd.f32 %v819_v16, %v730_v15  ;;  %v829_v10 = vsel %vm520_vm3, %v824_v9, 0.0 }
 0x306   : > { %v825_v63 = vmul.f32 %v3081_v18, %v3081_v18 }
 0x308   : > { %v833_v4 = vsel %vm832_vm6, %v825_v63, 0.0 }
 0x36c   : > { %v593_v19 = vpop.f32.mrb[0].mxu1 }
 0x36d   : > { %v607_v20 = vmul.f32 %v593_v19, %v3051_v0  ;;  %v2524_v21 = vpop.f32.mrb[1].mxu1 }
 0x36f   : > { %613 = vrot.lane.b32.xlu1 %v607_v20, %s2880_s29 }
 0x370   : > { %v598_v22 = vpop.f32.mrb[2].mxu1 }
 0x371   : > { %v608_v23 = vmul.f32 %v598_v22, %v3059_v5  ;;  %v2527_v24 = vpop.f32.mrb[3].mxu1 }
 0x373   : > { %503 = vrot.lane.b32.xlu1 %v3069_v11, %s2880_s29  ;;  %615 = vrot.lane.b32.xlu0 %v608_v23, %s2880_s29 }
 0x374   : > { %v603_v27 = vpop.f32.mrb[4].mxu1 }
 0x375   : > { %v609_v28 = vmul.f32 %v603_v27, %v3074_v12  ;;  %v2530_v29 = vpop.f32.mrb[5].mxu1 }
 0x377   : > { %617 = vrot.lane.b32.xlu0 %v609_v28, %s2880_s29 }
 0x3e1   : > { %v614_v33 = vpop.permute.xlu1 %613 }
 0x3e2   : > { %v622_v34 = vadd.f32 %v614_v33, %v508_v31 }
 0x3e4   : > { %v631_v36 = vrot.slane %v622_v34, 7 }
 0x3e5   : > { %v616_v37 = vpop.permute.xlu0 %615  ;;  %v504_v38 = vpop.permute.xlu1 %503 }
 0x3e6   : > { %v623_v39 = vadd.f32 %v616_v37, %v509_v35  ;;  %636 = vrot.lane.b32.xlu1 %v631_v36, %s2880_s29  ;;  %v510_v41 = vmul.f32 %v2996_v49, %v504_v38 }
 0x3e8   : > { %v632_v40 = vrot.slane %v623_v39, 7 }
 0x3e9   : > { %v618_v42 = vpop.permute.xlu0 %617 }
 0x3ea   : > { %v624_v43 = vadd.f32 %v618_v42, %v510_v41  ;;  %v633_v44 = vsel %vm630_vm4, %v631_v36, %v632_v40 }
 0x3eb   : > { %638 = vrot.lane.b32.xlu0 %v633_v44, %s2880_s29 }
 0x3ec   : > { %v634_v45 = vrot.slane %v624_v43, 7 }
 0x3ee   : > { %v635_v46 = vsel %vm630_vm4, %v632_v40, %v634_v45 }
 0x3ef   : > { %640 = vrot.lane.b32.xlu1 %v635_v46, %s2880_s29  ;;  %s2882_s29 = smov 16  }
 0x458   : > { %v637_v51 = vpop.permute.xlu1 %636 }
 0x459   : > { %v3103_v53 = vsel %vm630_vm4, %v625_v47, %v637_v51 }
 0x45a   : > { %v661_v54 = vmul.f32 %v3103_v53, %v3103_v53 }
 0x45c   : > { %v664_v55 = vsel %vm520_vm3, %v661_v54, 0.0 }
 0x45d   : > { %665 = vadd.xlane.f32.xlu0 %v664_v55  ;;  %v3108_v57 = vpop.permute.xlu0 %638 }
 0x45e   : > { %v662_v61 = vmul.f32 %v3108_v57, %v3108_v57 }
 0x460   : > { %v667_v62 = vsel %vm520_vm3, %v662_v61, 0.0 }
 0x461   : > { %v3115_v1 = vpop.permute.xlu1 %640  ;;  %668 = vadd.xlane.f32.xlu1 %v667_v62 }
 0x462   : > { %v663_v2 = vmul.f32 %v3115_v1, %v3115_v1 }
 0x464   : > { %v671_v3 = vsel %vm670_vm5, %v663_v2, 0.0 }
 0x465   : > { %672 = vadd.xlane.f32.xlu0 %v671_v3  ;;  %834 = vadd.xlane.f32.xlu1 %v833_v4 }
 0x469   : > { %827 = vadd.xlane.f32.xlu0 %v826_v8 }
 0x46d   : > { %830 = vadd.xlane.f32.xlu0 %v829_v10 }
 0x476   : > { %1041 = vrot.lane.b32.xlu1 %v3004_v52, %s2881_s28 }
 0x47a   : > { %1043 = vrot.lane.b32.xlu1 %v2996_v49, %s2881_s28 }
 0x47e   : > { %1027 = vrot.lane.b32.xlu1 %v3037_v60, %s2882_s29 }
 0x482   : > { %1031 = vrot.lane.b32.xlu1 %v3069_v11, %s2882_s29 }
 0x483   : > { %1039 = vrot.lane.b32.xlu0 %v2998_v50, %s2881_s28 }
 0x487   : > { %1029 = vrot.lane.b32.xlu0 %v3016_v56, %s2882_s29 }
 0x4ea   : > { %v666_v14 = vpop.xlane.xlu0 %665 }
 0x4eb   : > { %2746 = vrsqrt.f32 %v666_v14  ;;  %vm676_vm7 = vcmp.eq.f32.partialorder %v666_v14, inf  ;;  %v679_v22 = vand.u32 2147483648, %v666_v14  ;;  %vm678_vm8 = vcmp.eq.f32.partialorder %v666_v14, 0.0 }
 0x4ee   : > { %v669_v15 = vpop.xlane.xlu1 %668 }
 0x4ef   : > { %2748 = vrsqrt.f32 %v669_v15  ;;  %vm683_vm9 = vcmp.eq.f32.partialorder %v669_v15, inf  ;;  %v686_v31 = vand.u32 2147483648, %v669_v15  ;;  %vm685_vm10 = vcmp.eq.f32.partialorder %v669_v15, 0.0 }
 0x4f2   : > { %v835_v16 = vpop.xlane.xlu1 %834  ;;  %v673_v17 = vpop.xlane.xlu0 %672 }
 0x4f3   : > { %2750 = vrsqrt.f32 %v835_v16  ;;  %vm852_vm11 = vcmp.eq.f32.partialorder %v835_v16, inf  ;;  %vm854_vm12 = vcmp.eq.f32.partialorder %v835_v16, 0.0  ;;  %v855_v38 = vand.u32 2147483648, %v835_v16 }
 0x4f4   : > { %2752 = vrsqrt.f32 %v673_v17  ;;  %vm690_vm13 = vcmp.eq.f32.partialorder %v673_v17, inf  ;;  %v693_v41 = vand.u32 2147483648, %v673_v17  ;;  %vm692_vm14 = vcmp.eq.f32.partialorder %v673_v17, 0.0 }
 0x4f5   : > { %v2747_v19 = vpop.eup %2746 }
 0x4f6   : > { %v675_v20 = vmul.f32 %v2747_v19, %v666_v14  ;;  %v828_v21 = vpop.xlane.xlu0 %827 }
 0x4f7   : > { %2754 = vrsqrt.f32 %v828_v21  ;;  %vm838_vm15 = vcmp.eq.f32.partialorder %v828_v21, inf  ;;  %v841_v54 = vand.u32 2147483648, %v828_v21  ;;  %vm840_vm5 = vcmp.eq.f32.partialorder %v828_v21, 0.0 }
 0x4f8   : > { %v677_v23 = vsel %vm676_vm7, %v666_v14, %v675_v20 }
 0x4f9   : > { %v2749_v24 = vpop.eup %2748  ;;  %v680_v27 = vsel %vm678_vm8, %v679_v22, %v677_v23 }
 0x4fa   : > { %v695_v28 = vmax.f32 %v680_v27, 1e-12  ;;  %v682_v29 = vmul.f32 %v2749_v24, %v669_v15  ;;  %v831_v30 = vpop.xlane.xlu0 %830 }
 0x4fb   : > { %2756 = vrsqrt.f32 %v831_v30  ;;  %vm845_vm7 = vcmp.eq.f32.partialorder %v831_v30, inf  ;;  %v848_v3 = vand.u32 2147483648, %v831_v30  ;;  %vm847_vm8 = vcmp.eq.f32.partialorder %v831_v30, 0.0 }
 0x4fc   : > { %v684_v32 = vsel %vm683_vm9, %v669_v15, %v682_v29  ;;  %2758 = vrcp.f32 %v695_v28  ;;  %vm931_vm9 = vcmask 146432  }
 0x4fd   : > { %v2751_v33 = vpop.eup %2750  ;;  %v687_v34 = vsel %vm685_vm10, %v686_v31, %v684_v32  ;;  %vm938_vm10 = vcmask 139264  }
 0x4fe   : > { %v2753_v35 = vpop.eup %2752  ;;  %v696_v36 = vmax.f32 %v687_v34, 1e-12  ;;  %v851_v37 = vmul.f32 %v2751_v33, %v835_v16 }
 0x4ff   : > { %v689_v39 = vmul.f32 %v2753_v35, %v673_v17 }
 0x500   : > { %2760 = vrcp.f32 %v696_v36  ;;  %v853_v40 = vsel %vm852_vm11, %v835_v16, %v851_v37 }
 0x501   : > { %v2755_v42 = vpop.eup %2754  ;;  %v856_v43 = vsel %vm854_vm12, %v855_v38, %v853_v40  ;;  %v691_v44 = vsel %vm690_vm13, %v673_v17, %v689_v39 }
 0x502   : > { %v694_v45 = vsel %vm692_vm14, %v693_v41, %v691_v44  ;;  %v837_v46 = vmul.f32 %v2755_v42, %v828_v21  ;;  %v859_v47 = vmax.f32 %v856_v43, 1e-12 }
 0x503   : > { %v697_v51 = vmax.f32 %v694_v45, 1e-12 }
 0x504   : > { %v839_v55 = vsel %vm838_vm15, %v828_v21, %v837_v46 }
 0x505   : > { %v2757_v61 = vpop.eup %2756  ;;  %2762 = vrcp.f32 %v697_v51  ;;  %v842_v62 = vsel %vm840_vm5, %v841_v54, %v839_v55 }
 0x506   : > { %v857_v63 = vmax.f32 %v842_v62, 1e-12  ;;  %v844_v2 = vmul.f32 %v2757_v61, %v831_v30  ;;  %2764 = vrcp.f32 %v859_v47  ;;  %v2759_v4 = vpop.eup %2758 }
 0x507   : > { %v699_v14 = vmul.f32 %v2759_v4, %v3103_v53 }
 0x508   : > { %2766 = vrcp.f32 %v857_v63  ;;  %v846_v7 = vsel %vm845_vm7, %v831_v30, %v844_v2 }
 0x509   : > { %v849_v8 = vsel %vm847_vm8, %v848_v3, %v846_v7 }
 0x50a   : > { %v2761_v9 = vpop.eup %2760  ;;  %v858_v10 = vmax.f32 %v849_v8, 1e-12 }
 0x50b   : > { %v701_v15 = vmul.f32 %v2761_v9, %v3108_v57 }
 0x50c   : > { %2768 = vrcp.f32 %v858_v10 }
 0x50d   : > { %v3140_v16 = vpack.c.bf16 %v701_v15, %v699_v14  ;;  %v708_v14 = vld [vmem:[%s3526_s7] sm:$0xff] }
 0x50f   : > { %v2763_v17 = vpop.eup %2762  ;;  %2698 = vmatprep.subr.msk.bf16.mxu1 %vm520_vm3, %v3140_v16  ;;  %v3146_v19 = vsel %vm520_vm3, %v3140_v16, 0 }
 0x510   : > { %2545 = vmatpush3.bf16.xpose.msra.mxu1 %v3146_v19  ;;  %v703_v20 = vmul.f32 %v2763_v17, %v3115_v1  ;;  %v2765_v21 = vpop.eup %2764  ;;  %v710_v17 = vld [vmem:[%s3526_s7 + $0x10] sm:$0x1] }
 0x511   : > { %v865_v23 = vmul.f32 %v2765_v21, %v3081_v18  ;;  %v1040_v18 = vpop.permute.xlu0 %1039 }
 0x512   : > { %v2767_v22 = vpop.eup %2766  ;;  %v3150_v53 = vpack.c.bf16 %v703_v20, %v703_v20 }
 0x513   : > { %v861_v57 = vmul.f32 %v2767_v22, %v3061_v6  ;;  %v868_v30 = vmul.f32 16.0, %v865_v23  ;;  %v709_v22 = vld [vmem:[%s3526_s7 + $0x8] sm:$0xff] }
 0x514   : > { %2699 = vmatprep.subr.msk.bf16.mxu1 %vm520_vm3, %v3150_v53  ;;  %v3158_v27 = vsel %vm520_vm3, %v3150_v53, 0 }
 0x515   : > { %v866_v1 = vmul.f32 16.0, %v861_v57  ;;  %v870_v6 = vpack.c.bf16 %v868_v30, %v868_v30  ;;  %v1030_v47 = vpop.permute.xlu0 %1029 }
 0x516   : > { %v2769_v24 = vpop.eup %2768  ;;  %v1037_v62 = vmul.f32 %v1030_v47, %v3004_v52 }
 0x517   : > { %v863_v28 = vmul.f32 %v2769_v24, %v3076_v13  ;;  %v1042_v13 = vpop.permute.xlu1 %1041 }
 0x518   : > { %2547 = vmatpush3.bf16.xpose.msra.mxu1 %v3158_v27 }
 0x519   : > { %v867_v29 = vmul.f32 16.0, %v863_v28  ;;  %2677 = vmatprep.subr.bf16.mxu1 %v2877_v25 }
 0x51b   : > { %v869_v31 = vpack.c.bf16 %v867_v29, %v866_v1  ;;  %v1044_v32 = vpop.permute.xlu1 %1043 }
 0x51d   : > { %2548 = vmatprep.mubr.msk.bf16.mxu1 %vm520_vm3, %v869_v31 }
 0x51f   : > { %2549 = vmatmul.mubr.msk.bf16.vlgmr.msra.gmra.mrb[8].mxu1 %vm520_vm3, %v870_v6  ;;  %v1028_v46 = vpop.permute.xlu1 %1027 }
 0x520   : > { %2679 = vmatpush3.bf16.msra.mxu1 %v2982_v26  ;;  %2564 = vmatprep.mubr.msk.f32.mxu1 %vm2878_vm2, %v2879_v48  ;;  %v1036_v51 = vmul.f32 %v1028_v46, %v2998_v50 }
 0x523   : > { %v1032_v54 = vpop.permute.xlu1 %1031 }
 0x524   : > { %v1038_v4 = vmul.f32 %v2996_v49, %v1032_v54 }
 0x527   : > { %2565 = vmatmul.mubr.msk.f32.vlgmr.msra.gmra.mrb[6].mxu1 %vm520_vm3, %v1040_v18 }
 0x528   : > { %2567 = vmatprep.mubr.msk.f32.mxu1 %vm2878_vm2, %v2879_v48 }
 0x52b   : > { %2568 = vmatmul.mubr.msk.f32.gmra.mrb[12].mxu1 %vm520_vm3, %v1042_v13 }
 0x52c   : > { %2570 = vmatprep.mubr.msk.f32.mxu1 %vm2878_vm2, %v2879_v48 }
 0x52f   : > { %2571 = vmatmul.mubr.msk.f32.gmra.mrb[14].mxu1 %vm520_vm3, %v1044_v32 }
 0x5f2   : > { %v2550_v33 = vpop.f32.mrb[8].mxu1 }
 0x5f3   : > { %v917_v34 = vpop.f32.mrb[9].mxu1  ;;  %v926_v20 = vadd.f32 %v2550_v33, %v710_v17 }
 0x5f4   : > { %v2551_v35 = vpop.f32.mrb[10].mxu1  ;;  %v918_v15 = vadd.f32 %v917_v34, %v708_v14 }
 0x5f5   : > { %v920_v36 = vpop.f32.mrb[11].mxu1  ;;  %v939_v57 = vsel %vm938_vm10, %v926_v20, -inf }
 0x5f6   : > { %v932_v21 = vsel %vm931_vm9, %v918_v15, -inf  ;;  %v921_v23 = vadd.f32 %v920_v36, %v709_v22 }
 0x5f8   : > { %v935_v24 = vsel %vm931_vm9, %v921_v23, -inf }
 0x5fa   : > { %v1117_v37 = vpop.f32.mrb[6].mxu1 }
 0x5fb   : > { %v1131_v38 = vmul.f32 %v1117_v37, %v3051_v0  ;;  %v2566_v39 = vpop.f32.mrb[7].mxu1 }
 0x5fd   : > { %1137 = vrot.lane.b32.xlu0 %v1131_v38, %s2882_s29 }
 0x5fe   : > { %v1122_v40 = vpop.f32.mrb[12].mxu1 }
 0x5ff   : > { %v1132_v41 = vmul.f32 %v1122_v40, %v3059_v5  ;;  %v2569_v42 = vpop.f32.mrb[13].mxu1 }
 0x601   : > { %1139 = vrot.lane.b32.xlu1 %v1132_v41, %s2882_s29 }
 0x602   : > { %v1127_v43 = vpop.f32.mrb[14].mxu1 }
 0x603   : > { %v1133_v44 = vmul.f32 %v1127_v43, %v3074_v12  ;;  %v2572_v45 = vpop.f32.mrb[15].mxu1 }
 0x605   : > { %1141 = vrot.lane.b32.xlu0 %v1133_v44, %s2882_s29 }
 0x66f   : > { %v1138_v55 = vpop.permute.xlu0 %1137 }
 0x670   : > { %v3182_v61 = vadd.f32 %v1138_v55, %v1036_v51 }
 0x672   : > { %v1149_v63 = vmul.f32 %v3182_v61, %v3182_v61 }
 0x673   : > { %v1140_v2 = vpop.permute.xlu1 %1139 }
 0x674   : > { %v3187_v3 = vadd.f32 %v1140_v2, %v1037_v62  ;;  %1155 = vrot.lane.b32.xlu1 %v1149_v63, %s2881_s28 }
 0x676   : > { %v1150_v7 = vmul.f32 %v3187_v3, %v3187_v3 }
 0x677   : > { %v1142_v8 = vpop.permute.xlu0 %1141 }
 0x678   : > { %v3193_v9 = vadd.f32 %v1142_v8, %v1038_v4  ;;  %1157 = vrot.lane.b32.xlu0 %v1150_v7, %s2881_s28 }
 0x67a   : > { %v1151_v10 = vmul.f32 %v3193_v9, %v3193_v9 }
 0x67c   : > { %1159 = vrot.lane.b32.xlu1 %v1151_v10, %s2881_s28 }
 0x697   : > { %933 = vmax.xlane.f32.xlu0 %v932_v21 }
 0x69b   : > { %940 = vmax.xlane.f32.xlu0 %v939_v57 }
 0x6a0   : > { %936 = vmax.xlane.f32.xlu1 %v935_v24 }
 0x6e6   : > { %v1156_v28 = vpop.permute.xlu1 %1155 }
 0x6e7   : > { %v1164_v1 = vsel %vm520_vm3, %v1156_v28, 0.0 }
 0x6e8   : > { %1165 = vadd.xlane.f32.xlu0 %v1164_v1 }
 0x6ea   : > { %v1158_v29 = vpop.permute.xlu0 %1157 }
 0x6eb   : > { %v1167_v30 = vsel %vm520_vm3, %v1158_v29, 0.0 }
 0x6ec   : > { %1168 = vadd.xlane.f32.xlu0 %v1167_v30 }
 0x6ee   : > { %v1160_v31 = vpop.permute.xlu1 %1159 }
 0x6ef   : > { %v1170_v6 = vsel %vm832_vm6, %v1160_v31, 0.0 }
 0x6f0   : > { %1171 = vadd.xlane.f32.xlu1 %v1170_v6 }
 0x724   : > { %v934_v18 = vpop.xlane.xlu0 %933 }
 0x725   : > { %v942_v13 = vsub.f32 %v918_v15, %v934_v18  ;;  %v626_v18 = vld [vmem:[%s3525_s6 + $0x1] sm:$0x1] }
 0x727   : > { %v945_v32 = vmul.f32 1.442695, %v942_v13 }
 0x728   : > { %v941_v33 = vpop.xlane.xlu0 %940 }
 0x729   : > { %2770 = vpow2.f32 %v945_v32  ;;  %v944_v34 = vsub.f32 %v926_v20, %v941_v33 }
 0x72b   : > { %v949_v35 = vmul.f32 1.442695, %v944_v34 }
 0x72d   : > { %2772 = vpow2.f32 %v949_v35  ;;  %v937_v36 = vpop.xlane.xlu1 %936 }
 0x72e   : > { %v943_v37 = vsub.f32 %v921_v23, %v937_v36 }
 0x730   : > { %v947_v38 = vmul.f32 1.442695, %v943_v37 }
 0x732   : > { %2774 = vpow2.f32 %v947_v38 }
 0x733   : > { %v3214_v39 = vpop.eup %2770 }
 0x734   : > { %v951_v40 = vsel %vm931_vm9, %v3214_v39, 0.0 }
 0x735   : > { %952 = vadd.xlane.f32.xlu0 %v951_v40 }
 0x737   : > { %v3218_v41 = vpop.eup %2772 }
 0x738   : > { %v957_v42 = vsel %vm938_vm10, %v3218_v41, 0.0 }
 0x739   : > { %958 = vadd.xlane.f32.xlu0 %v957_v42 }
 0x73c   : > { %v3222_v43 = vpop.eup %2774 }
 0x73d   : > { %v954_v44 = vsel %vm931_vm9, %v3222_v43, 0.0 }
 0x73e   : > { %955 = vadd.xlane.f32.xlu1 %v954_v44 }
 0x74f   : > { %2730 = vrot.lane.b32.xlu1 %v3028_v59, %s2883_s20  ;;  %655 = vrot.lane.b32.xlu0 %v3024_v58, %s2883_s20 }
 0x753   : > { %1493 = vrot.lane.b32.xlu0 %v3004_v52, %s2884_s21 }
 0x757   : > { %1479 = vrot.lane.b32.xlu0 %v3037_v60, %s2885_s22 }
 0x75b   : > { %1483 = vrot.lane.b32.xlu0 %v3069_v11, %s2885_s22 }
 0x775   : > { %v1166_v45 = vpop.xlane.xlu0 %1165 }
 0x776   : > { %2776 = vrsqrt.f32 %v1166_v45  ;;  %vm1175_vm11 = vcmp.eq.f32.partialorder %v1166_v45, inf  ;;  %v1178_v58 = vand.u32 2147483648, %v1166_v45  ;;  %vm1177_vm12 = vcmp.eq.f32.partialorder %v1166_v45, 0.0 }
 0x779   : > { %v1169_v46 = vpop.xlane.xlu0 %1168 }
 0x77a   : > { %2778 = vrsqrt.f32 %v1169_v46  ;;  %vm1182_vm13 = vcmp.eq.f32.partialorder %v1169_v46, inf  ;;  %v1185_v60 = vand.u32 2147483648, %v1169_v46  ;;  %vm1184_vm14 = vcmp.eq.f32.partialorder %v1169_v46, 0.0 }
 0x77d   : > { %v1172_v47 = vpop.xlane.xlu1 %1171 }
 0x77e   : > { %2780 = vrsqrt.f32 %v1172_v47  ;;  %vm1189_vm15 = vcmp.eq.f32.partialorder %v1172_v47, inf  ;;  %v1192_v14 = vand.u32 2147483648, %v1172_v47  ;;  %vm1191_vm5 = vcmp.eq.f32.partialorder %v1172_v47, 0.0 }
 0x780   : > { %v2777_v59 = vpop.eup %2776 }
 0x781   : > { %v1174_v51 = vmul.f32 %v2777_v59, %v1166_v45 }
 0x783   : > { %v1176_v54 = vsel %vm1175_vm11, %v1166_v45, %v1174_v51 }
 0x784   : > { %v2779_v55 = vpop.eup %2778  ;;  %v1179_v62 = vsel %vm1177_vm12, %v1178_v58, %v1176_v54 }
 0x785   : > { %v1194_v63 = vmax.f32 %v1179_v62, 1e-12  ;;  %v1181_v2 = vmul.f32 %v2779_v55, %v1169_v46 }
 0x787   : > { %2782 = vrcp.f32 %v1194_v63  ;;  %v1183_v11 = vsel %vm1182_vm13, %v1169_v46, %v1181_v2 }
 0x788   : > { %v2781_v4 = vpop.eup %2780  ;;  %v1186_v7 = vsel %vm1184_vm14, %v1185_v60, %v1183_v11 }
 0x789   : > { %v1195_v8 = vmax.f32 %v1186_v7, 1e-12  ;;  %v1188_v10 = vmul.f32 %v2781_v4, %v1172_v47 }
 0x78b   : > { %2784 = vrcp.f32 %v1195_v8  ;;  %v1190_v15 = vsel %vm1189_vm15, %v1172_v47, %v1188_v10 }
 0x78c   : > { %v1193_v17 = vsel %vm1191_vm5, %v1192_v14, %v1190_v15 }
 0x78d   : > { %v1196_v20 = vmax.f32 %v1193_v17, 1e-12 }
 0x78f   : > { %2786 = vrcp.f32 %v1196_v20 }
 0x791   : > { %v2783_v21 = vpop.eup %2782 }
 0x792   : > { %v1198_v22 = vmul.f32 %v2783_v21, %v3182_v61 }
 0x794   : > { %v1203_v24 = vmul.f32 16.0, %v1198_v22 }
 0x795   : > { %v2785_v57 = vpop.eup %2784 }
 0x796   : > { %v1200_v23 = vmul.f32 %v2785_v57, %v3187_v3 }
 0x798   : > { %v1204_v28 = vmul.f32 16.0, %v1200_v23 }
 0x799   : > { %v2787_v1 = vpop.eup %2786 }
 0x79a   : > { %v1206_v29 = vpack.c.bf16 %v1204_v28, %v1203_v24  ;;  %v1202_v30 = vmul.f32 %v2787_v1, %v3193_v9 }
 0x79c   : > { %1210 = vrot.lane.b32.xlu1 %v1206_v29, %s2881_s28  ;;  %v1205_v31 = vmul.f32 16.0, %v1202_v30 }
 0x79e   : > { %v1207_v6 = vpack.c.bf16 %v1205_v31, %v1205_v31 }
 0x7a0   : > { %1212 = vrot.lane.b32.xlu1 %v1207_v6, %s2881_s28 }
 0x7a4   : > { %1491 = vrot.lane.b32.xlu1 %v2998_v50, %s2884_s21 }
 0x7a8   : > { %1495 = vrot.lane.b32.xlu1 %v2996_v49, %s2884_s21 }
 0x7ac   : > { %1481 = vrot.lane.b32.xlu1 %v3016_v56, %s2885_s22 }
 0x7c2   : > { %v953_v61 = vpop.xlane.xlu0 %952 }
 0x7c3   : > { %2788 = vrcp.f32 %v953_v61 }
 0x7c6   : > { %v959_v3 = vpop.xlane.xlu0 %958 }
 0x7c7   : > { %2790 = vrcp.f32 %v959_v3 }
 0x7ca   : > { %v656_v34 = vpop.permute.xlu0 %655 }
 0x7cb   : > { %v956_v9 = vpop.xlane.xlu1 %955  ;;  %v3253_v38 = vpack.c.bf16 %v656_v34, %v656_v34 }
 0x7cc   : > { %2792 = vrcp.f32 %v956_v9 }
 0x7cd   : > { %v2789_v36 = vpop.eup %2788  ;;  %v3268_v46 = vsel %vm630_vm4, %v3253_v38, 0 }
 0x7ce   : > { %v961_v44 = vmul.f32 %v2789_v36, %v3214_v39  ;;  %v1494_v51 = vpop.permute.xlu0 %1493 }
 0x7cf   : > { %v2731_v13 = vpop.permute.xlu1 %2730 }
 0x7d0   : > { %v2733_v32 = vunpack.i.h.bf16 %v2731_v13  ;;  %v2732_v33 = vunpack.i.l.bf16 %v2731_v13 }
 0x7d1   : > { %v2791_v56 = vpop.eup %2790 }
 0x7d2   : > { %v660_v35 = vsel %vm630_vm4, %v626_v18, %v2732_v33  ;;  %v965_v42 = vmul.f32 %v2791_v56, %v3218_v41  ;;  %v1480_v57 = vpop.permute.xlu0 %1479 }
 0x7d3   : > { %v3251_v37 = vpack.c.bf16 %v2733_v32, %v660_v35  ;;  %v1488_v24 = vmul.f32 %v1480_v57, %v2998_v50 }
 0x7d4   : > { %v967_v41 = vpack.c.bf16 %v965_v42, %v965_v42 }
 0x7d5   : > { %2552 = vmatprep.subr.bf16.mxu0 %v3251_v37  ;;  %2581 = vmatprep.subr.bf16.mxu1 %v3251_v37 }
 0x7d6   : > { %v2793_v40 = vpop.eup %2792  ;;  %2553 = vmatpush3.bf16.msra.mxu0 %v3251_v37  ;;  %2582 = vmatpush3.bf16.msra.mxu1 %v3251_v37 }
 0x7d7   : > { %2700 = vmatprep.subr.msk.bf16.mxu0 %vm630_vm4, %v3253_v38  ;;  %2703 = vmatprep.subr.msk.bf16.mxu1 %vm630_vm4, %v3253_v38  ;;  %v963_v45 = vmul.f32 %v2793_v40, %v3222_v43 }
 0x7d9   : > { %v966_v47 = vpack.c.bf16 %v963_v45, %v961_v44 }
 0x7da   : > { %2555 = vmatpush3.bf16.msra.mxu0 %v3268_v46  ;;  %2584 = vmatpush3.bf16.msra.mxu1 %v3268_v46 }
 0x7db   : > { %2556 = vmatprep.mubr.msk.bf16.mxu0 %vm931_vm9, %v966_v47  ;;  %2701 = vmatprep.subr.msk.bf16.mxu0 %vm520_vm3, %v3140_v16 }
 0x7dd   : > { %2557 = vmatmul.mubr.msk.bf16.vlgmr.msra.gmra.mrb[12].mxu0 %vm931_vm9, %v967_v41 }
 0x7e3   : > { %2574 = vmatpush3.bf16.xpose.msra.mxu0 %v3146_v19 }
 0x7e4   : > { %2702 = vmatprep.subr.msk.bf16.mxu0 %vm520_vm3, %v3150_v53 }
 0x7eb   : > { %2576 = vmatpush3.bf16.xpose.msra.mxu0 %v3158_v27 }
 0x7ec   : > { %2680 = vmatprep.subr.bf16.mxu0 %v2877_v25 }
 0x80e   : > { %v1211_v39 = vpop.permute.xlu1 %1210 }
 0x80f   : > { %2577 = vmatprep.mubr.msk.bf16.mxu0 %vm520_vm3, %v1211_v39 }
 0x812   : > { %v1213_v43 = vpop.permute.xlu1 %1212 }
 0x813   : > { %2578 = vmatmul.mubr.msk.bf16.vlgmr.msra.gmra.mrb[16].mxu0 %vm520_vm3, %v1213_v43 }
 0x814   : > { %2682 = vmatpush3.bf16.msra.mxu0 %v2982_v26  ;;  %2605 = vmatprep.mubr.msk.f32.mxu0 %vm2878_vm2, %v2879_v48 }
 0x815   : > { %2704 = vmatprep.subr.msk.bf16.mxu0 %vm520_vm3, %v3140_v16 }
 0x816   : > { %v1492_v59 = vpop.permute.xlu1 %1491 }
 0x81a   : > { %v1496_v58 = vpop.permute.xlu1 %1495 }
 0x81b   : > { %2606 = vmatmul.mubr.msk.f32.vlgmr.msra.gmra.mrb[10].mxu0 %vm520_vm3, %v1492_v59 }
 0x81c   : > { %2608 = vmatprep.mubr.msk.f32.mxu0 %vm2878_vm2, %v2879_v48 }
 0x81d   : > { %2615 = vmatpush3.bf16.xpose.msra.mxu0 %v3146_v19 }
 0x81e   : > { %2705 = vmatprep.subr.msk.bf16.mxu0 %vm520_vm3, %v3150_v53  ;;  %v1482_v23 = vpop.permute.xlu1 %1481 }
 0x81f   : > { %2609 = vmatmul.mubr.msk.f32.gmra.mrb[20].mxu0 %vm520_vm3, %v1494_v51  ;;  %v1489_v29 = vmul.f32 %v1482_v23, %v3004_v52 }
 0x820   : > { %2611 = vmatprep.mubr.msk.f32.mxu0 %vm2878_vm2, %v2879_v48 }
 0x823   : > { %2612 = vmatmul.mubr.msk.f32.gmra.mrb[22].mxu0 %vm520_vm3, %v1496_v58 }
 0x825   : > { %2617 = vmatpush3.bf16.xpose.msra.mxu0 %v3158_v27 }
 0x826   : > { %2683 = vmatprep.subr.bf16.mxu0 %v2877_v25 }
 0x8b0   : > { %v3300_v54 = vpop.f32.mrb[12].mxu0 }
 0x8b1   : > { %v3302_v55 = vpop.f32.mrb[13].mxu0 }
 0x8b2   : > { %v2559_v62 = vpop.f32.mrb[14].mxu0 }
 0x8b3   : > { %v3304_v63 = vpop.f32.mrb[15].mxu0 }
 0x8b4   : > { %v1025_v2 = vpack.c.bf16 %v3304_v63, %v3302_v55 }
 0x8e6   : > { %v3308_v60 = vpop.f32.mrb[16].mxu0 }
 0x8e7   : > { %v3310_v11 = vpop.f32.mrb[17].mxu0 }
 0x8e8   : > { %v2580_v4 = vpop.f32.mrb[18].mxu0 }
 0x8e9   : > { %v3312_v7 = vpop.f32.mrb[19].mxu0 }
 0x8ee   : > { %v1569_v8 = vpop.f32.mrb[10].mxu0 }
 0x8ef   : > { %v1583_v25 = vmul.f32 %v1569_v8, %v3051_v0  ;;  %v2607_v10 = vpop.f32.mrb[11].mxu0  ;;  %v1484_v0 = vpop.permute.xlu0 %1483 }
 0x8f0   : > { %v1490_v6 = vmul.f32 %v2996_v49, %v1484_v0 }
 0x8f1   : > { %1589 = vrot.lane.b32.xlu1 %v1583_v25, %s2885_s22 }
 0x8f2   : > { %v1574_v14 = vpop.f32.mrb[20].mxu0 }
 0x8f3   : > { %v1584_v15 = vmul.f32 %v1574_v14, %v3059_v5  ;;  %v2610_v17 = vpop.f32.mrb[21].mxu0 }
 0x8f5   : > { %1591 = vrot.lane.b32.xlu0 %v1584_v15, %s2885_s22 }
 0x8f6   : > { %v1579_v20 = vpop.f32.mrb[22].mxu0 }
 0x8f7   : > { %v1585_v21 = vmul.f32 %v1579_v20, %v3074_v12  ;;  %v2613_v22 = vpop.f32.mrb[23].mxu0 }
 0x8f9   : > { %1593 = vrot.lane.b32.xlu1 %v1585_v21, %s2885_s22 }
 0x963   : > { %v1590_v28 = vpop.permute.xlu1 %1589 }
 0x964   : > { %v1598_v1 = vadd.f32 %v1590_v28, %v1488_v24 }
 0x966   : > { %v1601_v30 = vmul.f32 %v1598_v1, %v1598_v1 }
 0x967   : > { %v1592_v5 = vpop.permute.xlu0 %1591 }
 0x968   : > { %v1599_v31 = vadd.f32 %v1592_v5, %v1489_v29  ;;  %1607 = vrot.lane.b32.xlu0 %v1601_v30, %s2884_s21 }
 0x96a   : > { %v1602_v12 = vmul.f32 %v1599_v31, %v1599_v31 }
 0x96b   : > { %v1594_v61 = vpop.permute.xlu1 %1593 }
 0x96c   : > { %v1600_v3 = vadd.f32 %v1594_v61, %v1490_v6  ;;  %1609 = vrot.lane.b32.xlu1 %v1602_v12, %s2884_s21  ;;  %v712_v6 = vld [vmem:[%s3526_s7 + $0x20] sm:$0xff] }
 0x96d   : > { %v1258_v12 = vadd.f32 %v3312_v7, %v712_v6 }
 0x96e   : > { %v1603_v9 = vmul.f32 %v1600_v3, %v1600_v3 }
 0x96f   : > { %v1271_v61 = vsel %vm931_vm9, %v1258_v12, -inf }
 0x970   : > { %1611 = vrot.lane.b32.xlu0 %v1603_v9, %s2884_s21 }
 0x9da   : > { %v1608_v18 = vpop.permute.xlu0 %1607 }
 0x9db   : > { %v1616_v13 = vsel %vm520_vm3, %v1608_v18, 0.0 }
 0x9dc   : > { %1617 = vadd.xlane.f32.xlu1 %v1616_v13 }
 0x9de   : > { %v1610_v32 = vpop.permute.xlu1 %1609 }
 0x9df   : > { %v1619_v33 = vsel %vm520_vm3, %v1610_v32, 0.0 }
 0x9e0   : > { %1620 = vadd.xlane.f32.xlu0 %v1619_v33 }
 0x9e2   : > { %v1612_v34 = vpop.permute.xlu0 %1611 }
 0x9e3   : > { %v1622_v35 = vsel %vm832_vm6, %v1612_v34, 0.0 }
 0x9e4   : > { %1623 = vadd.xlane.f32.xlu0 %v1622_v35 }
 0xa69   : > { %v1618_v36 = vpop.xlane.xlu1 %1617 }
 0xa6a   : > { %2794 = vrsqrt.f32 %v1618_v36  ;;  %vm1627_vm7 = vcmp.eq.f32.partialorder %v1618_v36, inf  ;;  %v1630_v45 = vand.u32 2147483648, %v1618_v36  ;;  %vm1629_vm8 = vcmp.eq.f32.partialorder %v1618_v36, 0.0 }
 0xa6d   : > { %v1621_v56 = vpop.xlane.xlu0 %1620 }
 0xa6e   : > { %2796 = vrsqrt.f32 %v1621_v56  ;;  %vm1634_vm11 = vcmp.eq.f32.partialorder %v1621_v56, inf  ;;  %v1637_v51 = vand.u32 2147483648, %v1621_v56  ;;  %vm1636_vm12 = vcmp.eq.f32.partialorder %v1621_v56, 0.0 }
 0xa71   : > { %v1624_v40 = vpop.xlane.xlu0 %1623 }
 0xa72   : > { %2798 = vrsqrt.f32 %v1624_v40  ;;  %vm1641_vm13 = vcmp.eq.f32.partialorder %v1624_v40, inf  ;;  %v1644_v10 = vand.u32 2147483648, %v1624_v40  ;;  %vm1643_vm14 = vcmp.eq.f32.partialorder %v1624_v40, 0.0 }
 0xa74   : > { %v2795_v42 = vpop.eup %2794 }
 0xa75   : > { %v1626_v44 = vmul.f32 %v2795_v42, %v1618_v36 }
 0xa77   : > { %v1628_v47 = vsel %vm1627_vm7, %v1618_v36, %v1626_v44 }
 0xa78   : > { %v2797_v41 = vpop.eup %2796  ;;  %v1631_v39 = vsel %vm1629_vm8, %v1630_v45, %v1628_v47 }
 0xa79   : > { %v1646_v43 = vmax.f32 %v1631_v39, 1e-12  ;;  %v1633_v59 = vmul.f32 %v2797_v41, %v1621_v56 }
 0xa7b   : > { %2800 = vrcp.f32 %v1646_v43  ;;  %v1635_v58 = vsel %vm1634_vm11, %v1621_v56, %v1633_v59 }
 0xa7c   : > { %v2799_v62 = vpop.eup %2798  ;;  %v1638_v4 = vsel %vm1636_vm12, %v1637_v51, %v1635_v58  ;;  %v2860_v51 = vld [vmem:[%s3522_s3] sm:$0xff]  ;;  %v714_v58 = vld [vmem:[%s3526_s7 + $0x30] sm:$0xff] }
 0xa7d   : > { %v1647_v8 = vmax.f32 %v1638_v4, 1e-12  ;;  %v1640_v25 = vmul.f32 %v2799_v62, %v1624_v40 }
 0xa7f   : > { %2802 = vrcp.f32 %v1647_v8  ;;  %v1642_v14 = vsel %vm1641_vm13, %v1624_v40, %v1640_v25  ;;  %v715_v25 = vld [vmem:[%s3526_s7 + $0x38] sm:$0xff] }
 0xa80   : > { %v1645_v15 = vsel %vm1643_vm14, %v1644_v10, %v1642_v14 }
 0xa81   : > { %v1648_v17 = vmax.f32 %v1645_v15, 1e-12 }
 0xa83   : > { %2804 = vrcp.f32 %v1648_v17 }
 0xa85   : > { %v2801_v20 = vpop.eup %2800 }
 0xa86   : > { %v1650_v21 = vmul.f32 %v2801_v20, %v1598_v1  ;;  %v713_v1 = vld [vmem:[%s3526_s7 + $0x28] sm:$0x1] }
 0xa88   : > { %v1655_v23 = vmul.f32 16.0, %v1650_v21 }
 0xa89   : > { %v2803_v22 = vpop.eup %2802 }
 0xa8a   : > { %v1652_v57 = vmul.f32 %v2803_v22, %v1599_v31  ;;  %v1263_v31 = vadd.f32 %v3308_v60, %v713_v1  ;;  %v716_v22 = vld [vmem:[%s3526_s7 + $0x40] sm:$0x1] }
 0xa8c   : > { %v1656_v24 = vmul.f32 16.0, %v1652_v57  ;;  %v1274_v9 = vsel %vm938_vm10, %v1263_v31, -inf }
 0xa8d   : > { %v2805_v0 = vpop.eup %2804 }
 0xa8e   : > { %v1658_v28 = vpack.c.bf16 %v1656_v24, %v1655_v23  ;;  %v1654_v29 = vmul.f32 %v2805_v0, %v1600_v3  ;;  %v711_v3 = vld [vmem:[%s3526_s7 + $0x18] sm:$0xff] }
 0xa8f   : > { %v1255_v18 = vadd.f32 %v3310_v11, %v711_v3 }
 0xa90   : > { %1662 = vrot.lane.b32.xlu0 %v1658_v28, %s2884_s21  ;;  %v1657_v30 = vmul.f32 16.0, %v1654_v29 }
 0xa91   : > { %v1268_v7 = vsel %vm931_vm9, %v1255_v18, -inf }
 0xa92   : > { %v1659_v5 = vpack.c.bf16 %v1657_v30, %v1657_v30 }
 0xa94   : > { %1664 = vrot.lane.b32.xlu1 %v1659_v5, %s2884_s21 }
 0xaaf   : > { %1272 = vmax.xlane.f32.xlu0 %v1271_v61 }
 0xab3   : > { %1275 = vmax.xlane.f32.xlu0 %v1274_v9  ;;  %v2862_v9 = vld [vmem:[%s3523_s4] sm:$0xff] }
 0xab8   : > { %1269 = vmax.xlane.f32.xlu1 %v1268_v7 }
 0xac9   : > { %1888 = vrot.lane.b32.xlu0 %v3004_v52, %s2886_s11  ;;  %1886 = vrot.lane.b32.xlu1 %v2998_v50, %s2886_s11 }
 0xb02   : > { %v1663_v60 = vpop.permute.xlu0 %1662 }
 0xb03   : > { %2618 = vmatprep.mubr.msk.bf16.mxu0 %vm520_vm3, %v1663_v60 }
 0xb06   : > { %v1665_v13 = vpop.permute.xlu1 %1664 }
 0xb07   : > { %2619 = vmatmul.mubr.msk.bf16.vlgmr.msra.gmra.mrb[24].mxu0 %vm520_vm3, %v1665_v13  ;;  %v2863_v13 = vld [vmem:[%s3523_s4 + $0x8] sm:$0xff] }
 0xb08   : > { %2685 = vmatpush3.bf16.msra.mxu0 %v2982_v26  ;;  %2640 = vmatprep.mubr.msk.f32.mxu0 %vm2878_vm2, %v2879_v48 }
 0xb09   : > { %2657 = vmatprep.subr.bf16.mxu0 %v3251_v37 }
 0xb3c   : > { %v1273_v11 = vpop.xlane.xlu0 %1272 }
 0xb3d   : > { %v1278_v32 = vsub.f32 %v1258_v12, %v1273_v11 }
 0xb3f   : > { %v1282_v33 = vmul.f32 1.442695, %v1278_v32 }
 0xb40   : > { %v1276_v34 = vpop.xlane.xlu0 %1275 }
 0xb41   : > { %2806 = vpow2.f32 %v1282_v33  ;;  %v1279_v35 = vsub.f32 %v1263_v31, %v1276_v34  ;;  %v2736_v33 = vld [vmem:[%s3527_s8 + $0x8] sm:$0xff]   ;;  %v2737_v34 = vld [vmem:[%s3527_s8] sm:$0xff]  }
 0xb42   : > { %2589 = vmatprep.subr.bf16.mxu1 %v2736_v33 }
 0xb43   : > { %v1284_v40 = vmul.f32 1.442695, %v1279_v35 }
 0xb44   : > { %v1889_v47 = vpop.permute.xlu0 %1888 }
 0xb45   : > { %v1270_v36 = vpop.xlane.xlu1 %1269 }
 0xb46   : > { %v1277_v56 = vsub.f32 %v1255_v18, %v1270_v36 }
 0xb48   : > { %v1280_v42 = vmul.f32 1.442695, %v1277_v56 }
 0xb49   : > { %v1887_v44 = vpop.permute.xlu1 %1886 }
 0xb4a   : > { %2808 = vpow2.f32 %v1280_v42  ;;  %2641 = vmatmul.mubr.msk.f32.vlgmr.msra.gmra.mrb[28].mxu0 %vm520_vm3, %v1887_v44 }
 0xb4b   : > { %v2807_v26 = vpop.eup %2806  ;;  %2658 = vmatpush3.bf16.msra.mxu0 %v3251_v37  ;;  %2643 = vmatprep.mubr.msk.f32.mxu0 %vm2878_vm2, %v2879_v48  ;;  %2810 = vpow2.f32 %v1284_v40 }
 0xb4c   : > { %2709 = vmatprep.subr.msk.bf16.mxu0 %vm630_vm4, %v3253_v38  ;;  %v1289_v45 = vsel %vm931_vm9, %v2807_v26, 0.0 }
 0xb4d   : > { %1290 = vadd.xlane.f32.xlu0 %v1289_v45 }
 0xb4e   : > { %2644 = vmatmul.mubr.msk.f32.gmra.mrb[30].mxu0 %vm520_vm3, %v1889_v47 }
 0xb4f   : > { %2660 = vmatpush3.bf16.msra.mxu0 %v3268_v46  ;;  %2646 = vmatprep.mubr.msk.f32.mxu0 %vm2878_vm2, %v2879_v48  ;;  %v2861_v48 = vld [vmem:[%s3522_s3 + $0x10] sm:$0x1] }
 0xb54   : > { %v2809_v41 = vpop.eup %2808 }
 0xb55   : > { %v1286_v39 = vsel %vm931_vm9, %v2809_v41, 0.0  ;;  %v2811_v43 = vpop.eup %2810 }
 0xb56   : > { %1287 = vadd.xlane.f32.xlu1 %v1286_v39  ;;  %v1292_v59 = vsel %vm938_vm10, %v2811_v43, 0.0 }
 0xb5a   : > { %1293 = vadd.xlane.f32.xlu1 %v1292_v59 }
 0xb63   : > { %1890 = vrot.lane.b32.xlu0 %v2996_v49, %s2886_s11 }
 0xb67   : > { %1874 = vrot.lane.b32.xlu0 %v2860_v51, %s2883_s20 }
 0xb6b   : > { %1878 = vrot.lane.b32.xlu0 %v2861_v48, %s2883_s20 }
 0xbda   : > { %v2620_v62 = vpop.f32.mrb[24].mxu0  ;;  %v1291_v4 = vpop.xlane.xlu0 %1290 }
 0xbdb   : > { %v1706_v8 = vpop.f32.mrb[25].mxu0  ;;  %v1715_v57 = vadd.f32 %v2620_v62, %v716_v22  ;;  %2812 = vrcp.f32 %v1291_v4 }
 0xbdc   : > { %v1707_v10 = vadd.f32 %v1706_v8, %v714_v58  ;;  %v2621_v14 = vpop.f32.mrb[26].mxu0 }
 0xbdd   : > { %v1709_v15 = vpop.f32.mrb[27].mxu0  ;;  %v1726_v0 = vsel %vm938_vm10, %v1715_v57, -inf }
 0xbde   : > { %v1710_v17 = vadd.f32 %v1709_v15, %v715_v25  ;;  %v1891_v20 = vpop.permute.xlu0 %1890  ;;  %v1720_v21 = vsel %vm931_vm9, %v1707_v10, -inf }
 0xbdf   : > { %1721 = vmax.xlane.f32.xlu1 %v1720_v21  ;;  %2647 = vmatmul.mubr.msk.f32.gmra.mrb[32].mxu0 %vm520_vm3, %v1891_v20 }
 0xbe0   : > { %v1723_v23 = vsel %vm931_vm9, %v1710_v17, -inf }
 0xbe2   : > { %v1875_v58 = vpop.permute.xlu0 %1874 }
 0xbe3   : > { %v1288_v24 = vpop.xlane.xlu1 %1287  ;;  %1724 = vmax.xlane.f32.xlu1 %v1723_v23  ;;  %v1883_v8 = vmul.f32 %v1875_v58, %v2998_v50 }
 0xbe4   : > { %2814 = vrcp.f32 %v1288_v24 }
 0xbe5   : > { %v2813_v29 = vpop.eup %2812 }
 0xbe6   : > { %v1298_v6 = vmul.f32 %v2813_v29, %v2807_v26  ;;  %v1879_v62 = vpop.permute.xlu0 %1878  ;;  %v2738_v29 = vld [vmem:[%s3527_s8 + $0x10] sm:$0xff]  }
 0xbe7   : > { %1727 = vmax.xlane.f32.xlu1 %v1726_v0  ;;  %v1294_v28 = vpop.xlane.xlu1 %1293 }
 0xbe8   : > { %2816 = vrcp.f32 %v1294_v28  ;;  %v1026_v28 = vpack.c.bf16 %v3300_v54, %v3300_v54 }
 0xbee   : > { %v2815_v30 = vpop.eup %2814 }
 0xbef   : > { %v1296_v5 = vmul.f32 %v2815_v30, %v2809_v41 }
 0xbf1   : > { %v1301_v12 = vpack.c.bf16 %v1298_v6, %v1296_v5 }
 0xbf2   : > { %v2817_v1 = vpop.eup %2816 }
 0xbf3   : > { %v1300_v31 = vmul.f32 %v2817_v1, %v2811_v43  ;;  %2585 = vmatprep.mubr.msk.bf16.mxu1 %vm931_vm9, %v1301_v12 }
 0xbf5   : > { %v1302_v61 = vpack.c.bf16 %v1300_v31, %v1300_v31  ;;  %v1885_v31 = vmul.f32 %v2996_v49, %v1879_v62 }
 0xbf7   : > { %2586 = vmatmul.mubr.msk.bf16.vlgmr.msra.gmra.mrb[16].mxu1 %vm931_vm9, %v1302_v61 }
 0xbf8   : > { %2590 = vmatpush3.bf16.msra.mxu1 %v2736_v33 }
 0xbf9   : > { %2595 = vmatprep.subr.bf16.mxu1 %v2737_v34 }
 0xc1d   : > { %v1964_v3 = vpop.f32.mrb[28].mxu0 }
 0xc1e   : > { %v1978_v18 = vmul.f32 %v2862_v9, %v1964_v3  ;;  %v2642_v7 = vpop.f32.mrb[29].mxu0 }
 0xc20   : > { %1984 = vrot.lane.b32.xlu0 %v1978_v18, %s2883_s20 }
 0xc21   : > { %v1969_v60 = vpop.f32.mrb[30].mxu0 }
 0xc22   : > { %v1979_v11 = vmul.f32 %v2863_v13, %v1969_v60  ;;  %v2645_v32 = vpop.f32.mrb[31].mxu0 }
 0xc24   : > { %1986 = vrot.lane.b32.xlu0 %v1979_v11, %s2883_s20 }
 0xc6c   : > { %v1722_v35 = vpop.xlane.xlu1 %1721 }
 0xc6d   : > { %v1729_v56 = vsub.f32 %v1707_v10, %v1722_v35  ;;  %v2864_v10 = vld [vmem:[%s3522_s3 + $0x8] sm:$0xff] }
 0xc6f   : > { %v1732_v44 = vmul.f32 1.442695, %v1729_v56 }
 0xc70   : > { %v1725_v36 = vpop.xlane.xlu1 %1724 }
 0xc71   : > { %v1730_v26 = vsub.f32 %v1710_v17, %v1725_v36  ;;  %v2865_v17 = vld [vmem:[%s3523_s4 + $0x10] sm:$0x1] }
 0xc73   : > { %v1734_v47 = vmul.f32 1.442695, %v1730_v26 }
 0xc74   : > { %v1728_v40 = vpop.xlane.xlu1 %1727 }
 0xc75   : > { %v1731_v42 = vsub.f32 %v1715_v57, %v1728_v40 }
 0xc77   : > { %v1736_v45 = vmul.f32 1.442695, %v1731_v42 }
 0xc79   : > { %2818 = vpow2.f32 %v1736_v45 }
 0xc7a   : > { %2820 = vpow2.f32 %v1732_v44 }
 0xc7b   : > { %2822 = vpow2.f32 %v1734_v47 }
 0xc83   : > { %v2819_v41 = vpop.eup %2818 }
 0xc84   : > { %v1744_v39 = vsel %vm938_vm10, %v2819_v41, 0.0  ;;  %v2821_v43 = vpop.eup %2820 }
 0xc85   : > { %1745 = vadd.xlane.f32.xlu1 %v1744_v39  ;;  %v1738_v59 = vsel %vm931_vm9, %v2821_v43, 0.0  ;;  %v2823_v51 = vpop.eup %2822 }
 0xc86   : > { %v1741_v48 = vsel %vm931_vm9, %v2823_v51, 0.0 }
 0xc89   : > { %1739 = vadd.xlane.f32.xlu1 %v1738_v59 }
 0xc8d   : > { %1742 = vadd.xlane.f32.xlu1 %v1741_v48 }
 0xc92   : > { %v1985_v4 = vpop.permute.xlu0 %1984 }
 0xc93   : > { %v3412_v25 = vadd.f32 %v1985_v4, %v1883_v8 }
 0xc95   : > { %v1996_v14 = vmul.f32 %v3412_v25, %v3412_v25 }
 0xc9e   : > { %1876 = vrot.lane.b32.xlu1 %v2864_v10, %s2883_s20 }
 0xca2   : > { %2002 = vrot.lane.b32.xlu1 %v1996_v14, %s2886_s11 }
 0xcb2   : > { %v1974_v15 = vpop.f32.mrb[32].mxu0 }
 0xcb3   : > { %v1980_v20 = vmul.f32 %v2865_v17, %v1974_v15  ;;  %v2648_v50 = vpop.f32.mrb[33].mxu0 }
 0xcb5   : > { %1988 = vrot.lane.b32.xlu0 %v1980_v20, %s2883_s20 }
 0xcca   : > { %v2587_v21 = vpop.f32.mrb[16].mxu1 }
 0xccb   : > { %v1343_v22 = vpop.f32.mrb[17].mxu1  ;;  %v1358_v0 = vpack.c.bf16 %v2587_v21, %v2587_v21 }
 0xccc   : > { %v2588_v57 = vpop.f32.mrb[18].mxu1 }
 0xccd   : > { %v1346_v23 = vpop.f32.mrb[19].mxu1 }
 0xcce   : > { %v1357_v24 = vpack.c.bf16 %v1346_v23, %v1343_v22 }
 0xcd0   : > { %2591 = vmatprep.mubr.msk.bf16.mxu1 %vm520_vm3, %v1357_v24 }
 0xcd1   : > { %2592 = vmatmul.mubr.msk.bf16.vlgmr.msra.gmra.mrb[20].mxu1 %vm520_vm3, %v1358_v0 }
 0xcd2   : > { %2596 = vmatpush3.bf16.msra.mxu1 %v2737_v34  ;;  %2597 = vmatprep.mubr.msk.bf16.mxu1 %vm520_vm3, %v1025_v2 }
 0xcd3   : > { %2622 = vmatprep.subr.bf16.mxu1 %v3251_v37 }
 0xcdd   : > { %2598 = vmatmul.mubr.msk.bf16.vlgmr.msra.gmra.mrb[20].mxu1 %vm520_vm3, %v1026_v28 }
 0xcde   : > { %2623 = vmatpush3.bf16.msra.mxu1 %v3251_v37  ;;  %v1987_v37 = vpop.permute.xlu0 %1986 }
 0xcdf   : > { %2706 = vmatprep.subr.msk.bf16.mxu1 %vm630_vm4, %v3253_v38 }
 0xce2   : > { %2625 = vmatpush3.bf16.msra.mxu1 %v3268_v46 }
 0xce3   : > { %2630 = vmatprep.subr.bf16.mxu1 %v2738_v29 }
 0xd12   : > { %v1746_v55 = vpop.xlane.xlu1 %1745 }
 0xd13   : > { %2824 = vrcp.f32 %v1746_v55 }
 0xd16   : > { %v1740_v63 = vpop.xlane.xlu1 %1739 }
 0xd17   : > { %2826 = vrcp.f32 %v1740_v63 }
 0xd1a   : > { %v1743_v2 = vpop.xlane.xlu1 %1742 }
 0xd1b   : > { %2828 = vrcp.f32 %v1743_v2 }
 0xd1d   : > { %v2825_v38 = vpop.eup %2824 }
 0xd1e   : > { %v1877_v54 = vpop.permute.xlu1 %1876  ;;  %v1752_v46 = vmul.f32 %v2825_v38, %v2819_v41 }
 0xd1f   : > { %v1884_v30 = vmul.f32 %v1877_v54, %v3004_v52 }
 0xd20   : > { %v1754_v7 = vpack.c.bf16 %v1752_v46, %v1752_v46 }
 0xd21   : > { %v3443_v5 = vadd.f32 %v1987_v37, %v1884_v30  ;;  %v2827_v6 = vpop.eup %2826  ;;  %v718_v37 = vld [vmem:[%s3526_s7 + $0x50] sm:$0xff] }
 0xd22   : > { %v1748_v61 = vmul.f32 %v2827_v6, %v2821_v43  ;;  %v2003_v49 = vpop.permute.xlu1 %2002  ;;  %v719_v6 = vld [vmem:[%s3526_s7 + $0x58] sm:$0x1] }
 0xd23   : > { %v1997_v12 = vmul.f32 %v3443_v5, %v3443_v5  ;;  %v2011_v13 = vsel %vm520_vm3, %v2003_v49, 0.0 }
 0xd25   : > { %v2829_v1 = vpop.eup %2828  ;;  %2004 = vrot.lane.b32.xlu0 %v1997_v12, %s2886_s11 }
 0xd26   : > { %v1750_v3 = vmul.f32 %v2829_v1, %v2823_v51 }
 0xd27   : > { %v1989_v9 = vpop.permute.xlu0 %1988 }
 0xd28   : > { %v3449_v18 = vadd.f32 %v1989_v9, %v1885_v31  ;;  %v1753_v52 = vpack.c.bf16 %v1750_v3, %v1748_v61 }
 0xd2a   : > { %v1998_v60 = vmul.f32 %v3449_v18, %v3449_v18  ;;  %2626 = vmatprep.mubr.msk.bf16.mxu1 %vm931_vm9, %v1753_v52 }
 0xd2b   : > { %2627 = vmatmul.mubr.msk.bf16.vlgmr.msra.gmra.mrb[24].mxu1 %vm931_vm9, %v1754_v7 }
 0xd2c   : > { %2631 = vmatpush3.bf16.msra.mxu1 %v2738_v29  ;;  %2006 = vrot.lane.b32.xlu1 %v1998_v60, %s2886_s11 }
 0xd2d   : > { %2707 = vmatprep.subr.msk.bf16.mxu1 %vm520_vm3, %v3140_v16 }
 0xd44   : > { %2012 = vadd.xlane.f32.xlu0 %v2011_v13 }
 0xd97   : > { %v2005_v11 = vpop.permute.xlu0 %2004 }
 0xd98   : > { %v2014_v32 = vsel %vm520_vm3, %v2005_v11, 0.0 }
 0xd99   : > { %2015 = vadd.xlane.f32.xlu1 %v2014_v32 }
 0xd9e   : > { %v2007_v33 = vpop.permute.xlu1 %2006 }
 0xd9f   : > { %v2017_v34 = vsel %vm832_vm6, %v2007_v33, 0.0 }
 0xda0   : > { %2018 = vadd.xlane.f32.xlu0 %v2017_v34 }
 0xdd1   : > { %v2013_v16 = vpop.xlane.xlu0 %2012 }
 0xdd2   : > { %2830 = vrsqrt.f32 %v2013_v16  ;;  %vm2022_vm2 = vcmp.eq.f32.partialorder %v2013_v16, inf  ;;  %v2025_v39 = vand.u32 2147483648, %v2013_v16  ;;  %vm2024_vm4 = vcmp.eq.f32.partialorder %v2013_v16, 0.0 }
 0xddc   : > { %v2831_v26 = vpop.eup %2830 }
 0xddd   : > { %v2021_v45 = vmul.f32 %v2831_v26, %v2013_v16 }
 0xddf   : > { %v2023_v41 = vsel %vm2022_vm2, %v2013_v16, %v2021_v45 }
 0xde0   : > { %v2026_v43 = vsel %vm2024_vm4, %v2025_v39, %v2023_v41 }
 0xde1   : > { %v2041_v51 = vmax.f32 %v2026_v43, 1e-12 }
 0xdfe   : > { %v2628_v35 = vpop.f32.mrb[24].mxu1 }
 0xdff   : > { %v1795_v36 = vpop.f32.mrb[25].mxu1  ;;  %v1810_v44 = vpack.c.bf16 %v2628_v35, %v2628_v35 }
 0xe00   : > { %v2629_v56 = vpop.f32.mrb[26].mxu1 }
 0xe01   : > { %v1798_v40 = vpop.f32.mrb[27].mxu1 }
 0xe02   : > { %v1809_v42 = vpack.c.bf16 %v1798_v40, %v1795_v36 }
 0xe04   : > { %2632 = vmatprep.mubr.msk.bf16.mxu1 %vm520_vm3, %v1809_v42  ;;  %v2739_v42 = vld [vmem:[%s3527_s8 + $0x18] sm:$0xff]  }
 0xe05   : > { %2633 = vmatmul.mubr.msk.bf16.vlgmr.msra.gmra.mrb[20].mxu1 %vm520_vm3, %v1810_v44 }
 0xe06   : > { %2650 = vmatpush3.bf16.xpose.msra.mxu1 %v3146_v19 }
 0xe07   : > { %2708 = vmatprep.subr.msk.bf16.mxu1 %vm520_vm3, %v3150_v53 }
 0xe0e   : > { %2652 = vmatpush3.bf16.xpose.msra.mxu1 %v3158_v27 }
 0xe0f   : > { %2665 = vmatprep.subr.bf16.mxu1 %v2739_v42 }
 0xe26   : > { %v2016_v47 = vpop.xlane.xlu1 %2015 }
 0xe27   : > { %2832 = vrsqrt.f32 %v2016_v47  ;;  %vm2029_vm6 = vcmp.eq.f32.partialorder %v2016_v47, inf  ;;  %v2032_v53 = vand.u32 2147483648, %v2016_v47  ;;  %vm2031_vm15 = vcmp.eq.f32.partialorder %v2016_v47, 0.0 }
 0xe2d   : > { %v2019_v59 = vpop.xlane.xlu0 %2018 }
 0xe2e   : > { %2834 = vrsqrt.f32 %v2019_v59  ;;  %vm2036_vm5 = vcmp.eq.f32.partialorder %v2019_v59, inf  ;;  %v2039_v10 = vand.u32 2147483648, %v2019_v59  ;;  %vm2038_vm7 = vcmp.eq.f32.partialorder %v2019_v59, 0.0 }
 0xe2f   : > { %2836 = vrcp.f32 %v2041_v51 }
 0xe31   : > { %v2833_v19 = vpop.eup %2832 }
 0xe32   : > { %v2028_v48 = vmul.f32 %v2833_v19, %v2016_v47 }
 0xe34   : > { %v2030_v27 = vsel %vm2029_vm6, %v2016_v47, %v2028_v48 }
 0xe35   : > { %v2033_v58 = vsel %vm2031_vm15, %v2032_v53, %v2030_v27 }
 0xe36   : > { %v2042_v62 = vmax.f32 %v2033_v58, 1e-12 }
 0xe38   : > { %v2835_v4 = vpop.eup %2834  ;;  %2838 = vrcp.f32 %v2042_v62 }
 0xe39   : > { %v2035_v8 = vmul.f32 %v2835_v4, %v2019_v59  ;;  %v2837_v20 = vpop.eup %2836 }
 0xe3a   : > { %v2045_v50 = vmul.f32 %v2837_v20, %v3412_v25  ;;  %v717_v25 = vld [vmem:[%s3526_s7 + $0x48] sm:$0xff] }
 0xe3b   : > { %v2037_v14 = vsel %vm2036_vm5, %v2019_v59, %v2035_v8 }
 0xe3c   : > { %v2040_v15 = vsel %vm2038_vm7, %v2039_v10, %v2037_v14  ;;  %v2050_v57 = vmul.f32 16.0, %v2045_v50 }
 0xe3d   : > { %v2043_v17 = vmax.f32 %v2040_v15, 1e-12 }
 0xe3f   : > { %2840 = vrcp.f32 %v2043_v17 }
 0xe42   : > { %v2839_v21 = vpop.eup %2838 }
 0xe43   : > { %v2047_v22 = vmul.f32 %v2839_v21, %v3443_v5 }
 0xe45   : > { %v2051_v23 = vmul.f32 16.0, %v2047_v22 }
 0xe47   : > { %v2053_v24 = vpack.c.bf16 %v2051_v23, %v2050_v57 }
 0xe49   : > { %v2841_v0 = vpop.eup %2840  ;;  %2057 = vrot.lane.b32.xlu0 %v2053_v24, %s2886_s11 }
 0xe4a   : > { %v2049_v28 = vmul.f32 %v2841_v0, %v3449_v18 }
 0xe4c   : > { %v2052_v29 = vmul.f32 16.0, %v2049_v28 }
 0xe4e   : > { %v2054_v55 = vpack.c.bf16 %v2052_v29, %v2052_v29 }
 0xe50   : > { %2059 = vrot.lane.b32.xlu1 %v2054_v55, %s2886_s11 }
 0xebb   : > { %v2058_v63 = vpop.permute.xlu0 %2057 }
 0xebc   : > { %2653 = vmatprep.mubr.msk.bf16.mxu1 %vm520_vm3, %v2058_v63 }
 0xec2   : > { %v2060_v2 = vpop.permute.xlu1 %2059 }
 0xec3   : > { %2654 = vmatmul.mubr.msk.bf16.vlgmr.msra.gmra.mrb[28].mxu1 %vm520_vm3, %v2060_v2 }
 0xec4   : > { %2666 = vmatpush3.bf16.msra.mxu1 %v2739_v42 }
 0xf96   : > { %v2655_v54 = vpop.f32.mrb[28].mxu1 }
 0xf97   : > { %v2101_v30 = vpop.f32.mrb[29].mxu1  ;;  %v2110_v31 = vadd.f32 %v2655_v54, %v719_v6 }
 0xf98   : > { %v2102_v5 = vadd.f32 %v2101_v30, %v717_v25  ;;  %v2656_v38 = vpop.f32.mrb[30].mxu1 }
 0xf99   : > { %v2104_v12 = vpop.f32.mrb[31].mxu1  ;;  %v2121_v3 = vsel %vm938_vm10, %v2110_v31, -inf }
 0xf9a   : > { %v2105_v1 = vadd.f32 %v2104_v12, %v718_v37  ;;  %v2115_v46 = vsel %vm931_vm9, %v2102_v5, -inf }
 0xf9b   : > { %2116 = vmax.xlane.f32.xlu1 %v2115_v46 }
 0xf9c   : > { %v2118_v61 = vsel %vm931_vm9, %v2105_v1, -inf }
 0xf9d   : > { %2119 = vmax.xlane.f32.xlu0 %v2118_v61 }
 0xfa1   : > { %2122 = vmax.xlane.f32.xlu0 %v2121_v3 }
0x1028   : > { %v2117_v9 = vpop.xlane.xlu1 %2116 }
0x1029   : > { %v2124_v18 = vsub.f32 %v2102_v5, %v2117_v9 }
0x102a   : > { %v2120_v52 = vpop.xlane.xlu0 %2119 }
0x102b   : > { %v2127_v7 = vmul.f32 1.442695, %v2124_v18  ;;  %v2125_v60 = vsub.f32 %v2105_v1, %v2120_v52  ;;  %v2434_v18 = vld [vmem:[%s3528_s9] ss:$0 sm:$0xff] }
0x102d   : > { %2842 = vpow2.f32 %v2127_v7  ;;  %v2129_v49 = vmul.f32 1.442695, %v2125_v60 }
0x102e   : > { %v2123_v13 = vpop.xlane.xlu0 %2122 }
0x102f   : > { %2844 = vpow2.f32 %v2129_v49  ;;  %v2126_v11 = vsub.f32 %v2110_v31, %v2123_v13 }
0x1031   : > { %v2131_v32 = vmul.f32 1.442695, %v2126_v11  ;;  %v2866_v11 = vld [vmem:[%s2958_s18] sm:$0xff] }
0x1033   : > { %2846 = vpow2.f32 %v2131_v32 }
0x1037   : > { %v2843_v33 = vpop.eup %2842 }
0x1038   : > { %v2133_v34 = vsel %vm931_vm9, %v2843_v33, 0.0 }
0x1039   : > { %v2845_v35 = vpop.eup %2844  ;;  %2134 = vadd.xlane.f32.xlu0 %v2133_v34 }
0x103a   : > { %v2136_v36 = vsel %vm931_vm9, %v2845_v35, 0.0 }
0x103b   : > { %2137 = vadd.xlane.f32.xlu1 %v2136_v36 }
0x103d   : > { %v2847_v56 = vpop.eup %2846 }
0x103e   : > { %v2139_v40 = vsel %vm938_vm10, %v2847_v56, 0.0 }
0x103f   : > { %2140 = vadd.xlane.f32.xlu0 %v2139_v40  ;;  %v2868_v40 = vld [vmem:[%s2958_s18 + $0x10] sm:$0x1] }
0x10c6   : > { %v2135_v44 = vpop.xlane.xlu0 %2134 }
0x10c7   : > { %2848 = vrcp.f32 %v2135_v44 }
0x10c8   : > { %v2138_v16 = vpop.xlane.xlu1 %2137 }
0x10c9   : > { %2850 = vrcp.f32 %v2138_v16 }
0x10cc   : > { %v2141_v26 = vpop.xlane.xlu0 %2140 }
0x10cd   : > { %2852 = vrcp.f32 %v2141_v26 }
0x10d1   : > { %v2849_v45 = vpop.eup %2848 }
0x10d2   : > { %v2143_v41 = vmul.f32 %v2849_v45, %v2843_v33 }
0x10d3   : > { %v2851_v47 = vpop.eup %2850 }
0x10d4   : > { %v2145_v39 = vmul.f32 %v2851_v47, %v2845_v35  ;;  %v2867_v35 = vld [vmem:[%s2958_s18 + $0x8] sm:$0xff] }
0x10d6   : > { %v2148_v43 = vpack.c.bf16 %v2145_v39, %v2143_v41 }
0x10d7   : > { %v2853_v59 = vpop.eup %2852 }
0x10d8   : > { %v2147_v51 = vmul.f32 %v2853_v59, %v2847_v56  ;;  %2661 = vmatprep.mubr.msk.bf16.mxu0 %vm931_vm9, %v2148_v43 }
0x10da   : > { %v2149_v19 = vpack.c.bf16 %v2147_v51, %v2147_v51 }
0x10dc   : > { %2662 = vmatmul.mubr.msk.bf16.vlgmr.msra.gmra.mrb[36].mxu0 %vm931_vm9, %v2149_v19 }
0x11af   : > { %v2663_v48 = vpop.f32.mrb[36].mxu0 }
0x11b0   : > { %v2190_v53 = vpop.f32.mrb[37].mxu0  ;;  %v2205_v4 = vpack.c.bf16 %v2663_v48, %v2663_v48 }
0x11b1   : > { %v2664_v27 = vpop.f32.mrb[38].mxu0 }
0x11b2   : > { %v2193_v58 = vpop.f32.mrb[39].mxu0 }
0x11b3   : > { %v2204_v62 = vpack.c.bf16 %v2193_v58, %v2190_v53 }
0x11b5   : > { %2667 = vmatprep.mubr.msk.bf16.mxu1 %vm520_vm3, %v2204_v62 }
0x11b6   : > { %2668 = vmatmul.mubr.msk.bf16.vlgmr.msra.gmra.mrb[20].mxu1 %vm520_vm3, %v2205_v4 }
0x1289   : > { %v2669_v8 = vpop.f32.mrb[20].mxu1 }
0x128a   : > { %v2252_v10 = vpop.f32.mrb[21].mxu1  ;;  %v2276_v50 = vsel %vm372_vm1, %v2669_v8, 0.0 }
0x128b   : > { %v2670_v14 = vpop.f32.mrb[22].mxu1  ;;  %v2270_v15 = vsel %vm365_vm0, %v2252_v10, 0.0 }
0x128c   : > { %2271 = vadd.xlane.f32.xlu1 %v2270_v15  ;;  %v2255_v17 = vpop.f32.mrb[23].mxu1 }
0x128d   : > { %v2273_v20 = vsel %vm365_vm0, %v2255_v17, 0.0 }
0x128e   : > { %2274 = vadd.xlane.f32.xlu0 %v2273_v20 }
0x1290   : > { %2277 = vadd.xlane.f32.xlu1 %v2276_v50 }
0x1319   : > { %v2272_v21 = vpop.xlane.xlu1 %2271 }
0x131a   : > { %v2279_v22 = vmul.f32 0.03125, %v2272_v21 }
0x131b   : > { %v2275_v57 = vpop.xlane.xlu0 %2274 }
0x131c   : > { %v2282_v23 = vsub.f32 %v2252_v10, %v2279_v22  ;;  %v2280_v24 = vmul.f32 0.03125, %v2275_v57 }
0x131d   : > { %v2278_v0 = vpop.xlane.xlu1 %2277 }
0x131e   : > { %v2283_v28 = vsub.f32 %v2255_v17, %v2280_v24  ;;  %v2281_v29 = vmul.f32 0.03125, %v2278_v0  ;;  %v2285_v55 = vmul.f32 %v2282_v23, %v2282_v23 }
0x1320   : > { %v2284_v63 = vsub.f32 %v2669_v8, %v2281_v29  ;;  %v2288_v2 = vsel %vm365_vm0, %v2285_v55, 0.0  ;;  %v2286_v25 = vmul.f32 %v2283_v28, %v2283_v28 }
0x1321   : > { %2289 = vadd.xlane.f32.xlu0 %v2288_v2 }
0x1322   : > { %v2291_v54 = vsel %vm365_vm0, %v2286_v25, 0.0  ;;  %v2287_v30 = vmul.f32 %v2284_v63, %v2284_v63 }
0x1323   : > { %2292 = vadd.xlane.f32.xlu1 %v2291_v54 }
0x1324   : > { %v2294_v37 = vsel %vm372_vm1, %v2287_v30, 0.0 }
0x1325   : > { %2295 = vadd.xlane.f32.xlu0 %v2294_v37 }
0x13ae   : > { %v2290_v5 = vpop.xlane.xlu0 %2289 }
0x13af   : > { %v2297_v38 = vmul.f32 0.03125, %v2290_v5 }
0x13b0   : > { %v2293_v6 = vpop.xlane.xlu1 %2292 }
0x13b1   : > { %v2300_v12 = vadd.f32 1e-05, %v2297_v38  ;;  %v2298_v1 = vmul.f32 0.03125, %v2293_v6 }
0x13b2   : > { %v2296_v46 = vpop.xlane.xlu0 %2295 }
0x13b3   : > { %2854 = vrsqrt.f32 %v2300_v12  ;;  %v2301_v31 = vadd.f32 1e-05, %v2298_v1  ;;  %v2299_v61 = vmul.f32 0.03125, %v2296_v46 }
0x13b5   : > { %2856 = vrsqrt.f32 %v2301_v31  ;;  %v2302_v3 = vadd.f32 1e-05, %v2299_v61 }
0x13b7   : > { %2858 = vrsqrt.f32 %v2302_v3 }
0x13bd   : > { %v2855_v9 = vpop.eup %2854 }
0x13be   : > { %v2306_v52 = vmul.f32 %v2855_v9, %v2282_v23 }
0x13bf   : > { %v2857_v7 = vpop.eup %2856 }
0x13c0   : > { %v2315_v60 = vmul.f32 %v2434_v18, %v2306_v52  ;;  %v2307_v49 = vmul.f32 %v2857_v7, %v2283_v28 }
0x13c1   : > { %v2859_v13 = vpop.eup %2858 }
0x13c2   : > { %v2318_v32 = vadd.f32 %v2866_v11, %v2315_v60  ;;  %v2316_v33 = vmul.f32 %v2434_v18, %v2307_v49  ;;  %v2308_v34 = vmul.f32 %v2859_v13, %v2284_v63 }
0x13c4   : > { %2321 = vst.msk [vmem:[%s359_s23] sm:$0xff] %vm365_vm0, %v2318_v32  ;;  %v2319_v36 = vadd.f32 %v2867_v35, %v2316_v33  ;;  %v2317_v56 = vmul.f32 %v2434_v18, %v2308_v34 }
0x13c6   : > { %2322 = vst.msk [vmem:[%s359_s23 + $0x8] sm:$0xff] %vm365_vm0, %v2319_v36  ;;  %v2320_v42 = vadd.f32 %v2868_v40, %v2317_v56 }
0x13c8   : > { %2323 = vst.msk [vmem:[%s359_s23 + $0x10] sm:$0x1] %vm372_vm1, %v2320_v42 }
0x13c9 PF: > { %s20_s13 = sadd.s32 1, %s2875_s13  }
0x13ca   : > { %p17_p4 = scmp.ge.s32.totalorder %s20_s13, 4  }
0x13cc   :  { %19 = sbr.rel (!%p17_p4) target bundleno = 1 (0x1), region = 90 }

</bundles_post_ra>
